<compile_context>
chip_gen: v7x
topology: tpu7x:2x2x1
jax: 0.10.0
libtpu: 0.0.40
codegen_flags: <defaults>
</compile_context>

<pallas_src>
import numpy as np
import jax
import jax.numpy as jnp
from jax import lax
from jax.experimental import pallas as pl
from jax.experimental.pallas import tpu as pltpu

# ---- config (mirrors model_cfg / runtime_cfg defaults) ----------------------
EPSILON = 0.01
EPSILON_ANGLE = 0.01
W_SCALE = 100.0
ANGLE_SCALE = 100.0


# ============================ mesh construction ==============================
def build_mesh(G=5):
    xs = np.linspace(-1.0, 1.0, G)
    ys = np.linspace(-1.0, 1.0, G)
    verts = np.stack(np.meshgrid(xs, ys, indexing="ij"), axis=-1).reshape(-1, 2)
    faces = []
    for i in range(G - 1):
        for j in range(G - 1):
            v00 = i * G + j
            v01 = i * G + (j + 1)
            v10 = (i + 1) * G + j
            v11 = (i + 1) * G + (j + 1)
            faces.append((v00, v10, v11))
            faces.append((v00, v11, v01))
    faces = np.array(faces, np.int32)

    edge_set = set()
    for (a, b, c) in faces:
        for e in ((a, b), (b, c), (c, a)):
            edge_set.add(tuple(sorted(e)))
    edges = np.array(sorted(edge_set), np.int32).T  # [2, E]
    E = edges.shape[1]
    V = verts.shape[0]

    # boundary verts CCW starting at corner (i=0, j=0)
    bound = []
    for j in range(G):                 # bottom
        bound.append(0 * G + j)
    for i in range(1, G):              # right
        bound.append(i * G + (G - 1))
    for j in range(G - 2, -1, -1):     # top
        bound.append((G - 1) * G + j)
    for i in range(G - 2, 0, -1):      # left
        bound.append(i * G + 0)
    bound = np.array(bound, np.int32)
    interior = np.array([v for v in range(V) if v not in set(bound.tolist())],
                        np.int32)
    nI, nB = interior.shape[0], bound.shape[0]

    # edge-incidence matrix  M[e, i] = +1, M[e, j] = -1  =>  M^T diag(w) M = D-A
    M = np.zeros((E, V), np.float32)
    M[np.arange(E), edges[0]] = 1.0
    M[np.arange(E), edges[1]] = -1.0

    # host-precomputed projected incidence tables (review item 2)
    MI = M[:, interior]                 # (E, nI) == M @ PI^T
    MB = M[:, bound]                    # (E, nB) == M @ PB^T
    # original triangle-corner coordinates per face: [Ax,Ay,Bx,By,Cx,Cy]
    o_face = verts[faces].reshape(-1, 6).astype(np.float32)   # (F, 6)

    return dict(
        vertices=jnp.asarray(verts, jnp.float32),
        faces=jnp.asarray(faces, jnp.int32),
        MI=jnp.asarray(MI), MIt=jnp.asarray(MI.T), MB=jnp.asarray(MB),
        o_face=jnp.asarray(o_face),
        bound_verts=jnp.asarray(bound), interior_verts=jnp.asarray(interior),
        E=E, V=V, nI=nI, nB=nB, F=int(faces.shape[0]),
    )


# ===================== Pallas kernel 1: Laplacian assembly ====================
def laplacian_system(W_var, mesh, bound_pos):
    """W_var: [BB, E] raw edge vars, bound_pos: [BB, nB, 2]  (BB = 2 * batch).

    Returns LII [BB, nI, nI] and rhs [BB, nI, 2] for the interior Tutte solve.
    Single grid step, static loop over the fused batch axis."""
    BB = W_var.shape[0]
    E, nI, nB = mesh["E"], mesh["nI"], mesh["nB"]

    def _lap_kernel(w_ref, mit_ref, mi_ref, mb_ref, bp_ref, lii_ref, rhs_ref):
        MIt = mit_ref[...]                                   # (nI, E)
        MI = mi_ref[...]                                     # (E, nI)
        MB = mb_ref[...]                                     # (E, nB)
        for b in range(BB):                                  # BB is tiny (2*B)
            w_raw = w_ref[b:b + 1, :]                        # (1, E)
            w = jax.nn.sigmoid(w_raw * (1.0 / W_SCALE)) * (1.0 - 2.0 * EPSILON) \
                + EPSILON
            wMIt = MIt * w                                   # MI^T diag(w), (nI,E)
            lii_ref[b, :, :] = jnp.dot(wMIt, MI,
                                       preferred_element_type=jnp.float32)
            bvec = jnp.dot(MB, bp_ref[b],                    # (E, 2)
                           preferred_element_type=jnp.float32)
            rhs_ref[b, :, :] = -jnp.dot(wMIt, bvec,
                                        preferred_element_type=jnp.float32)

    lii, rhs = pl.pallas_call(
        _lap_kernel,
        out_shape=(jax.ShapeDtypeStruct((BB, nI, nI), jnp.float32),
                   jax.ShapeDtypeStruct((BB, nI, 2), jnp.float32)),
        grid=(1,),
        in_specs=[pl.BlockSpec((BB, E), lambda i: (0, 0)),
                  pl.BlockSpec((nI, E), lambda i: (0, 0)),
                  pl.BlockSpec((E, nI), lambda i: (0, 0)),
                  pl.BlockSpec((E, nB), lambda i: (0, 0)),
                  pl.BlockSpec((BB, nB, 2), lambda i: (0, 0, 0))],
        out_specs=(pl.BlockSpec((BB, nI, nI), lambda i: (0, 0, 0)),
                   pl.BlockSpec((BB, nI, 2), lambda i: (0, 0, 0))),
        compiler_params=pltpu.CompilerParams(
            dimension_semantics=("arbitrary",)),
    )(W_var.astype(jnp.float32), mesh["MIt"], mesh["MI"], mesh["MB"],
      bound_pos.astype(jnp.float32))
    return lii, rhs


# ========= Pallas kernel 2: in-kernel gather + areas / interp / distortion ====
def _point_kernel(p_ref, fid_ref, ftab_ref, d_ref, pred_ref, dist_ref):
    nf = ftab_ref.shape[2]
    tn = fid_ref.shape[2]

    # in-kernel triangle-corner gather: one-hot over faces -> one MXU matmul
    fid = fid_ref[0]                                              # (1, tn) int32
    face_iota = lax.broadcasted_iota(jnp.int32, (nf, tn), 0)
    onehot = (fid == face_iota).astype(jnp.float32)               # (nf, tn)
    corners = jnp.dot(ftab_ref[0], onehot,
                      preferred_element_type=jnp.float32)         # (18, tn)

    p = p_ref[0]                                                  # (2, tn)
    d = d_ref[0]                                                  # (1, tn)
    px, py = p[0:1], p[1:2]

    def row(i):
        return corners[i:i + 1, :]

    # rows 0..5: original corners Ax,Ay,Bx,By,Cx,Cy
    oAx, oAy, oBx, oBy, oCx, oCy = (row(i) for i in range(6))

    # barycentric (sub-triangle) areas w.r.t. the ORIGINAL mesh (get_areas)
    area_A = jnp.abs((px - oBx) * (py - oCy) - (py - oBy) * (px - oCx)) * 0.5
    area_B = jnp.abs((px - oAx) * (py - oCy) - (py - oAy) * (px - oCx)) * 0.5
    area_C = jnp.abs((px - oAx) * (py - oBy) - (py - oAy) * (px - oBx)) * 0.5
    inv_total = 1.0 / (area_A + area_B + area_C)

    def bary(base):
        nAx, nAy, nBx, nBy, nCx, nCy = (row(base + i) for i in range(6))
        qx = (nAx * area_A + nBx * area_B + nCx * area_C) * inv_total
        qy = (nAy * area_A + nBy * area_B + nCy * area_C) * inv_total
        return qx, qy

    p1x, p1y = bary(6)      # depth channel 0 corners (rows 6..11)
    p2x, p2y = bary(12)     # depth channel 1 corners (rows 12..17)

    w1 = (1.0 - d) * 0.5
    w2 = (d + 1.0) * 0.5
    predx = p1x * w1 + p2x * w2
    predy = p1y * w1 + p2y * w2

    # distortion: 2x2 Jacobian of the affine map original-tri -> new-tri
    # (closed form equivalent of the 6x6 linear solve in compute_distortion)
    o00 = oBx - oAx; o01 = oCx - oAx; o10 = oBy - oAy; o11 = oCy - oAy
    inv_det = 1.0 / (o00 * o11 - o01 * o10)

    def jac(base):
        nAx, nAy, nBx, nBy, nCx, nCy = (row(base + i) for i in range(6))
        n00 = nBx - nAx; n01 = nCx - nAx; n10 = nBy - nAy; n11 = nCy - nAy
        J00 = (n00 * o11 - n01 * o10) * inv_det
        J01 = (n01 * o00 - n00 * o01) * inv_det
        J10 = (n10 * o11 - n11 * o10) * inv_det
        J11 = (n11 * o00 - n10 * o01) * inv_det
        return J00, J01, J10, J11

    J1 = jac(6)
    J2 = jac(12)
    # TODO(synk): the reference code broadcasts [B*N,2,2] against [B,N,1]
    # (ill-formed for general shapes); we implement the per-point intent.
    dist_rows = [a * w1 + b * w2 for a, b in zip(J1, J2)]

    pred_ref[...] = jnp.concatenate([predx, predy], axis=0)[None]
    dist_ref[...] = jnp.concatenate(dist_rows, axis=0)[None]


def point_pass(p_pack, fid_pack, ftab, d_pack, tn=None):
    """p_pack [B,2,N] f32, fid_pack [B,1,N] i32, ftab [B,18,F] f32,
    d_pack [B,1,N] f32  ->  pred [B,2,N], dist [B,4,N]."""
    B, _, N = p_pack.shape
    nF = ftab.shape[2]
    if tn is None:
        tn = N                      # full per-batch row per grid step
    assert N % tn == 0 and (tn == N or tn % 128 == 0)
    grid = (B, N // tn)

    def im_pt(b, t):
        return (b, 0, t)

    def im_tab(b, t):
        return (b, 0, 0)

    pred, dist = pl.pallas_call(
        _point_kernel,
        out_shape=(jax.ShapeDtypeStruct((B, 2, N), jnp.float32),
                   jax.ShapeDtypeStruct((B, 4, N), jnp.float32)),
        grid=grid,
        in_specs=[pl.BlockSpec((1, 2, tn), im_pt),
                  pl.BlockSpec((1, 1, tn), im_pt),
                  pl.BlockSpec((1, 18, nF), im_tab),
                  pl.BlockSpec((1, 1, tn), im_pt)],
        out_specs=(pl.BlockSpec((1, 2, tn), im_pt),
                   pl.BlockSpec((1, 4, tn), im_pt)),
        compiler_params=pltpu.CompilerParams(
            dimension_semantics=("parallel", "parallel")),
    )(p_pack, fid_pack, ftab, d_pack)
    return pred, dist


# ============================ JAX glue ========================================
def find_faces(points, vertices, faces):
    # Brute-force point-in-triangle (replaces scipy Delaunay.find_simplex).
    A = vertices[faces[:, 0]]; B = vertices[faces[:, 1]]; C = vertices[faces[:, 2]]

    def cross(o, a, p):
        return ((a[..., 0] - o[..., 0]) * (p[..., 1] - o[..., 1]) -
                (a[..., 1] - o[..., 1]) * (p[..., 0] - o[..., 0]))

    P = points[:, :, None, :]
    Af, Bf, Cf = A[None, None], B[None, None], C[None, None]
    d1 = cross(Af, Bf, P); d2 = cross(Bf, Cf, P); d3 = cross(Cf, Af, P)
    eps = 1e-7
    inside = (((d1 >= -eps) & (d2 >= -eps) & (d3 >= -eps)) |
              ((d1 <= eps) & (d2 <= eps) & (d3 <= eps)))
    return jnp.argmax(inside, axis=-1).astype(jnp.int32)   # [B, N]


def tutte_embedding_fused(var_flat, mesh):
    # var_flat: [BB, E + nB]   (fused batch*depth-channel axis)
    BB = var_flat.shape[0]
    E, V, nB = mesh["E"], mesh["V"], mesh["nB"]
    W_var = var_flat[:, :E]
    angle_var = var_flat[:, E:E + nB]

    ang = jax.nn.sigmoid(angle_var / ANGLE_SCALE) * (1.0 - 2.0 * EPSILON_ANGLE) \
        + EPSILON_ANGLE
    new_angle = ang / jnp.sum(ang, axis=1, keepdims=True)
    a = jnp.cumsum(new_angle, axis=1) * (2.0 * jnp.pi)     # rotate_angle=False

    # map angles onto the unit square boundary (circle_map=False)
    pi = jnp.pi
    t = jnp.tan(a)
    m1 = (a > 7 * pi / 4) | (a <= pi / 4)
    m2 = (a > pi / 4) & (a <= 3 * pi / 4)
    m3 = (a > 3 * pi / 4) & (a <= 5 * pi / 4)
    bx = jnp.where(m1, 1.0, jnp.where(m2, 1.0 / t, jnp.where(m3, -1.0, -1.0 / t)))
    by = jnp.where(m1, t, jnp.where(m2, 1.0, jnp.where(m3, -t, -1.0)))
    bound_pos = jnp.stack([bx, by], axis=-1)                # [BB, nB, 2]

    lii, rhs = laplacian_system(W_var, mesh, bound_pos)     # Pallas kernel
    x = jnp.linalg.solve(lii, rhs)                          # [BB, nI, 2]
    # TODO(synk): reference solves the sparse COO system in float64; dense f32 here.

    out_pos = jnp.zeros((BB, V, 2), jnp.float32)
    out_pos = out_pos.at[:, mesh["bound_verts"]].set(bound_pos)
    out_pos = out_pos.at[:, mesh["interior_verts"]].set(x)
    return out_pos


def tutte_layer_depth_forward(input_points, var_pred, depth, mesh):
    B, N, _ = input_points.shape
    verts = mesh["vertices"]
    faces = mesh["faces"]
    nF, V, E, nB = mesh["F"], mesh["V"], mesh["E"], mesh["nB"]

    # clamp only for the face search so out-of-domain points never miss a face
    pts_safe = jnp.clip(input_points, -0.999, 0.999)
    face_ids = find_faces(pts_safe, verts, faces)           # [B, N]

    # ---- fused Tutte embedding for BOTH depth channels (fused batch axis) ----
    var_flat = jnp.transpose(var_pred, (0, 2, 1)).reshape(B * 2, E + nB)
    out_pos = tutte_embedding_fused(var_flat, mesh)         # [2B, V, 2]
    nv_all = out_pos.reshape(B, 2, V, 2)
    nv1 = nv_all[:, 0]                                      # [B, V, 2]

    # ---- tiny per-batch face lookup table: 18 corner coords per face --------
    n_face = out_pos[:, faces, :].reshape(B, 2, nF, 6)      # tiny gather
    ftab = jnp.concatenate(
        [jnp.broadcast_to(mesh["o_face"][None], (B, nF, 6)),
         n_face[:, 0], n_face[:, 1]], axis=-1)              # [B, nF, 18]
    ftab = jnp.transpose(ftab, (0, 2, 1)).astype(jnp.float32)   # [B, 18, nF]

    # ---- pack per-point tensors channel-major (points on the lane axis) -----
    p_pack = jnp.transpose(input_points, (0, 2, 1)).astype(jnp.float32)  # [B,2,N]
    fid_pack = face_ids.reshape(B, 1, N)                                  # [B,1,N]
    d_pack = depth.reshape(B, 1, N).astype(jnp.float32)                   # [B,1,N]

    pred, dist = point_pass(p_pack, fid_pack, ftab, d_pack)  # Pallas kernel

    pred_points = jnp.transpose(pred, (0, 2, 1))             # [B, N, 2]
    distortions = jnp.transpose(dist, (0, 2, 1)).reshape(B * N, 2, 2)
    return pred_points, nv1, distortions


# ================================ main ========================================
if __name__ == "__main__":
    mesh = build_mesh(G=5)          # E=56, V=25, nB=16, nI=9, F=32

    B, N = 2, 1024
    key = jax.random.PRNGKey(0)
    k1, k2, k3 = jax.random.split(key, 3)
    input_points = jax.random.uniform(k1, (B, N, 2), jnp.float32,
                                      minval=-0.95, maxval=0.95)
    var_pred = jax.random.normal(k2, (B, mesh["E"] + mesh["nB"], 2),
                                 jnp.float32) * 50.0
    depth = jax.random.uniform(k3, (B, N), jnp.float32, minval=-1.0, maxval=1.0)

    fwd = jax.jit(lambda p, v, d: tutte_layer_depth_forward(p, v, d, mesh))
    pred_points, new_vertices1, distortions = fwd(input_points, var_pred, depth)
    jax.block_until_ready((pred_points, new_vertices1, distortions))

    assert pred_points.shape == (B, N, 2)
    assert new_vertices1.shape == (B, mesh["V"], 2)
    assert distortions.shape == (B * N, 2, 2)
    assert bool(jnp.all(jnp.isfinite(pred_points)))
    assert bool(jnp.all(jnp.isfinite(new_vertices1)))
    assert bool(jnp.all(jnp.isfinite(distortions)))
    print("KERNEL_OK")
</pallas_src>

<mosaic_0001>
module attributes {stable_mosaic.version = 11 : i64} {
  func.func @_lap_kernel(%arg0: i32, %arg1: memref<4x56xf32, #tpu.memory_space<vmem>>, %arg2: memref<9x56xf32, #tpu.memory_space<vmem>>, %arg3: memref<56x9xf32, #tpu.memory_space<vmem>>, %arg4: memref<56x16xf32, #tpu.memory_space<vmem>>, %arg5: memref<4x16x2xf32, #tpu.memory_space<vmem>>, %arg6: memref<4x9x9xf32, #tpu.memory_space<vmem>>, %arg7: memref<4x9x2xf32, #tpu.memory_space<vmem>>) attributes {dimension_semantics = [#tpu.dimension_semantics<arbitrary>], iteration_bounds = array<i64: 1>, scalar_prefetch = 0 : i64, scratch_operands = 0 : i64, tpu.core_type = #tpu.core_type<tc>, window_params = [{pipeline_mode = #tpu.pipeline_mode<synchronous>, transform_indices = @transform_0, window_bounds = array<i64: 4, 56>}, {pipeline_mode = #tpu.pipeline_mode<synchronous>, transform_indices = @transform_1, window_bounds = array<i64: 9, 56>}, {pipeline_mode = #tpu.pipeline_mode<synchronous>, transform_indices = @transform_2, window_bounds = array<i64: 56, 9>}, {pipeline_mode = #tpu.pipeline_mode<synchronous>, transform_indices = @transform_3, window_bounds = array<i64: 56, 16>}, {pipeline_mode = #tpu.pipeline_mode<synchronous>, transform_indices = @transform_4, window_bounds = array<i64: 4, 16, 2>}, {pipeline_mode = #tpu.pipeline_mode<synchronous>, transform_indices = @transform_5, window_bounds = array<i64: 4, 9, 9>}, {pipeline_mode = #tpu.pipeline_mode<synchronous>, transform_indices = @transform_6, window_bounds = array<i64: 4, 9, 2>}]} {
    %c0 = arith.constant 0 : index
    %c0_0 = arith.constant 0 : index
    %0 = vector.load %arg2[%c0, %c0_0] : memref<9x56xf32, #tpu.memory_space<vmem>>, vector<9x56xf32>
    %c0_1 = arith.constant 0 : index
    %c0_2 = arith.constant 0 : index
    %1 = vector.load %arg3[%c0_1, %c0_2] : memref<56x9xf32, #tpu.memory_space<vmem>>, vector<56x9xf32>
    %c0_3 = arith.constant 0 : index
    %c0_4 = arith.constant 0 : index
    %2 = vector.load %arg4[%c0_3, %c0_4] : memref<56x16xf32, #tpu.memory_space<vmem>>, vector<56x16xf32>
    %c0_5 = arith.constant 0 : index
    %c0_6 = arith.constant 0 : index
    %3 = vector.load %arg1[%c0_5, %c0_6] : memref<4x56xf32, #tpu.memory_space<vmem>>, vector<1x56xf32>
    %cst = arith.constant 0.00999999977 : f32
    %4 = vector.broadcast %cst : f32 to vector<1x56xf32>
    %5 = arith.mulf %3, %4 : vector<1x56xf32>
    %6 = arith.negf %5 : vector<1x56xf32>
    %7 = math.exp %6 : vector<1x56xf32>
    %cst_7 = arith.constant 1.000000e+00 : f32
    %8 = vector.broadcast %cst_7 : f32 to vector<1x56xf32>
    %9 = arith.addf %8, %7 : vector<1x56xf32>
    %10 = arith.divf %8, %9 : vector<1x56xf32>
    %cst_8 = arith.constant 9.800000e-01 : f32
    %11 = vector.broadcast %cst_8 : f32 to vector<1x56xf32>
    %12 = arith.mulf %10, %11 : vector<1x56xf32>
    %cst_9 = arith.constant 0.00999999977 : f32
    %13 = vector.broadcast %cst_9 : f32 to vector<1x56xf32>
    %14 = arith.addf %12, %13 : vector<1x56xf32>
    %15 = vector.broadcast %14 : vector<1x56xf32> to vector<9x56xf32>
    %16 = arith.mulf %0, %15 : vector<9x56xf32>
    %cst_10 = arith.constant dense<0.000000e+00> : vector<9x9xf32>
    %17 = tpu.matmul %16, %1, %cst_10 {dimension_numbers = #tpu.dot_dimension_numbers<[1], [0], [0], [1], [0, 0, 1, 1], [], []>} : vector<9x56xf32>, vector<56x9xf32>, vector<9x9xf32> -> vector<9x9xf32>
    %c0_11 = arith.constant 0 : index
    %c0_12 = arith.constant 0 : index
    %c0_13 = arith.constant 0 : index
    %18 = vector.load %arg6[%c0_11, %c0_12, %c0_13] : memref<4x9x9xf32, #tpu.memory_space<vmem>>, vector<1x9x9xf32>
    %19 = vector.shape_cast %18 : vector<1x9x9xf32> to vector<9x9xf32>
    %20 = vector.shape_cast %17 : vector<9x9xf32> to vector<1x9x9xf32>
    tpu.vector_store %arg6[%c0_11, %c0_12, %c0_13], %20 {strides = array<i32>} : memref<4x9x9xf32, #tpu.memory_space<vmem>>, vector<1x9x9xf32>,
    %c0_14 = arith.constant 0 : index
    %c0_15 = arith.constant 0 : index
    %c0_16 = arith.constant 0 : index
    %21 = vector.load %arg5[%c0_14, %c0_15, %c0_16] : memref<4x16x2xf32, #tpu.memory_space<vmem>>, vector<1x16x2xf32>
    %22 = vector.shape_cast %21 : vector<1x16x2xf32> to vector<16x2xf32>
    %cst_17 = arith.constant dense<0.000000e+00> : vector<56x2xf32>
    %23 = tpu.matmul %2, %22, %cst_17 {dimension_numbers = #tpu.dot_dimension_numbers<[1], [0], [0], [1], [0, 0, 1, 1], [], []>} : vector<56x16xf32>, vector<16x2xf32>, vector<56x2xf32> -> vector<56x2xf32>
    %cst_18 = arith.constant dense<0.000000e+00> : vector<9x2xf32>
    %24 = tpu.matmul %16, %23, %cst_18 {dimension_numbers = #tpu.dot_dimension_numbers<[1], [0], [0], [1], [0, 0, 1, 1], [], []>} : vector<9x56xf32>, vector<56x2xf32>, vector<9x2xf32> -> vector<9x2xf32>
    %cst_19 = arith.constant 0.000000e+00 : f32
    %25 = vector.broadcast %cst_19 : f32 to vector<9x2xf32>
    %26 = arith.subf %25, %24 : vector<9x2xf32>
    %c0_20 = arith.constant 0 : index
    %c0_21 = arith.constant 0 : index
    %c0_22 = arith.constant 0 : index
    %27 = vector.load %arg7[%c0_20, %c0_21, %c0_22] : memref<4x9x2xf32, #tpu.memory_space<vmem>>, vector<1x9x2xf32>
    %28 = vector.shape_cast %27 : vector<1x9x2xf32> to vector<9x2xf32>
    %29 = vector.shape_cast %26 : vector<9x2xf32> to vector<1x9x2xf32>
    tpu.vector_store %arg7[%c0_20, %c0_21, %c0_22], %29 {strides = array<i32>} : memref<4x9x2xf32, #tpu.memory_space<vmem>>, vector<1x9x2xf32>,
    %c1 = arith.constant 1 : index
    %c0_23 = arith.constant 0 : index
    %30 = vector.load %arg1[%c1, %c0_23] : memref<4x56xf32, #tpu.memory_space<vmem>>, vector<1x56xf32>
    %cst_24 = arith.constant 0.00999999977 : f32
    %31 = vector.broadcast %cst_24 : f32 to vector<1x56xf32>
    %32 = arith.mulf %30, %31 : vector<1x56xf32>
    %33 = arith.negf %32 : vector<1x56xf32>
    %34 = math.exp %33 : vector<1x56xf32>
    %cst_25 = arith.constant 1.000000e+00 : f32
    %35 = vector.broadcast %cst_25 : f32 to vector<1x56xf32>
    %36 = arith.addf %35, %34 : vector<1x56xf32>
    %37 = arith.divf %35, %36 : vector<1x56xf32>
    %cst_26 = arith.constant 9.800000e-01 : f32
    %38 = vector.broadcast %cst_26 : f32 to vector<1x56xf32>
    %39 = arith.mulf %37, %38 : vector<1x56xf32>
    %cst_27 = arith.constant 0.00999999977 : f32
    %40 = vector.broadcast %cst_27 : f32 to vector<1x56xf32>
    %41 = arith.addf %39, %40 : vector<1x56xf32>
    %42 = vector.broadcast %41 : vector<1x56xf32> to vector<9x56xf32>
    %43 = arith.mulf %0, %42 : vector<9x56xf32>
    %cst_28 = arith.constant dense<0.000000e+00> : vector<9x9xf32>
    %44 = tpu.matmul %43, %1, %cst_28 {dimension_numbers = #tpu.dot_dimension_numbers<[1], [0], [0], [1], [0, 0, 1, 1], [], []>} : vector<9x56xf32>, vector<56x9xf32>, vector<9x9xf32> -> vector<9x9xf32>
    %c1_29 = arith.constant 1 : index
    %c0_30 = arith.constant 0 : index
    %c0_31 = arith.constant 0 : index
    %45 = vector.load %arg6[%c1_29, %c0_30, %c0_31] : memref<4x9x9xf32, #tpu.memory_space<vmem>>, vector<1x9x9xf32>
    %46 = vector.shape_cast %45 : vector<1x9x9xf32> to vector<9x9xf32>
    %47 = vector.shape_cast %44 : vector<9x9xf32> to vector<1x9x9xf32>
    tpu.vector_store %arg6[%c1_29, %c0_30, %c0_31], %47 {strides = array<i32>} : memref<4x9x9xf32, #tpu.memory_space<vmem>>, vector<1x9x9xf32>,
    %c1_32 = arith.constant 1 : index
    %c0_33 = arith.constant 0 : index
    %c0_34 = arith.constant 0 : index
    %48 = vector.load %arg5[%c1_32, %c0_33, %c0_34] : memref<4x16x2xf32, #tpu.memory_space<vmem>>, vector<1x16x2xf32>
    %49 = vector.shape_cast %48 : vector<1x16x2xf32> to vector<16x2xf32>
    %cst_35 = arith.constant dense<0.000000e+00> : vector<56x2xf32>
    %50 = tpu.matmul %2, %49, %cst_35 {dimension_numbers = #tpu.dot_dimension_numbers<[1], [0], [0], [1], [0, 0, 1, 1], [], []>} : vector<56x16xf32>, vector<16x2xf32>, vector<56x2xf32> -> vector<56x2xf32>
    %cst_36 = arith.constant dense<0.000000e+00> : vector<9x2xf32>
    %51 = tpu.matmul %43, %50, %cst_36 {dimension_numbers = #tpu.dot_dimension_numbers<[1], [0], [0], [1], [0, 0, 1, 1], [], []>} : vector<9x56xf32>, vector<56x2xf32>, vector<9x2xf32> -> vector<9x2xf32>
    %cst_37 = arith.constant 0.000000e+00 : f32
    %52 = vector.broadcast %cst_37 : f32 to vector<9x2xf32>
    %53 = arith.subf %52, %51 : vector<9x2xf32>
    %c1_38 = arith.constant 1 : index
    %c0_39 = arith.constant 0 : index
    %c0_40 = arith.constant 0 : index
    %54 = vector.load %arg7[%c1_38, %c0_39, %c0_40] : memref<4x9x2xf32, #tpu.memory_space<vmem>>, vector<1x9x2xf32>
    %55 = vector.shape_cast %54 : vector<1x9x2xf32> to vector<9x2xf32>
    %56 = vector.shape_cast %53 : vector<9x2xf32> to vector<1x9x2xf32>
    tpu.vector_store %arg7[%c1_38, %c0_39, %c0_40], %56 {strides = array<i32>} : memref<4x9x2xf32, #tpu.memory_space<vmem>>, vector<1x9x2xf32>,
    %c2 = arith.constant 2 : index
    %c0_41 = arith.constant 0 : index
    %57 = vector.load %arg1[%c2, %c0_41] : memref<4x56xf32, #tpu.memory_space<vmem>>, vector<1x56xf32>
    %cst_42 = arith.constant 0.00999999977 : f32
    %58 = vector.broadcast %cst_42 : f32 to vector<1x56xf32>
    %59 = arith.mulf %57, %58 : vector<1x56xf32>
    %60 = arith.negf %59 : vector<1x56xf32>
    %61 = math.exp %60 : vector<1x56xf32>
    %cst_43 = arith.constant 1.000000e+00 : f32
    %62 = vector.broadcast %cst_43 : f32 to vector<1x56xf32>
    %63 = arith.addf %62, %61 : vector<1x56xf32>
    %64 = arith.divf %62, %63 : vector<1x56xf32>
    %cst_44 = arith.constant 9.800000e-01 : f32
    %65 = vector.broadcast %cst_44 : f32 to vector<1x56xf32>
    %66 = arith.mulf %64, %65 : vector<1x56xf32>
    %cst_45 = arith.constant 0.00999999977 : f32
    %67 = vector.broadcast %cst_45 : f32 to vector<1x56xf32>
    %68 = arith.addf %66, %67 : vector<1x56xf32>
    %69 = vector.broadcast %68 : vector<1x56xf32> to vector<9x56xf32>
    %70 = arith.mulf %0, %69 : vector<9x56xf32>
    %cst_46 = arith.constant dense<0.000000e+00> : vector<9x9xf32>
    %71 = tpu.matmul %70, %1, %cst_46 {dimension_numbers = #tpu.dot_dimension_numbers<[1], [0], [0], [1], [0, 0, 1, 1], [], []>} : vector<9x56xf32>, vector<56x9xf32>, vector<9x9xf32> -> vector<9x9xf32>
    %c2_47 = arith.constant 2 : index
    %c0_48 = arith.constant 0 : index
    %c0_49 = arith.constant 0 : index
    %72 = vector.load %arg6[%c2_47, %c0_48, %c0_49] : memref<4x9x9xf32, #tpu.memory_space<vmem>>, vector<1x9x9xf32>
    %73 = vector.shape_cast %72 : vector<1x9x9xf32> to vector<9x9xf32>
    %74 = vector.shape_cast %71 : vector<9x9xf32> to vector<1x9x9xf32>
    tpu.vector_store %arg6[%c2_47, %c0_48, %c0_49], %74 {strides = array<i32>} : memref<4x9x9xf32, #tpu.memory_space<vmem>>, vector<1x9x9xf32>,
    %c2_50 = arith.constant 2 : index
    %c0_51 = arith.constant 0 : index
    %c0_52 = arith.constant 0 : index
    %75 = vector.load %arg5[%c2_50, %c0_51, %c0_52] : memref<4x16x2xf32, #tpu.memory_space<vmem>>, vector<1x16x2xf32>
    %76 = vector.shape_cast %75 : vector<1x16x2xf32> to vector<16x2xf32>
    %cst_53 = arith.constant dense<0.000000e+00> : vector<56x2xf32>
    %77 = tpu.matmul %2, %76, %cst_53 {dimension_numbers = #tpu.dot_dimension_numbers<[1], [0], [0], [1], [0, 0, 1, 1], [], []>} : vector<56x16xf32>, vector<16x2xf32>, vector<56x2xf32> -> vector<56x2xf32>
    %cst_54 = arith.constant dense<0.000000e+00> : vector<9x2xf32>
    %78 = tpu.matmul %70, %77, %cst_54 {dimension_numbers = #tpu.dot_dimension_numbers<[1], [0], [0], [1], [0, 0, 1, 1], [], []>} : vector<9x56xf32>, vector<56x2xf32>, vector<9x2xf32> -> vector<9x2xf32>
    %cst_55 = arith.constant 0.000000e+00 : f32
    %79 = vector.broadcast %cst_55 : f32 to vector<9x2xf32>
    %80 = arith.subf %79, %78 : vector<9x2xf32>
    %c2_56 = arith.constant 2 : index
    %c0_57 = arith.constant 0 : index
    %c0_58 = arith.constant 0 : index
    %81 = vector.load %arg7[%c2_56, %c0_57, %c0_58] : memref<4x9x2xf32, #tpu.memory_space<vmem>>, vector<1x9x2xf32>
    %82 = vector.shape_cast %81 : vector<1x9x2xf32> to vector<9x2xf32>
    %83 = vector.shape_cast %80 : vector<9x2xf32> to vector<1x9x2xf32>
    tpu.vector_store %arg7[%c2_56, %c0_57, %c0_58], %83 {strides = array<i32>} : memref<4x9x2xf32, #tpu.memory_space<vmem>>, vector<1x9x2xf32>,
    %c3 = arith.constant 3 : index
    %c0_59 = arith.constant 0 : index
    %84 = vector.load %arg1[%c3, %c0_59] : memref<4x56xf32, #tpu.memory_space<vmem>>, vector<1x56xf32>
    %cst_60 = arith.constant 0.00999999977 : f32
    %85 = vector.broadcast %cst_60 : f32 to vector<1x56xf32>
    %86 = arith.mulf %84, %85 : vector<1x56xf32>
    %87 = arith.negf %86 : vector<1x56xf32>
    %88 = math.exp %87 : vector<1x56xf32>
    %cst_61 = arith.constant 1.000000e+00 : f32
    %89 = vector.broadcast %cst_61 : f32 to vector<1x56xf32>
    %90 = arith.addf %89, %88 : vector<1x56xf32>
    %91 = arith.divf %89, %90 : vector<1x56xf32>
    %cst_62 = arith.constant 9.800000e-01 : f32
    %92 = vector.broadcast %cst_62 : f32 to vector<1x56xf32>
    %93 = arith.mulf %91, %92 : vector<1x56xf32>
    %cst_63 = arith.constant 0.00999999977 : f32
    %94 = vector.broadcast %cst_63 : f32 to vector<1x56xf32>
    %95 = arith.addf %93, %94 : vector<1x56xf32>
    %96 = vector.broadcast %95 : vector<1x56xf32> to vector<9x56xf32>
    %97 = arith.mulf %0, %96 : vector<9x56xf32>
    %cst_64 = arith.constant dense<0.000000e+00> : vector<9x9xf32>
    %98 = tpu.matmul %97, %1, %cst_64 {dimension_numbers = #tpu.dot_dimension_numbers<[1], [0], [0], [1], [0, 0, 1, 1], [], []>} : vector<9x56xf32>, vector<56x9xf32>, vector<9x9xf32> -> vector<9x9xf32>
    %c3_65 = arith.constant 3 : index
    %c0_66 = arith.constant 0 : index
    %c0_67 = arith.constant 0 : index
    %99 = vector.load %arg6[%c3_65, %c0_66, %c0_67] : memref<4x9x9xf32, #tpu.memory_space<vmem>>, vector<1x9x9xf32>
    %100 = vector.shape_cast %99 : vector<1x9x9xf32> to vector<9x9xf32>
    %101 = vector.shape_cast %98 : vector<9x9xf32> to vector<1x9x9xf32>
    tpu.vector_store %arg6[%c3_65, %c0_66, %c0_67], %101 {strides = array<i32>} : memref<4x9x9xf32, #tpu.memory_space<vmem>>, vector<1x9x9xf32>,
    %c3_68 = arith.constant 3 : index
    %c0_69 = arith.constant 0 : index
    %c0_70 = arith.constant 0 : index
    %102 = vector.load %arg5[%c3_68, %c0_69, %c0_70] : memref<4x16x2xf32, #tpu.memory_space<vmem>>, vector<1x16x2xf32>
    %103 = vector.shape_cast %102 : vector<1x16x2xf32> to vector<16x2xf32>
    %cst_71 = arith.constant dense<0.000000e+00> : vector<56x2xf32>
    %104 = tpu.matmul %2, %103, %cst_71 {dimension_numbers = #tpu.dot_dimension_numbers<[1], [0], [0], [1], [0, 0, 1, 1], [], []>} : vector<56x16xf32>, vector<16x2xf32>, vector<56x2xf32> -> vector<56x2xf32>
    %cst_72 = arith.constant dense<0.000000e+00> : vector<9x2xf32>
    %105 = tpu.matmul %97, %104, %cst_72 {dimension_numbers = #tpu.dot_dimension_numbers<[1], [0], [0], [1], [0, 0, 1, 1], [], []>} : vector<9x56xf32>, vector<56x2xf32>, vector<9x2xf32> -> vector<9x2xf32>
    %cst_73 = arith.constant 0.000000e+00 : f32
    %106 = vector.broadcast %cst_73 : f32 to vector<9x2xf32>
    %107 = arith.subf %106, %105 : vector<9x2xf32>
    %c3_74 = arith.constant 3 : index
    %c0_75 = arith.constant 0 : index
    %c0_76 = arith.constant 0 : index
    %108 = vector.load %arg7[%c3_74, %c0_75, %c0_76] : memref<4x9x2xf32, #tpu.memory_space<vmem>>, vector<1x9x2xf32>
    %109 = vector.shape_cast %108 : vector<1x9x2xf32> to vector<9x2xf32>
    %110 = vector.shape_cast %107 : vector<9x2xf32> to vector<1x9x2xf32>
    tpu.vector_store %arg7[%c3_74, %c0_75, %c0_76], %110 {strides = array<i32>} : memref<4x9x2xf32, #tpu.memory_space<vmem>>, vector<1x9x2xf32>,
    return
  }
  func.func @transform_0(%arg0: i32) -> (i32, i32) {
    %c0_i32 = arith.constant 0 : i32
    %c0_i32_0 = arith.constant 0 : i32
    %c0_i32_1 = arith.constant 0 : i32
    return %c0_i32, %c0_i32_0 : i32, i32
  }
  func.func @transform_1(%arg0: i32) -> (i32, i32) {
    %c0_i32 = arith.constant 0 : i32
    %c0_i32_0 = arith.constant 0 : i32
    %c0_i32_1 = arith.constant 0 : i32
    return %c0_i32, %c0_i32_0 : i32, i32
  }
  func.func @transform_2(%arg0: i32) -> (i32, i32) {
    %c0_i32 = arith.constant 0 : i32
    %c0_i32_0 = arith.constant 0 : i32
    %c0_i32_1 = arith.constant 0 : i32
    return %c0_i32, %c0_i32_0 : i32, i32
  }
  func.func @transform_3(%arg0: i32) -> (i32, i32) {
    %c0_i32 = arith.constant 0 : i32
    %c0_i32_0 = arith.constant 0 : i32
    %c0_i32_1 = arith.constant 0 : i32
    return %c0_i32, %c0_i32_0 : i32, i32
  }
  func.func @transform_4(%arg0: i32) -> (i32, i32, i32) {
    %c0_i32 = arith.constant 0 : i32
    %c0_i32_0 = arith.constant 0 : i32
    %c0_i32_1 = arith.constant 0 : i32
    %c0_i32_2 = arith.constant 0 : i32
    return %c0_i32, %c0_i32_0, %c0_i32_1 : i32, i32, i32
  }
  func.func @transform_5(%arg0: i32) -> (i32, i32, i32) {
    %c0_i32 = arith.constant 0 : i32
    %c0_i32_0 = arith.constant 0 : i32
    %c0_i32_1 = arith.constant 0 : i32
    %c0_i32_2 = arith.constant 0 : i32
    return %c0_i32, %c0_i32_0, %c0_i32_1 : i32, i32, i32
  }
  func.func @transform_6(%arg0: i32) -> (i32, i32, i32) {
    %c0_i32 = arith.constant 0 : i32
    %c0_i32_0 = arith.constant 0 : i32
    %c0_i32_1 = arith.constant 0 : i32
    %c0_i32_2 = arith.constant 0 : i32
    return %c0_i32, %c0_i32_0, %c0_i32_1 : i32, i32, i32
  }
}

module attributes {stable_mosaic.version = 11 : i64} {
  func.func @_point_kernel(%arg0: i32, %arg1: i32, %arg2: memref<1x2x1024xf32, #tpu.memory_space<vmem>>, %arg3: memref<1x1x1024xi32, #tpu.memory_space<vmem>>, %arg4: memref<1x18x32xf32, #tpu.memory_space<vmem>>, %arg5: memref<1x1x1024xf32, #tpu.memory_space<vmem>>, %arg6: memref<1x2x1024xf32, #tpu.memory_space<vmem>>, %arg7: memref<1x4x1024xf32, #tpu.memory_space<vmem>>) attributes {dimension_semantics = [#tpu.dimension_semantics<parallel>, #tpu.dimension_semantics<parallel>], iteration_bounds = array<i64: 2, 1>, scalar_prefetch = 0 : i64, scratch_operands = 0 : i64, tpu.core_type = #tpu.core_type<tc>, window_params = [{transform_indices = @transform_0, window_bounds = array<i64: 1, 2, 1024>}, {transform_indices = @transform_1, window_bounds = array<i64: 1, 1, 1024>}, {transform_indices = @transform_2, window_bounds = array<i64: 1, 18, 32>}, {transform_indices = @transform_3, window_bounds = array<i64: 1, 1, 1024>}, {transform_indices = @transform_4, window_bounds = array<i64: 1, 2, 1024>}, {transform_indices = @transform_5, window_bounds = array<i64: 1, 4, 1024>}]} {
    %c0 = arith.constant 0 : index
    %c0_0 = arith.constant 0 : index
    %c0_1 = arith.constant 0 : index
    %0 = vector.load %arg3[%c0, %c0_0, %c0_1] : memref<1x1x1024xi32, #tpu.memory_space<vmem>>, vector<1x1x1024xi32>
    %1 = vector.shape_cast %0 : vector<1x1x1024xi32> to vector<1x1024xi32>
    %2 = tpu.iota {dimensions = array<i32: 0>} : vector<32x1024xi32>
    %3 = vector.broadcast %1 : vector<1x1024xi32> to vector<32x1024xi32>
    %4 = arith.cmpi eq, %3, %2 : vector<32x1024xi32>
    %5 = arith.extui %4 : vector<32x1024xi1> to vector<32x1024xi32>
    %6 = arith.sitofp %5 : vector<32x1024xi32> to vector<32x1024xf32>
    %c0_2 = arith.constant 0 : index
    %c0_3 = arith.constant 0 : index
    %c0_4 = arith.constant 0 : index
    %7 = vector.load %arg4[%c0_2, %c0_3, %c0_4] : memref<1x18x32xf32, #tpu.memory_space<vmem>>, vector<1x18x32xf32>
    %8 = vector.shape_cast %7 : vector<1x18x32xf32> to vector<18x32xf32>
    %cst = arith.constant dense<0.000000e+00> : vector<18x1024xf32>
    %9 = tpu.matmul %8, %6, %cst {dimension_numbers = #tpu.dot_dimension_numbers<[1], [0], [0], [1], [0, 0, 1, 1], [], []>} : vector<18x32xf32>, vector<32x1024xf32>, vector<18x1024xf32> -> vector<18x1024xf32>
    %c0_5 = arith.constant 0 : index
    %c0_6 = arith.constant 0 : index
    %c0_7 = arith.constant 0 : index
    %10 = vector.load %arg2[%c0_5, %c0_6, %c0_7] : memref<1x2x1024xf32, #tpu.memory_space<vmem>>, vector<1x2x1024xf32>
    %11 = vector.shape_cast %10 : vector<1x2x1024xf32> to vector<2x1024xf32>
    %c0_8 = arith.constant 0 : index
    %c0_9 = arith.constant 0 : index
    %c0_10 = arith.constant 0 : index
    %12 = vector.load %arg5[%c0_8, %c0_9, %c0_10] : memref<1x1x1024xf32, #tpu.memory_space<vmem>>, vector<1x1x1024xf32>
    %13 = vector.shape_cast %12 : vector<1x1x1024xf32> to vector<1x1024xf32>
    %14 = vector.extract_strided_slice %11 {offsets = [0, 0], sizes = [1, 1024], strides = [1, 1]} : vector<2x1024xf32> to vector<1x1024xf32>
    %15 = vector.extract_strided_slice %11 {offsets = [1, 0], sizes = [1, 1024], strides = [1, 1]} : vector<2x1024xf32> to vector<1x1024xf32>
    %16 = vector.extract_strided_slice %9 {offsets = [0, 0], sizes = [1, 1024], strides = [1, 1]} : vector<18x1024xf32> to vector<1x1024xf32>
    %17 = vector.extract_strided_slice %9 {offsets = [1, 0], sizes = [1, 1024], strides = [1, 1]} : vector<18x1024xf32> to vector<1x1024xf32>
    %18 = vector.extract_strided_slice %9 {offsets = [2, 0], sizes = [1, 1024], strides = [1, 1]} : vector<18x1024xf32> to vector<1x1024xf32>
    %19 = vector.extract_strided_slice %9 {offsets = [3, 0], sizes = [1, 1024], strides = [1, 1]} : vector<18x1024xf32> to vector<1x1024xf32>
    %20 = vector.extract_strided_slice %9 {offsets = [4, 0], sizes = [1, 1024], strides = [1, 1]} : vector<18x1024xf32> to vector<1x1024xf32>
    %21 = vector.extract_strided_slice %9 {offsets = [5, 0], sizes = [1, 1024], strides = [1, 1]} : vector<18x1024xf32> to vector<1x1024xf32>
    %22 = arith.subf %14, %18 : vector<1x1024xf32>
    %23 = arith.subf %15, %21 : vector<1x1024xf32>
    %24 = arith.mulf %22, %23 : vector<1x1024xf32>
    %25 = arith.subf %15, %19 : vector<1x1024xf32>
    %26 = arith.subf %14, %20 : vector<1x1024xf32>
    %27 = arith.mulf %25, %26 : vector<1x1024xf32>
    %28 = arith.subf %24, %27 : vector<1x1024xf32>
    %29 = math.absf %28 : vector<1x1024xf32>
    %cst_11 = arith.constant 5.000000e-01 : f32
    %30 = vector.broadcast %cst_11 : f32 to vector<1x1024xf32>
    %31 = arith.mulf %29, %30 : vector<1x1024xf32>
    %32 = arith.subf %14, %16 : vector<1x1024xf32>
    %33 = arith.subf %15, %21 : vector<1x1024xf32>
    %34 = arith.mulf %32, %33 : vector<1x1024xf32>
    %35 = arith.subf %15, %17 : vector<1x1024xf32>
    %36 = arith.subf %14, %20 : vector<1x1024xf32>
    %37 = arith.mulf %35, %36 : vector<1x1024xf32>
    %38 = arith.subf %34, %37 : vector<1x1024xf32>
    %39 = math.absf %38 : vector<1x1024xf32>
    %cst_12 = arith.constant 5.000000e-01 : f32
    %40 = vector.broadcast %cst_12 : f32 to vector<1x1024xf32>
    %41 = arith.mulf %39, %40 : vector<1x1024xf32>
    %42 = arith.subf %14, %16 : vector<1x1024xf32>
    %43 = arith.subf %15, %19 : vector<1x1024xf32>
    %44 = arith.mulf %42, %43 : vector<1x1024xf32>
    %45 = arith.subf %15, %17 : vector<1x1024xf32>
    %46 = arith.subf %14, %18 : vector<1x1024xf32>
    %47 = arith.mulf %45, %46 : vector<1x1024xf32>
    %48 = arith.subf %44, %47 : vector<1x1024xf32>
    %49 = math.absf %48 : vector<1x1024xf32>
    %cst_13 = arith.constant 5.000000e-01 : f32
    %50 = vector.broadcast %cst_13 : f32 to vector<1x1024xf32>
    %51 = arith.mulf %49, %50 : vector<1x1024xf32>
    %52 = arith.addf %31, %41 : vector<1x1024xf32>
    %53 = arith.addf %52, %51 : vector<1x1024xf32>
    %cst_14 = arith.constant 1.000000e+00 : f32
    %54 = vector.broadcast %cst_14 : f32 to vector<1x1024xf32>
    %55 = arith.divf %54, %53 : vector<1x1024xf32>
    %56 = vector.extract_strided_slice %9 {offsets = [6, 0], sizes = [1, 1024], strides = [1, 1]} : vector<18x1024xf32> to vector<1x1024xf32>
    %57 = vector.extract_strided_slice %9 {offsets = [7, 0], sizes = [1, 1024], strides = [1, 1]} : vector<18x1024xf32> to vector<1x1024xf32>
    %58 = vector.extract_strided_slice %9 {offsets = [8, 0], sizes = [1, 1024], strides = [1, 1]} : vector<18x1024xf32> to vector<1x1024xf32>
    %59 = vector.extract_strided_slice %9 {offsets = [9, 0], sizes = [1, 1024], strides = [1, 1]} : vector<18x1024xf32> to vector<1x1024xf32>
    %60 = vector.extract_strided_slice %9 {offsets = [10, 0], sizes = [1, 1024], strides = [1, 1]} : vector<18x1024xf32> to vector<1x1024xf32>
    %61 = vector.extract_strided_slice %9 {offsets = [11, 0], sizes = [1, 1024], strides = [1, 1]} : vector<18x1024xf32> to vector<1x1024xf32>
    %62 = arith.mulf %56, %31 : vector<1x1024xf32>
    %63 = arith.mulf %58, %41 : vector<1x1024xf32>
    %64 = arith.addf %62, %63 : vector<1x1024xf32>
    %65 = arith.mulf %60, %51 : vector<1x1024xf32>
    %66 = arith.addf %64, %65 : vector<1x1024xf32>
    %67 = arith.mulf %66, %55 : vector<1x1024xf32>
    %68 = arith.mulf %57, %31 : vector<1x1024xf32>
    %69 = arith.mulf %59, %41 : vector<1x1024xf32>
    %70 = arith.addf %68, %69 : vector<1x1024xf32>
    %71 = arith.mulf %61, %51 : vector<1x1024xf32>
    %72 = arith.addf %70, %71 : vector<1x1024xf32>
    %73 = arith.mulf %72, %55 : vector<1x1024xf32>
    %74 = vector.extract_strided_slice %9 {offsets = [12, 0], sizes = [1, 1024], strides = [1, 1]} : vector<18x1024xf32> to vector<1x1024xf32>
    %75 = vector.extract_strided_slice %9 {offsets = [13, 0], sizes = [1, 1024], strides = [1, 1]} : vector<18x1024xf32> to vector<1x1024xf32>
    %76 = vector.extract_strided_slice %9 {offsets = [14, 0], sizes = [1, 1024], strides = [1, 1]} : vector<18x1024xf32> to vector<1x1024xf32>
    %77 = vector.extract_strided_slice %9 {offsets = [15, 0], sizes = [1, 1024], strides = [1, 1]} : vector<18x1024xf32> to vector<1x1024xf32>
    %78 = vector.extract_strided_slice %9 {offsets = [16, 0], sizes = [1, 1024], strides = [1, 1]} : vector<18x1024xf32> to vector<1x1024xf32>
    %79 = vector.extract_strided_slice %9 {offsets = [17, 0], sizes = [1, 1024], strides = [1, 1]} : vector<18x1024xf32> to vector<1x1024xf32>
    %80 = arith.mulf %74, %31 : vector<1x1024xf32>
    %81 = arith.mulf %76, %41 : vector<1x1024xf32>
    %82 = arith.addf %80, %81 : vector<1x1024xf32>
    %83 = arith.mulf %78, %51 : vector<1x1024xf32>
    %84 = arith.addf %82, %83 : vector<1x1024xf32>
    %85 = arith.mulf %84, %55 : vector<1x1024xf32>
    %86 = arith.mulf %75, %31 : vector<1x1024xf32>
    %87 = arith.mulf %77, %41 : vector<1x1024xf32>
    %88 = arith.addf %86, %87 : vector<1x1024xf32>
    %89 = arith.mulf %79, %51 : vector<1x1024xf32>
    %90 = arith.addf %88, %89 : vector<1x1024xf32>
    %91 = arith.mulf %90, %55 : vector<1x1024xf32>
    %cst_15 = arith.constant 1.000000e+00 : f32
    %92 = vector.broadcast %cst_15 : f32 to vector<1x1024xf32>
    %93 = arith.subf %92, %13 : vector<1x1024xf32>
    %cst_16 = arith.constant 5.000000e-01 : f32
    %94 = vector.broadcast %cst_16 : f32 to vector<1x1024xf32>
    %95 = arith.mulf %93, %94 : vector<1x1024xf32>
    %cst_17 = arith.constant 1.000000e+00 : f32
    %96 = vector.broadcast %cst_17 : f32 to vector<1x1024xf32>
    %97 = arith.addf %13, %96 : vector<1x1024xf32>
    %cst_18 = arith.constant 5.000000e-01 : f32
    %98 = vector.broadcast %cst_18 : f32 to vector<1x1024xf32>
    %99 = arith.mulf %97, %98 : vector<1x1024xf32>
    %100 = arith.mulf %67, %95 : vector<1x1024xf32>
    %101 = arith.mulf %85, %99 : vector<1x1024xf32>
    %102 = arith.addf %100, %101 : vector<1x1024xf32>
    %103 = arith.mulf %73, %95 : vector<1x1024xf32>
    %104 = arith.mulf %91, %99 : vector<1x1024xf32>
    %105 = arith.addf %103, %104 : vector<1x1024xf32>
    %106 = arith.subf %18, %16 : vector<1x1024xf32>
    %107 = arith.subf %20, %16 : vector<1x1024xf32>
    %108 = arith.subf %19, %17 : vector<1x1024xf32>
    %109 = arith.subf %21, %17 : vector<1x1024xf32>
    %110 = arith.mulf %106, %109 : vector<1x1024xf32>
    %111 = arith.mulf %107, %108 : vector<1x1024xf32>
    %112 = arith.subf %110, %111 : vector<1x1024xf32>
    %cst_19 = arith.constant 1.000000e+00 : f32
    %113 = vector.broadcast %cst_19 : f32 to vector<1x1024xf32>
    %114 = arith.divf %113, %112 : vector<1x1024xf32>
    %115 = vector.extract_strided_slice %9 {offsets = [6, 0], sizes = [1, 1024], strides = [1, 1]} : vector<18x1024xf32> to vector<1x1024xf32>
    %116 = vector.extract_strided_slice %9 {offsets = [7, 0], sizes = [1, 1024], strides = [1, 1]} : vector<18x1024xf32> to vector<1x1024xf32>
    %117 = vector.extract_strided_slice %9 {offsets = [8, 0], sizes = [1, 1024], strides = [1, 1]} : vector<18x1024xf32> to vector<1x1024xf32>
    %118 = vector.extract_strided_slice %9 {offsets = [9, 0], sizes = [1, 1024], strides = [1, 1]} : vector<18x1024xf32> to vector<1x1024xf32>
    %119 = vector.extract_strided_slice %9 {offsets = [10, 0], sizes = [1, 1024], strides = [1, 1]} : vector<18x1024xf32> to vector<1x1024xf32>
    %120 = vector.extract_strided_slice %9 {offsets = [11, 0], sizes = [1, 1024], strides = [1, 1]} : vector<18x1024xf32> to vector<1x1024xf32>
    %121 = arith.subf %117, %115 : vector<1x1024xf32>
    %122 = arith.subf %119, %115 : vector<1x1024xf32>
    %123 = arith.subf %118, %116 : vector<1x1024xf32>
    %124 = arith.subf %120, %116 : vector<1x1024xf32>
    %125 = arith.mulf %121, %109 : vector<1x1024xf32>
    %126 = arith.mulf %122, %108 : vector<1x1024xf32>
    %127 = arith.subf %125, %126 : vector<1x1024xf32>
    %128 = arith.mulf %127, %114 : vector<1x1024xf32>
    %129 = arith.mulf %122, %106 : vector<1x1024xf32>
    %130 = arith.mulf %121, %107 : vector<1x1024xf32>
    %131 = arith.subf %129, %130 : vector<1x1024xf32>
    %132 = arith.mulf %131, %114 : vector<1x1024xf32>
    %133 = arith.mulf %123, %109 : vector<1x1024xf32>
    %134 = arith.mulf %124, %108 : vector<1x1024xf32>
    %135 = arith.subf %133, %134 : vector<1x1024xf32>
    %136 = arith.mulf %135, %114 : vector<1x1024xf32>
    %137 = arith.mulf %124, %106 : vector<1x1024xf32>
    %138 = arith.mulf %123, %107 : vector<1x1024xf32>
    %139 = arith.subf %137, %138 : vector<1x1024xf32>
    %140 = arith.mulf %139, %114 : vector<1x1024xf32>
    %141 = vector.extract_strided_slice %9 {offsets = [12, 0], sizes = [1, 1024], strides = [1, 1]} : vector<18x1024xf32> to vector<1x1024xf32>
    %142 = vector.extract_strided_slice %9 {offsets = [13, 0], sizes = [1, 1024], strides = [1, 1]} : vector<18x1024xf32> to vector<1x1024xf32>
    %143 = vector.extract_strided_slice %9 {offsets = [14, 0], sizes = [1, 1024], strides = [1, 1]} : vector<18x1024xf32> to vector<1x1024xf32>
    %144 = vector.extract_strided_slice %9 {offsets = [15, 0], sizes = [1, 1024], strides = [1, 1]} : vector<18x1024xf32> to vector<1x1024xf32>
    %145 = vector.extract_strided_slice %9 {offsets = [16, 0], sizes = [1, 1024], strides = [1, 1]} : vector<18x1024xf32> to vector<1x1024xf32>
    %146 = vector.extract_strided_slice %9 {offsets = [17, 0], sizes = [1, 1024], strides = [1, 1]} : vector<18x1024xf32> to vector<1x1024xf32>
    %147 = arith.subf %143, %141 : vector<1x1024xf32>
    %148 = arith.subf %145, %141 : vector<1x1024xf32>
    %149 = arith.subf %144, %142 : vector<1x1024xf32>
    %150 = arith.subf %146, %142 : vector<1x1024xf32>
    %151 = arith.mulf %147, %109 : vector<1x1024xf32>
    %152 = arith.mulf %148, %108 : vector<1x1024xf32>
    %153 = arith.subf %151, %152 : vector<1x1024xf32>
    %154 = arith.mulf %153, %114 : vector<1x1024xf32>
    %155 = arith.mulf %148, %106 : vector<1x1024xf32>
    %156 = arith.mulf %147, %107 : vector<1x1024xf32>
    %157 = arith.subf %155, %156 : vector<1x1024xf32>
    %158 = arith.mulf %157, %114 : vector<1x1024xf32>
    %159 = arith.mulf %149, %109 : vector<1x1024xf32>
    %160 = arith.mulf %150, %108 : vector<1x1024xf32>
    %161 = arith.subf %159, %160 : vector<1x1024xf32>
    %162 = arith.mulf %161, %114 : vector<1x1024xf32>
    %163 = arith.mulf %150, %106 : vector<1x1024xf32>
    %164 = arith.mulf %149, %107 : vector<1x1024xf32>
    %165 = arith.subf %163, %164 : vector<1x1024xf32>
    %166 = arith.mulf %165, %114 : vector<1x1024xf32>
    %167 = arith.mulf %128, %95 : vector<1x1024xf32>
    %168 = arith.mulf %154, %99 : vector<1x1024xf32>
    %169 = arith.addf %167, %168 : vector<1x1024xf32>
    %170 = arith.mulf %132, %95 : vector<1x1024xf32>
    %171 = arith.mulf %158, %99 : vector<1x1024xf32>
    %172 = arith.addf %170, %171 : vector<1x1024xf32>
    %173 = arith.mulf %136, %95 : vector<1x1024xf32>
    %174 = arith.mulf %162, %99 : vector<1x1024xf32>
    %175 = arith.addf %173, %174 : vector<1x1024xf32>
    %176 = arith.mulf %140, %95 : vector<1x1024xf32>
    %177 = arith.mulf %166, %99 : vector<1x1024xf32>
    %178 = arith.addf %176, %177 : vector<1x1024xf32>
    %179 = tpu.concatenate %102, %105 in 0 : vector<1x1024xf32>, vector<1x1024xf32> -> vector<2x1024xf32>
    %180 = vector.shape_cast %179 : vector<2x1024xf32> to vector<1x2x1024xf32>
    %c0_20 = arith.constant 0 : index
    %c0_21 = arith.constant 0 : index
    %c0_22 = arith.constant 0 : index
    %181 = vector.load %arg6[%c0_20, %c0_21, %c0_22] : memref<1x2x1024xf32, #tpu.memory_space<vmem>>, vector<1x2x1024xf32>
    tpu.vector_store %arg6[%c0_20, %c0_21, %c0_22], %180 {strides = array<i32>} : memref<1x2x1024xf32, #tpu.memory_space<vmem>>, vector<1x2x1024xf32>,
    %182 = tpu.concatenate %169, %172, %175, %178 in 0 : vector<1x1024xf32>, vector<1x1024xf32>, vector<1x1024xf32>, vector<1x1024xf32> -> vector<4x1024xf32>
    %183 = vector.shape_cast %182 : vector<4x1024xf32> to vector<1x4x1024xf32>
    %c0_23 = arith.constant 0 : index
    %c0_24 = arith.constant 0 : index
    %c0_25 = arith.constant 0 : index
    %184 = vector.load %arg7[%c0_23, %c0_24, %c0_25] : memref<1x4x1024xf32, #tpu.memory_space<vmem>>, vector<1x4x1024xf32>
    tpu.vector_store %arg7[%c0_23, %c0_24, %c0_25], %183 {strides = array<i32>} : memref<1x4x1024xf32, #tpu.memory_space<vmem>>, vector<1x4x1024xf32>,
    return
  }
  func.func @transform_0(%arg0: i32, %arg1: i32) -> (i32, i32, i32) {
    %c0_i32 = arith.constant 0 : i32
    %c0_i32_0 = arith.constant 0 : i32
    return %arg0, %c0_i32, %arg1 : i32, i32, i32
  }
  func.func @transform_1(%arg0: i32, %arg1: i32) -> (i32, i32, i32) {
    %c0_i32 = arith.constant 0 : i32
    %c0_i32_0 = arith.constant 0 : i32
    return %arg0, %c0_i32, %arg1 : i32, i32, i32
  }
  func.func @transform_2(%arg0: i32, %arg1: i32) -> (i32, i32, i32) {
    %c0_i32 = arith.constant 0 : i32
    %c0_i32_0 = arith.constant 0 : i32
    %c0_i32_1 = arith.constant 0 : i32
    return %arg0, %c0_i32, %c0_i32_0 : i32, i32, i32
  }
  func.func @transform_3(%arg0: i32, %arg1: i32) -> (i32, i32, i32) {
    %c0_i32 = arith.constant 0 : i32
    %c0_i32_0 = arith.constant 0 : i32
    return %arg0, %c0_i32, %arg1 : i32, i32, i32
  }
  func.func @transform_4(%arg0: i32, %arg1: i32) -> (i32, i32, i32) {
    %c0_i32 = arith.constant 0 : i32
    %c0_i32_0 = arith.constant 0 : i32
    return %arg0, %c0_i32, %arg1 : i32, i32, i32
  }
  func.func @transform_5(%arg0: i32, %arg1: i32) -> (i32, i32, i32) {
    %c0_i32 = arith.constant 0 : i32
    %c0_i32_0 = arith.constant 0 : i32
    return %arg0, %c0_i32, %arg1 : i32, i32, i32
  }
}

</mosaic_0001>

<bundles_post_ra>
// kernel: custom-call.8
= control target key start
LH: loop header
LB: loop body
LE: loop exit
PB: predicated region body
PF: predicated region fallthrough
CT: control target
= control target key end

     0   :  { %5 = vsyncpa [#allocation4], 0  ;;  %s961_s0 = inlined_call_operand.vmem [shape: f32[4,9,9], index: 0, kind: input, shape index: {}]   ;;  %s962_s1 = inlined_call_operand.vmem [shape: f32[4,9,9], index: 1, kind: output, shape index: {0}]   ;;  %s963_s2 = inlined_call_operand.hbm [shape: s32[4,9], index: 2, kind: output, shape index: {1}]   ;;  %s964_s3 = inlined_call_operand.vmem [shape: s32[4,9], index: 3, kind: output, shape index: {2}]  }
   0x1   :  { %7 = vsyncpa [#allocation4 + $0x1], 0  ;;  %s755_s12 = smov 0   ;;  %s757_s13 = smov 0  }
   0x2   :  { %s759_s14 = smov 0   ;;  %s761_s15 = smov 0  }
   0x3 LB: > { %s776_s16 = sadd.s32 4294967295, %s723_s15   ;;  %s565_s17 = sadd.s32 4294967294, %s723_s15   ;;  %s723_s15 = sphi %s761_s15, %s972_s15   ;;  %s719_s14 = sphi %s759_s14, %s971_s14   ;;  %s715_s13 = sphi %s757_s13, %s970_s13   ;;  %s711_s12 = sphi %s755_s12, %s969_s12  }
   0x4   : > { %s780_s18 = sadd.s32 1, %s723_s15   ;;  %s17_s19 = sshrl.u32 %s723_s15, 3 }
   0x5   : > { %s18_s20 = sshrl.u32 %s780_s18, 3  ;;  %s22_s21 = sadd.s32 1, %s719_s14 }
   0x6   : > { %s19_s22 = ssub.s32 %s17_s19, %s18_s20  ;;  %p32_p0 = scmp.ne.s32.totalorder %s719_s14, %s715_s13 }
   0x7   : > { %p20_p1 = scmp.eq.s32.totalorder %s19_s22, 0  ;;  %p33_p2 = scmp.eq.s32.totalorder %s776_s16, 3 }
   0x8   : > { %p38_p3 = scmp.ne.s32.totalorder %s715_s13, %s711_s12  ;;  %p39_p4 = scmp.eq.s32.totalorder %s565_s17, 3 }
   0x9   : > { %s791_s23 = scalar_select %p20_p1, %s719_s14, %s22_s21  }
   0xa   : > { %p793_p5 = por %p33_p2, %p32_p0  ;;  %p797_p6 = por %p39_p4, %p38_p3 }
   0xb   : > { %p567_p7 = scmp.ge.s32.totalorder %s723_s15, 4 }
   0xc   : > { %s85_s26 = sand.u32 (!%p567_p7), 1, %s723_s15   ;;  %s569_s27 = sshll.u32 (!%p567_p7), %s723_s15, 4 }
   0xd   : > { %83 = sbr.rel (%p567_p7) target bundleno = 20 (0x14), region = 16  ;;  %s568_s28 = sshll.u32 (!%p567_p7), %s85_s26, 4 }
   0xe   : > { %s89_s4 = scalar_lea.vmem (!%p567_p7), %s961_s0, %s569_s27  ;;  %s87_s5 = scalar_lea.vmem (!%p567_p7), [#allocation0], %s568_s28 }
   0xf   : > { %v102_v0 = vld [vmem:[%s89_s4] sm:$0xff] (!%p567_p7)  ;;  %v104_v1 = vld [vmem:[%s89_s4 + $0x8] sm:$0xff] (!%p567_p7) }
  0x10   : > { %103 = vst [vmem:[%s87_s5] sm:$0xff] (!%p567_p7), %v102_v0  ;;  %105 = vst [vmem:[%s87_s5 + $0x8] sm:$0xff] (!%p567_p7), %v104_v1 }
  0x14 PF: > { %p570_p8 = scmp.ge.s32.totalorder %s723_s15, 1  ;;  %p110_p9 = scmp.lt.s32.totalorder %s723_s15, 5 }
  0x16   : > { %p111_p10 = pnand %p570_p8, %p110_p9 }
  0x18   : > { %114 = sbr.rel (%p111_p10) target bundleno = 450 (0x1c2), region = 39 }
  0x1f   : > { %s117_s6 = sand.u32 1, %s776_s16   ;;  %s132_s7 = sand.u32 1, %s715_s13   ;;  %v154_v2 = vlaneseq  ;;  %v733_v6 = vmov 0  }
  0x20   : > { %s571_s8 = sshll.u32 %s117_s6, 4  ;;  %s813_s9 = sshll.u32 %s132_s7, 2 }
  0x21   : > { %v816_v3 = vshrl.u32 %v154_v2, 7  ;;  %s119_s10 = scalar_lea.vmem [#allocation0], %s571_s8  ;;  %s818_s11 = scalar_lea.vmem [#allocation1], %s571_s8 }
  0x22   : > { %v143_v4 = vld [vmem:[%s119_s10] sm:$0xff]  ;;  %v575_v5 = vld [vmem:[%s119_s10 + $0x8] sm:$0xff]  ;;  %s149_s17 = sand.u32 7, %s776_s16   ;;  %s134_s20 = scalar_lea.vmem [#allocation3], %s813_s9 }
  0x23   : > { %144 = vst [vmem:[%s818_s11] sm:$0xff] %v143_v4  ;;  %576 = vst [vmem:[%s818_s11 + $0x8] sm:$0xff] %v575_v5  ;;  %s823_s19 = scalar_lea.vmem [#allocation2], %s149_s17  ;;  %s140_s21 = scalar_lea.vmem [#allocation6], %s813_s9 }
  0x24   : > { %153 = vst [vmem:[%s823_s19] sm:$0x1] %v733_v6  ;;  %s828_s22 = scalar_lea.vmem [#allocation5], %s149_s17  ;;  %s725_s26 = smov 0  }
  0x25 LB: >> { %s577_s27 = sshll.u32 %s727_s26, 3  ;;  %s162_s26 = sadd.s32 1, %s727_s26   ;;  %s727_s26 = sphi %s725_s26, %s162_s26  }
  0x26   : >> { %v166_v7 = vstv %s577_s27  ;;  %s164_s28 = scalar_lea.vmem [#allocation7], %s577_s27  ;;  %p159_p11 = scmp.ge.s32.totalorder %s162_s26, 2  }
  0x27   : >> { %v167_v8 = vadd.s32 %v166_v7, %v816_v3  ;;  %s831_s29 = smov (%p159_p11), 0  }
  0x28   : > { %161 = sbr.rel (!%p159_p11) target bundleno = 37 (0x25), region = 191 }
  0x29   : >> { %168 = vst [vmem:[%s164_s28] sm:$0xff] %v167_v8 }
  0x2f LB: >> { %v179_v9 = vld [vmem:[%s818_s11] sm:$0xff]  ;;  %v580_v10 = vld [vmem:[%s818_s11 + $0x8] sm:$0xff]  ;;  %v839_v11 = vadd.s32 8, %v816_v3  ;;  %v842_v13 = vstv %s731_s29  ;;  %s237_s30 = ssub.s32 128, %s731_s29  ;;  %v243_v46 = vand.u32 127, %v154_v2  ;;  %s249_s4 = scalar_lea.vmem %s818_s11, %s731_s29 [#allocation1]  ;;  %s731_s29 = sphi %s831_s29, %s174_s29  }
  0x30   : >> { %v180_v12 = vand.u32 2147483647, %v179_v9  ;;  %v192_v14 = vand.u32 2147483647, %v580_v10  ;;  %vm183_vm1 = vcmp.ge.s32.totalorder %v816_v3, %v842_v13  ;;  %v246_v49 = vld [vmem:[%s823_s19] ss:$0 sm:$0xff] }
  0x31   : >> { %vm196_vm0 = vcmp.lt.s32.totalorder %v839_v11, 9  ;;  %vm195_vm3 = vcmp.ge.s32.totalorder %v839_v11, %v842_v13  ;;  %vm267_vm15 = vcmp.gt.s32.totalorder %v243_v46, %v842_v13  ;;  %v251_v50 = vld [vmem:[%s249_s4] ss:$0 sm:$0xff]  ;;  %s255_s6 = scalar_lea.vmem [#allocation7], %s731_s29  ;;  %s174_s29 = sadd.s32 1, %s731_s29  }
  0x32   : >> { %vm579_vm2 = vcmp.gt.f32.partialorder %v180_v12, -inf  ;;  %vm197_vm5 = vmand %vm195_vm3, %vm196_vm0  ;;  %vm290_vm0 = vcmp.gt.s32.totalorder %v839_v11, %v842_v13  ;;  %v257_v51 = vld [vmem:[%s255_s6] ss:$0 sm:$0xff]  ;;  %p171_p12 = scmp.ge.s32.totalorder %s174_s29, 9  }
  0x33   : >> { %vm187_vm4 = vmand %vm183_vm1, %vm579_vm2  ;;  %vm244_vm1 = vcmp.eq.s32.totalorder %v243_v46, %v842_v13  ;;  %s400_s17 = sshrl.u32 (%p171_p12), %s776_s16, 3  ;;  %s586_s26 = sshll.u32 (%p171_p12), %s776_s16, 4 }
  0x34   : >> { %v188_v15 = vsel %vm187_vm4, %v816_v3, %v842_v13  ;;  %v189_v16 = vsel %vm187_vm4, %v180_v12, -inf  ;;  %vm863_vm2 = vmand %vm290_vm0, %vm244_vm1  ;;  %vm275_vm4 = vcmp.gt.s32.totalorder %v816_v3, %v842_v13  ;;  %s587_s27 = sshll.u32 (%p171_p12), %s400_s17, 6  ;;  %s377_s29 = scalar_lea.vmem (%p171_p12), %s962_s1, %s586_s26 }
  0x35   : >> { %vm198_vm6 = vcmp.lt.f32.partialorder %v189_v16, %v192_v14  ;;  %s734_s26 = smov (%p171_p12), [#allocation3]  }
  0x36   : >> { %vm199_vm7 = vmand %vm197_vm5, %vm198_vm6 }
  0x37   : >> { %v200_v17 = vsel %vm199_vm7, %v839_v11, %v188_v15  ;;  %v201_v18 = vsel %vm199_vm7, %v192_v14, %v189_v16  ;;  %vm279_vm6 = vmand %vm275_vm4, %vm244_vm1 }
  0x38   : >> { %v202_v19 = vrot.slane %v201_v18, 1  ;;  %v203_v20 = vrot.slane %v200_v17, 1 }
  0x3a   : >> { %vm204_vm8 = vcmp.ge.f32.partialorder %v202_v19, %v201_v18  ;;  %v207_v21 = vrot.slane %v202_v19, 1  ;;  %v208_v22 = vrot.slane %v203_v20, 1 }
  0x3b   : >> { %v205_v23 = vsel %vm204_vm8, %v202_v19, %v201_v18  ;;  %v206_v24 = vsel %vm204_vm8, %v203_v20, %v200_v17 }
  0x3c   : >> { %vm209_vm9 = vcmp.ge.f32.partialorder %v207_v21, %v205_v23  ;;  %v212_v25 = vrot.slane %v207_v21, 1  ;;  %v213_v26 = vrot.slane %v208_v22, 1 }
  0x3d   : >> { %v210_v27 = vsel %vm209_vm9, %v207_v21, %v205_v23  ;;  %v211_v28 = vsel %vm209_vm9, %v208_v22, %v206_v24 }
  0x3e   : >> { %vm214_vm10 = vcmp.ge.f32.partialorder %v212_v25, %v210_v27  ;;  %v217_v29 = vrot.slane %v212_v25, 1  ;;  %v218_v30 = vrot.slane %v213_v26, 1 }
  0x3f   : >> { %v215_v31 = vsel %vm214_vm10, %v212_v25, %v210_v27  ;;  %v216_v32 = vsel %vm214_vm10, %v213_v26, %v211_v28 }
  0x40   : >> { %vm219_vm11 = vcmp.ge.f32.partialorder %v217_v29, %v215_v31  ;;  %v222_v33 = vrot.slane %v217_v29, 1  ;;  %v223_v34 = vrot.slane %v218_v30, 1 }
  0x41   : >> { %v220_v35 = vsel %vm219_vm11, %v217_v29, %v215_v31  ;;  %v221_v36 = vsel %vm219_vm11, %v218_v30, %v216_v32 }
  0x42   : >> { %vm224_vm12 = vcmp.ge.f32.partialorder %v222_v33, %v220_v35  ;;  %v227_v37 = vrot.slane %v222_v33, 1  ;;  %v228_v38 = vrot.slane %v223_v34, 1 }
  0x43   : >> { %v225_v39 = vsel %vm224_vm12, %v222_v33, %v220_v35  ;;  %v226_v40 = vsel %vm224_vm12, %v223_v34, %v221_v36 }
  0x44   : >> { %vm229_vm13 = vcmp.ge.f32.partialorder %v227_v37, %v225_v39  ;;  %v232_v41 = vrot.slane %v227_v37, 1  ;;  %v233_v42 = vrot.slane %v228_v38, 1 }
  0x45   : >> { %v230_v43 = vsel %vm229_vm13, %v227_v37, %v225_v39  ;;  %v231_v44 = vsel %vm229_vm13, %v228_v38, %v226_v40 }
  0x46   : >> { %vm234_vm14 = vcmp.ge.f32.partialorder %v232_v41, %v230_v43 }
  0x47   : >> { %v236_v45 = vsel %vm234_vm14, %v233_v42, %v231_v44 }
  0x48   : >> { %238 = vrot.lane.b32.xlu0 %v236_v45, %s237_s30 }
  0xba   : >> { %v239_v48 = vpop.permute.xlu0 %238 }
  0xbb   : >> { %591 = vpush %v239_v48 }
  0xec   : >> { %s592_s5 = spop %591 }
  0xed   : >> { %v245_v52 = vstv %s592_s5  ;;  %s250_s8 = scalar_lea.vmem %s818_s11, %s592_s5 [#allocation1]  ;;  %s256_s10 = scalar_lea.vmem [#allocation7], %s592_s5 }
  0xee   : >> { %v247_v53 = vsel %vm244_vm1, %v245_v52, %v246_v49  ;;  %v252_v54 = vld [vmem:[%s250_s8] ss:$0 sm:$0xff]  ;;  %s909_s5 = scalar_lea.hbm (%p171_p12), %s963_s2, %s587_s27 }
  0xef   : >> { %v258_v55 = vld [vmem:[%s256_s10] ss:$0 sm:$0xff]  ;;  %248 = vst [vmem:[%s823_s19] sm:$0x1] %v247_v53  ;;  %253 = vst [vmem:[%s250_s8] sm:$0x1] %v251_v50  ;;  %vm261_vm3 = vcmp.ne.f32.partialorder %v252_v54, 0.0  ;;  %v268_v5 = vsel %vm267_vm15, %v252_v54, 0.0 }
  0xf0   : >> { %259 = vst [vmem:[%s256_s10] sm:$0x1] %v257_v51  ;;  %254 = vst [vmem:[%s249_s4] sm:$0x1] %v252_v54  ;;  %s368_s8 = scalar_lea.sflag (%p171_p12), [#allocation4], %s132_s7  ;;  %s657_s19 = sshll.u32 (%p171_p12), %s734_s26, 4  ;;  %s658_s19 = int_to_ptr.vmem [resolvable:$false] %s657_s19 }
  0xf1   : >> { %260 = vst [vmem:[%s255_s6] sm:$0x1] %v258_v55  ;;  %vm262_vm5 = vmand %vm244_vm1, %vm261_vm3  ;;  %s407_s6 = sshll.u32 (%p171_p12), %s134_s20, 4  ;;  %s408_s6 = int_to_ptr.vmem [resolvable:$true] %s407_s6 }
  0xf2   : >> { %v263_v56 = vsel %vm262_vm5, %v252_v54, 1.0  ;;  %s653_s10 = scalar_lea.vmem (%p171_p12), %s408_s6, 64  ;;  %p660_p2 = scmp.lt.s32.totalorder (%p171_p12), %s408_s6, %s658_s19 }
  0xf3   : >> { %v291_v57 = vsel %vm290_vm0, %v263_v56, 1.0  ;;  %v276_v58 = vsel %vm275_vm4, %v263_v56, 1.0  ;;  %p654_p13 = scmp.ne.s32.totalorder (%p171_p12), %s408_s6, %s653_s10 }
  0xf4   : >> { %649 = vrcp.f32 %v291_v57 }
  0xf5   : >> { %651 = vrcp.f32 %v276_v58  ;;  %p655_p0 = pnand (%p171_p12), %p654_p13, %p793_p5 }
  0xf6   : > { %v354_v14 = vld [vmem:[#allocation2] sm:$0xf] (%p171_p12) }
  0xf7   : >> { %v581_v60 = vld [vmem:[%s818_s11 + $0x8] sm:$0xff]  ;;  %v272_v63 = vld [vmem:[%s818_s11] sm:$0xff]  ;;  %356 = vst [vmem:[%s134_s20] sm:$0xf] (%p171_p12), %v354_v14  ;;  %p656_p1 = pneg (%p171_p12), %p655_p0 }
  0xf8   : > { %v301_v12 = vld [vmem:[#allocation7] sm:$0xff] (%p171_p12)  ;;  %v303_v13 = vld [vmem:[#allocation7 + $0x8] sm:$0xff] (%p171_p12) }
  0xfe   : >> { %v650_v59 = vpop.eup %649 }
  0xff   : >> { %v652_v61 = vpop.eup %651  ;;  %v293_v62 = vmul.f32 %v650_v59, %v581_v60 }
 0x100   : >> { %v278_v0 = vmul.f32 %v652_v61, %v272_v63 }
 0x101   : >> { %v295_v1 = vsel %vm863_vm2, %v293_v62, 0.0 }
 0x102   : >> { %296 = vadd.xlane.f32.xlu1 %v295_v1  ;;  %v280_v4 = vsel %vm279_vm6, %v278_v0, 0.0 }
 0x103   : >> { %281 = vadd.xlane.f32.xlu0 %v280_v4 }
 0x130   : > { %318 = vxpose.xlu0.b32.start [1/2] (short) (narrow) (%p171_p12), %v301_v12, 8 }
 0x134   : > { %319 = vxpose.xlu0.b32.end [2/2] (short) (narrow) (%p171_p12), %v303_v13, 8 }
 0x18f   : >> { %v297_v6 = vpop.xlane.xlu1 %296  ;;  %173 = sbr.rel (!%p171_p12) target bundleno = 47 (0x2f), region = 202 }
 0x190   : >> { %v298_v7 = vmul.f32 %v297_v6, %v268_v5  ;;  %v282_v8 = vpop.xlane.xlu0 %281 }
 0x191   : >> { %v283_v9 = vmul.f32 %v282_v8, %v268_v5 }
 0x192   : >> { %v299_v10 = vsub.f32 %v293_v62, %v298_v7 }
 0x193   : >> { %v284_v11 = vsub.f32 %v278_v0, %v283_v9 }
 0x194   : >> { %582 = vst [vmem:[%s818_s11 + $0x8] sm:$0xff] %v299_v10 }
 0x195   : >> { %285 = vst [vmem:[%s818_s11] sm:$0xff] %v284_v11 }
 0x19b   : > { %v392_v3 = vld [vmem:[%s818_s11 + $0x8] sm:$0xff] }
 0x19c   : > { %v390_v2 = vld [vmem:[%s818_s11] sm:$0xff]  ;;  %393 = vst [vmem:[%s377_s29 + $0x8] sm:$0xff] %v392_v3  ;;  %s659_s11 = scalar_lea.vmem %s658_s19, 128 }
 0x19d   : > { %391 = vst [vmem:[%s377_s29] sm:$0xff] %v390_v2  ;;  %p661_p3 = scmp.lt.s32.totalorder %s659_s11, %s653_s10 }
 0x19f   : > { %p662_p4 = por %p661_p3, %p660_p2 }
 0x1a1   : > { %p663_p7 = pnand %p662_p4, %p656_p1 }
 0x1a3   : > { %666 = shalt.err (!%p663_p7)
}
 0x1a4   : > { %s667_s7 = scalar_lea.hbm %s909_s5, 64  ;;  %s671_s28 = scalar_lea.hbm %s963_s2, 64 }
 0x1a5   : > { %p668_p8 = scmp.ne.s32.totalorder %s909_s5, %s667_s7  ;;  %p672_p11 = scmp.lt.u32.totalorder %s909_s5, %s963_s2 }
 0x1a6   : > { %p673_p12 = scmp.lt.u32.totalorder %s671_s28, %s667_s7  ;;  %p675_p0 = scmp.lt.u32.totalorder %s667_s7, %s909_s5 }
 0x1a7   : > { %p669_p9 = pnand %p668_p8, %p793_p5 }
 0x1a8   : > { %p674_p13 = por %p673_p12, %p672_p11 }
 0x1a9   : > { %p670_p10 = pneg %p669_p9 }
 0x1aa   : > { %p676_p1 = por %p675_p0, %p674_p13 }
 0x1ac   : > { %p677_p2 = pnand %p676_p1, %p670_p10 }
 0x1ae   : > { %680 = shalt.err (!%p677_p2)
}
 0x1af   : > { %593 = dma.vmem_to_hbm [thread:$0]  (%p793_p5), %s408_s6, 64, %s909_s5, %s368_s8  }
 0x1b0   : > { %v334_v15 = vpop.trf.xlu0  ;;  %s588_s4 = sshll.u32 (%p793_p5), %s400_s17, 2 }
 0x1b1   : > { %350 = vst [vmem:[%s828_s22] sm:$0x1] %v334_v15  ;;  %s416_s19 = scalar_lea.vmem (%p793_p5), %s964_s3, %s588_s4 }
 0x1b3   : > { %413 = sbr.rel (!%p793_p5) target bundleno = 450 (0x1c2), region = 80 }
 0x1b8   : > { %v360_v16 = vld [vmem:[#allocation5] sm:$0xf] }
 0x1b9   : > { %362 = vst [vmem:[%s140_s21] sm:$0xf] %v360_v16 }
 0x1c0   : > { %v432_v17 = vld [vmem:[%s140_s21] sm:$0xf] }
 0x1c1   : > { %433 = vst [vmem:[%s416_s19] sm:$0xf] %v432_v17 }
 0x1c2 PF: > { %p599_p3 = scmp.ge.s32.totalorder %s723_s15, 2  ;;  %s460_s22 = sand.u32 1, %s711_s12  }
 0x1c3   : > { %s461_s24 = scalar_lea.sflag [#allocation4], %s460_s22 }
 0x1c4   : > { %p596_p5 = pnand %p599_p3, %p797_p6 }
 0x1c6   : > { %706 = dma.done.wait (!%p596_p5), %s461_s24, 64  }
 0x1c7   : > { %708 = vsyncadd (!%p596_p5), %s461_s24, 4294967232  ;;  %p10_p4 = scmp.ge.s32.totalorder %s780_s18, 6   ;;  %s969_s12 = smov %s715_s13 }
 0x1c8   : > { %s970_s13 = smov %s719_s14  ;;  %s971_s14 = smov %s791_s23 }
 0x1c9   : > { %s972_s15 = smov %s780_s18  ;;  %12 = sbr.rel (!%p10_p4) target bundleno = 3 (0x3), region = 213 }
 0x1d0   :  { %473 = vsyncpa [#allocation4], 1 }
 0x1d1   :  { %475 = vsyncpa [#allocation4 + $0x1], 1 }

// kernel: custom-call.10
= control target key start
LH: loop header
LB: loop body
LE: loop exit
PB: predicated region body
PF: predicated region fallthrough
CT: control target
= control target key end

     0   :  { %s454_s6 = smov 0   ;;  %s456_s7 = smov 0   ;;  %s528_s0 = inlined_call_operand.vmem [shape: f32[4,1,9,9], index: 0, kind: input, shape index: {}]   ;;  %s529_s1 = inlined_call_operand.vmem [shape: f32[4,1,9,9], index: 1, kind: output, shape index: {}]  }
   0x1   :  { %s458_s8 = smov 0  }
   0x2 LB: > { %s370_s9 = sadd.s32 4294967295, %s440_s8   ;;  %s33_s10 = sadd.s32 1, %s436_s7  ;;  %s440_s8 = sphi %s458_s8, %s7_s8   ;;  %s436_s7 = sphi %s456_s7, %s531_s7   ;;  %s432_s6 = sphi %s454_s6, %s530_s6  }
   0x3   : > { %p35_p0 = scmp.ge.s32.totalorder %s33_s10, 4  ;;  %p372_p1 = scmp.ge.s32.totalorder %s440_s8, 4 }
   0x4   : > { %s49_s11 = sand.u32 (!%p372_p1), 1, %s440_s8   ;;  %s386_s12 = sshll.u32 (!%p372_p1), %s436_s7, 4 }
   0x5   : > { %s533_s10 = smov (%p35_p0, %s33_s10), 0  ;;  %47 = sbr.rel (%p372_p1) target bundleno = 12 (0xc), region = 16 }
   0x6   : > { %s373_s13 = sshll.u32 (!%p372_p1), %s49_s11, 4  ;;  %s58_s16 = scalar_lea.vmem (!%p372_p1), %s528_s0, %s386_s12 }
   0x7   : > { %v88_v0 = vld [vmem:[%s58_s16] sm:$0xff] (!%p372_p1)  ;;  %v90_v1 = vld [vmem:[%s58_s16 + $0x8] sm:$0xff] (!%p372_p1)  ;;  %s51_s17 = scalar_lea.vmem (!%p372_p1), [#allocation0], %s373_s13 }
   0x8   : > { %89 = vst [vmem:[%s51_s17] sm:$0xff] (!%p372_p1), %v88_v0  ;;  %91 = vst [vmem:[%s51_s17 + $0x8] sm:$0xff] (!%p372_p1), %v90_v1 }
   0xc PF: > { %p376_p2 = scmp.ge.s32.totalorder %s440_s8, 1  ;;  %p96_p3 = scmp.lt.s32.totalorder %s440_s8, 5 }
   0xe   : > { %p97_p4 = pnand %p376_p2, %p96_p3 }
  0x10   : > { %100 = sbr.rel (%p97_p4) target bundleno = 1358 (0x54e), region = 54 }
  0x17   : > { %s103_s18 = sand.u32 1, %s370_s9   ;;  %v114_v2 = vlaneseq  ;;  %v442_v11 = vmov -1.0   ;;  %v443_v55 = vmov 0.0   ;;  %s387_s21 = sshll.u32 %s432_s6, 4 }
  0x18   : > { %s377_s19 = sshll.u32 %s103_s18, 4  ;;  %s270_s24 = scalar_lea.vmem %s529_s1, %s387_s21 }
  0x19   : > { %v481_v3 = vand.u32 127, %v114_v2  ;;  %v118_v4 = vshrl.u32 %v114_v2, 7  ;;  %s483_s20 = scalar_lea.vmem [#allocation0], %s377_s19 }
  0x1a   : > { %v121_v5 = vld [vmem:[%s483_s20] sm:$0xff]  ;;  %v379_v38 = vld [vmem:[%s483_s20 + $0x8] sm:$0xff] }
  0x1b   : > { %vm120_vm0 = vcmp.eq.s32.totalorder %v118_v4, %v481_v3  ;;  %vm116_vm1 = vcmp.lt.s32.totalorder %v481_v3, 9  ;;  %vm125_vm2 = vcmp.ge.s32.totalorder %v118_v4, %v481_v3  ;;  %vm155_vm4 = vcmp.eq.s32.totalorder %v481_v3, 0 }
  0x1c   : > { %v122_v6 = vsel %vm120_vm0, %v121_v5, 0.0  ;;  %vm126_vm3 = vmand %vm125_vm2, %vm116_vm1  ;;  %vm152_vm5 = vcmp.eq.s32.totalorder %v481_v3, %v118_v4  ;;  %v156_v12 = vsel %vm155_vm4, 1.0, %v442_v11  ;;  %vm170_vm6 = vcmp.eq.s32.totalorder %v481_v3, 1 }
  0x1d   : > { %123 = vadd.xlane.f32.xlu0 %v122_v6  ;;  %v127_v8 = vsel %vm126_vm3, %v121_v5, 0.0  ;;  %v157_v13 = vsel %vm152_vm5, %v156_v12, 0.0  ;;  %vm180_vm7 = vcmp.eq.s32.totalorder %v481_v3, 2  ;;  %vm190_vm8 = vcmp.eq.s32.totalorder %v481_v3, 3 }
  0x1e   : > { %vm200_vm9 = vcmp.eq.s32.totalorder %v481_v3, 4  ;;  %v135_v33 = vadd.s32 8, %v118_v4  ;;  %vm210_vm11 = vcmp.eq.s32.totalorder %v481_v3, 5  ;;  %vm220_vm14 = vcmp.eq.s32.totalorder %v481_v3, 6 }
  0x1f   : > { %vm230_vm0 = vcmp.eq.s32.totalorder %v481_v3, 7 }
  0x20   : > { %vm136_vm10 = vcmp.eq.s32.totalorder %v135_v33, %v481_v3  ;;  %vm141_vm12 = vcmp.ge.s32.totalorder %v135_v33, %v481_v3  ;;  %vm163_vm15 = vcmp.eq.s32.totalorder %v481_v3, %v135_v33 }
  0x21   : > { %v138_v39 = vsel %vm136_vm10, %v379_v38, 0.0  ;;  %vm142_vm13 = vmand %vm141_vm12, %vm116_vm1  ;;  %v164_v56 = vsel %vm163_vm15, -1.0, %v443_v55  ;;  %vm240_vm1 = vcmp.eq.s32.totalorder %v481_v3, 8 }
  0x22   : > { %v143_v46 = vsel %vm142_vm13, %v379_v38, 0.0 }
  0xaa   : > { %v487_v7 = vpop.xlane.xlu0 %123 }
  0xab   : > { %414 = vrcp.f32 %v487_v7  ;;  %vm251_vm3 = vweird.f32 %v487_v7 }
  0xb5   : > { %v494_v9 = vpop.eup %414 }
  0xb6   : > { %v129_v10 = vmul.f32 %v494_v9, %v127_v8 }
  0xb8   : > { %130 = vst [vmem:[#allocation2] sm:$0xff] %v129_v10 }
  0xbf   : > { %v166_v14 = vld [vmem:[#allocation2 + $0x1] ss:$0 sm:$0xff]  ;;  %v176_v17 = vld [vmem:[#allocation2 + $0x2] ss:$0 sm:$0xff]  ;;  %v186_v22 = vld [vmem:[#allocation2 + $0x3] ss:$0 sm:$0xff] }
  0xc0   : > { %v167_v15 = vxor.u32 2147483648, %v166_v14  ;;  %v177_v19 = vxor.u32 2147483648, %v176_v17  ;;  %v187_v24 = vxor.u32 2147483648, %v186_v22  ;;  %v196_v27 = vld [vmem:[#allocation2 + $0x4] ss:$0 sm:$0xff] }
  0xc1   : > { %v197_v29 = vxor.u32 2147483648, %v196_v27  ;;  %v206_v32 = vld [vmem:[#allocation2 + $0x5] ss:$0 sm:$0xff]  ;;  %v216_v40 = vld [vmem:[#allocation2 + $0x6] ss:$0 sm:$0xff] }
  0xc2   : > { %v171_v16 = vmul.f32 %v167_v15, %v157_v13  ;;  %v207_v35 = vxor.u32 2147483648, %v206_v32  ;;  %v217_v42 = vxor.u32 2147483648, %v216_v40  ;;  %v226_v49 = vld [vmem:[#allocation2 + $0x7] ss:$0 sm:$0xff] }
  0xc3   : > { %v227_v52 = vxor.u32 2147483648, %v226_v49 }
  0xc4   : > { %172 = vadd.xlane.f32.xlu0 %v171_v16 }
 0x151   : > { %v173_v18 = vpop.xlane.xlu0 %172 }
 0x152   : > { %v174_v20 = vsel %vm170_vm6, %v173_v18, %v157_v13 }
 0x153   : > { %v181_v21 = vmul.f32 %v177_v19, %v174_v20 }
 0x155   : > { %182 = vadd.xlane.f32.xlu1 %v181_v21 }
 0x1e2   : > { %v183_v23 = vpop.xlane.xlu1 %182 }
 0x1e3   : > { %v184_v25 = vsel %vm180_vm7, %v183_v23, %v174_v20 }
 0x1e4   : > { %v191_v26 = vmul.f32 %v187_v24, %v184_v25 }
 0x1e6   : > { %192 = vadd.xlane.f32.xlu1 %v191_v26 }
 0x273   : > { %v193_v28 = vpop.xlane.xlu1 %192 }
 0x274   : > { %v194_v30 = vsel %vm190_vm8, %v193_v28, %v184_v25 }
 0x275   : > { %v201_v31 = vmul.f32 %v197_v29, %v194_v30 }
 0x277   : > { %202 = vadd.xlane.f32.xlu0 %v201_v31 }
 0x304   : > { %v203_v34 = vpop.xlane.xlu0 %202 }
 0x305   : > { %v204_v36 = vsel %vm200_vm9, %v203_v34, %v194_v30 }
 0x306   : > { %v211_v37 = vmul.f32 %v207_v35, %v204_v36 }
 0x308   : > { %212 = vadd.xlane.f32.xlu1 %v211_v37 }
 0x30c   : > { %139 = vadd.xlane.f32.xlu1 %v138_v39 }
 0x395   : > { %v213_v41 = vpop.xlane.xlu1 %212 }
 0x396   : > { %v214_v43 = vsel %vm210_vm11, %v213_v41, %v204_v36 }
 0x397   : > { %v221_v44 = vmul.f32 %v217_v42, %v214_v43 }
 0x399   : > { %222 = vadd.xlane.f32.xlu0 %v221_v44  ;;  %v140_v45 = vpop.xlane.xlu1 %139 }
 0x39a   : > { %416 = vrcp.f32 %v140_v45  ;;  %vm256_vm2 = vweird.f32 %v140_v45 }
 0x3a4   : > { %v417_v47 = vpop.eup %416 }
 0x3a5   : > { %v145_v48 = vmul.f32 %v417_v47, %v143_v46 }
 0x3a7   : > { %146 = vst [vmem:[#allocation2 + $0x8] sm:$0xff] %v145_v48 }
 0x3ae   : > { %v236_v50 = vld [vmem:[#allocation2 + $0x8] ss:$0 sm:$0xff] }
 0x3af   : > { %v237_v53 = vxor.u32 2147483648, %v236_v50 }
 0x3b1   : > { %v245_v58 = vmul.f32 %v237_v53, %v164_v56 }
 0x426   : > { %v223_v51 = vpop.xlane.xlu0 %222 }
 0x427   : > { %v224_v54 = vsel %vm220_vm14, %v223_v51, %v214_v43 }
 0x428   : > { %v231_v57 = vmul.f32 %v227_v52, %v224_v54 }
 0x42a   : > { %232 = vadd.xlane.f32.xlu0 %v231_v57 }
 0x42e   : > { %246 = vadd.xlane.f32.xlu0 %v245_v58 }
 0x4b7   : > { %v233_v59 = vpop.xlane.xlu0 %232 }
 0x4b8   : > { %v234_v60 = vsel %vm230_vm0, %v233_v59, %v224_v54 }
 0x4b9   : > { %v241_v61 = vmul.f32 %v237_v53, %v234_v60 }
 0x4bb   : > { %v247_v62 = vpop.xlane.xlu0 %246  ;;  %242 = vadd.xlane.f32.xlu1 %v241_v61 }
 0x4bc   : > { %v248_v63 = vsel %vm240_vm1, %v247_v62, %v164_v56 }
 0x4bd   : > { %v255_v0 = vmul.f32 %v417_v47, %v248_v63 }
 0x4bf   : > { %v257_v1 = vsel %vm256_vm2, %v248_v63, %v255_v0 }
 0x4c0   : > { %303 = vst [vmem:[%s270_s24 + $0x8] sm:$0xff] %v257_v1 }
 0x548   : > { %v243_v2 = vpop.xlane.xlu1 %242 }
 0x549   : > { %v244_v4 = vsel %vm240_vm1, %v243_v2, %v234_v60 }
 0x54a   : > { %v250_v5 = vmul.f32 %v494_v9, %v244_v4 }
 0x54c   : > { %v252_v3 = vsel %vm251_vm3, %v244_v4, %v250_v5 }
 0x54d   : > { %301 = vst [vmem:[%s270_s24] sm:$0xff] %v252_v3 }
 0x54e PF: > { %s7_s8 = sadd.s32 1, %s440_s8   ;;  %s530_s6 = smov %s436_s7 }
 0x54f   : > { %p4_p5 = scmp.ge.s32.totalorder %s7_s8, 6   ;;  %s531_s7 = smov %s533_s10 }
 0x551   :  { %6 = sbr.rel (!%p4_p5) target bundleno = 2 (0x2), region = 129 }

// kernel: custom-call.9
= control target key start
LH: loop header
LB: loop body
LE: loop exit
PB: predicated region body
PF: predicated region fallthrough
CT: control target
= control target key end

     0   :  { %s481_s6 = smov 0   ;;  %s483_s7 = smov 0   ;;  %s554_s0 = inlined_call_operand.vmem [shape: f32[4,1,9,9], index: 0, kind: input, shape index: {}]   ;;  %s555_s1 = inlined_call_operand.vmem [shape: f32[4,1,9,9], index: 1, kind: output, shape index: {}]  }
   0x1   :  { %s485_s8 = smov 0  }
   0x2 LB: > { %s397_s9 = sadd.s32 4294967295, %s467_s8   ;;  %s33_s10 = sadd.s32 1, %s463_s7  ;;  %s467_s8 = sphi %s485_s8, %s7_s8   ;;  %s463_s7 = sphi %s483_s7, %s557_s7   ;;  %s459_s6 = sphi %s481_s6, %s556_s6  }
   0x3   : > { %p35_p0 = scmp.ge.s32.totalorder %s33_s10, 4  ;;  %p399_p1 = scmp.ge.s32.totalorder %s467_s8, 4 }
   0x4   : > { %s49_s11 = sand.u32 (!%p399_p1), 1, %s467_s8   ;;  %s413_s12 = sshll.u32 (!%p399_p1), %s463_s7, 4 }
   0x5   : > { %s559_s10 = smov (%p35_p0, %s33_s10), 0  ;;  %47 = sbr.rel (%p399_p1) target bundleno = 12 (0xc), region = 16 }
   0x6   : > { %s400_s13 = sshll.u32 (!%p399_p1), %s49_s11, 4  ;;  %s58_s16 = scalar_lea.vmem (!%p399_p1), %s554_s0, %s413_s12 }
   0x7   : > { %v88_v0 = vld [vmem:[%s58_s16] sm:$0xff] (!%p399_p1)  ;;  %v90_v1 = vld [vmem:[%s58_s16 + $0x8] sm:$0xff] (!%p399_p1)  ;;  %s51_s17 = scalar_lea.vmem (!%p399_p1), [#allocation0], %s400_s13 }
   0x8   : > { %89 = vst [vmem:[%s51_s17] sm:$0xff] (!%p399_p1), %v88_v0  ;;  %91 = vst [vmem:[%s51_s17 + $0x8] sm:$0xff] (!%p399_p1), %v90_v1 }
   0xc PF: > { %p403_p2 = scmp.ge.s32.totalorder %s467_s8, 1  ;;  %p96_p3 = scmp.lt.s32.totalorder %s467_s8, 5 }
   0xe   : > { %p97_p4 = pnand %p403_p2, %p96_p3 }
  0x10   : > { %100 = sbr.rel (%p97_p4) target bundleno = 1358 (0x54e), region = 54 }
  0x17   : > { %s103_s18 = sand.u32 1, %s397_s9   ;;  %v114_v2 = vlaneseq  ;;  %v469_v12 = vmov -1.0   ;;  %v470_v16 = vmov 0.0   ;;  %s414_s21 = sshll.u32 %s459_s6, 4 }
  0x18   : > { %s404_s19 = sshll.u32 %s103_s18, 4  ;;  %s297_s24 = scalar_lea.vmem %s555_s1, %s414_s21 }
  0x19   : > { %v508_v3 = vand.u32 127, %v114_v2  ;;  %v118_v4 = vshrl.u32 %v114_v2, 7  ;;  %s510_s20 = scalar_lea.vmem [#allocation0], %s404_s19 }
  0x1a   : > { %v121_v5 = vld [vmem:[%s510_s20] sm:$0xff] }
  0x1b   : > { %vm116_vm0 = vcmp.lt.s32.totalorder %v508_v3, 9  ;;  %vm120_vm1 = vcmp.eq.s32.totalorder %v118_v4, %v508_v3  ;;  %vm125_vm2 = vcmp.le.s32.totalorder %v118_v4, %v508_v3  ;;  %v522_v11 = vadd.s32 8, %v118_v4 }
  0x1c   : > { %v122_v6 = vsel %vm120_vm1, %v121_v5, 0.0  ;;  %vm126_vm3 = vmand %vm125_vm2, %vm116_vm0  ;;  %vm162_vm4 = vcmp.eq.s32.totalorder %v508_v3, 8  ;;  %vm152_vm6 = vcmp.eq.s32.totalorder %v508_v3, %v118_v4  ;;  %vm170_vm7 = vcmp.eq.s32.totalorder %v508_v3, 7 }
  0x1d   : > { %v127_v7 = vsel %vm126_vm3, %v121_v5, 0.0  ;;  %123 = vadd.xlane.f32.xlu0 %v122_v6  ;;  %vm159_vm5 = vcmp.eq.s32.totalorder %v508_v3, %v522_v11  ;;  %v163_v13 = vsel %vm162_vm4, 1.0, %v469_v12  ;;  %v153_v17 = vsel %vm152_vm6, -1.0, %v470_v16  ;;  %v406_v6 = vld [vmem:[%s510_s20 + $0x8] sm:$0xff] }
  0x1e   : > { %v164_v14 = vsel %vm159_vm5, %v163_v13, 0.0  ;;  %vm184_vm8 = vcmp.eq.s32.totalorder %v508_v3, 6  ;;  %vm198_vm9 = vcmp.eq.s32.totalorder %v508_v3, 5  ;;  %vm212_vm10 = vcmp.eq.s32.totalorder %v508_v3, 4 }
  0x1f   : > { %vm226_vm11 = vcmp.eq.s32.totalorder %v508_v3, 3  ;;  %vm240_vm12 = vcmp.eq.s32.totalorder %v508_v3, 2  ;;  %vm136_vm13 = vcmp.eq.s32.totalorder %v522_v11, %v508_v3  ;;  %vm254_vm14 = vcmp.eq.s32.totalorder %v508_v3, 1 }
  0x20   : > { %vm267_vm15 = vcmp.eq.s32.totalorder %v508_v3, 0 }
  0xaa   : > { %v516_v8 = vpop.xlane.xlu0 %123 }
  0xab   : > { %441 = vrcp.f32 %v516_v8  ;;  %vm278_vm0 = vweird.f32 %v516_v8 }
  0xb5   : > { %v519_v9 = vpop.eup %441 }
  0xb6   : > { %v129_v10 = vmul.f32 %v519_v9, %v127_v7  ;;  %v138_v7 = vsel %vm136_vm13, %v406_v6, 0.0 }
  0xb8   : > { %130 = vst [vmem:[#allocation2] sm:$0xff] %v129_v10 }
  0xbf   : > { %v166_v15 = vld [vmem:[#allocation2 + $0x7] ss:$0 sm:$0xff]  ;;  %v180_v21 = vld [vmem:[#allocation2 + $0x6] ss:$0 sm:$0xff]  ;;  %v194_v29 = vld [vmem:[#allocation2 + $0x5] ss:$0 sm:$0xff] }
  0xc0   : > { %v167_v18 = vxor.u32 2147483648, %v166_v15  ;;  %v181_v24 = vxor.u32 2147483648, %v180_v21  ;;  %v195_v32 = vxor.u32 2147483648, %v194_v29  ;;  %v208_v37 = vld [vmem:[#allocation2 + $0x4] ss:$0 sm:$0xff] }
  0xc1   : > { %v209_v40 = vxor.u32 2147483648, %v208_v37  ;;  %v222_v45 = vld [vmem:[#allocation2 + $0x3] ss:$0 sm:$0xff]  ;;  %v236_v53 = vld [vmem:[#allocation2 + $0x2] ss:$0 sm:$0xff] }
  0xc2   : > { %v175_v19 = vmul.f32 %v167_v18, %v164_v14  ;;  %v171_v20 = vmul.f32 %v167_v18, %v153_v17  ;;  %v223_v48 = vxor.u32 2147483648, %v222_v45  ;;  %v237_v56 = vxor.u32 2147483648, %v236_v53  ;;  %v250_v61 = vld [vmem:[#allocation2 + $0x1] ss:$0 sm:$0xff]  ;;  %v263_v10 = vld [vmem:[#allocation2] ss:$0 sm:$0xff] }
  0xc3   : > { %v251_v0 = vxor.u32 2147483648, %v250_v61 }
  0xc4   : > { %176 = vadd.xlane.f32.xlu1 %v175_v19  ;;  %172 = vadd.xlane.f32.xlu0 %v171_v20 }
 0x151   : > { %v177_v22 = vpop.xlane.xlu1 %176  ;;  %v173_v23 = vpop.xlane.xlu0 %172 }
 0x152   : > { %v178_v25 = vsel %vm170_vm7, %v177_v22, %v164_v14  ;;  %v174_v26 = vsel %vm170_vm7, %v173_v23, %v153_v17  ;;  %v264_v14 = vxor.u32 2147483648, %v263_v10 }
 0x153   : > { %v189_v27 = vmul.f32 %v181_v24, %v178_v25  ;;  %v185_v28 = vmul.f32 %v181_v24, %v174_v26 }
 0x155   : > { %190 = vadd.xlane.f32.xlu0 %v189_v27  ;;  %186 = vadd.xlane.f32.xlu1 %v185_v28 }
 0x1e2   : > { %v187_v30 = vpop.xlane.xlu1 %186  ;;  %v191_v31 = vpop.xlane.xlu0 %190 }
 0x1e3   : > { %v188_v33 = vsel %vm184_vm8, %v187_v30, %v174_v26  ;;  %v192_v34 = vsel %vm184_vm8, %v191_v31, %v178_v25 }
 0x1e4   : > { %v199_v35 = vmul.f32 %v195_v32, %v188_v33  ;;  %v203_v36 = vmul.f32 %v195_v32, %v192_v34 }
 0x1e6   : > { %200 = vadd.xlane.f32.xlu1 %v199_v35  ;;  %204 = vadd.xlane.f32.xlu0 %v203_v36 }
 0x273   : > { %v201_v38 = vpop.xlane.xlu1 %200  ;;  %v205_v39 = vpop.xlane.xlu0 %204 }
 0x274   : > { %v202_v41 = vsel %vm198_vm9, %v201_v38, %v188_v33  ;;  %v206_v42 = vsel %vm198_vm9, %v205_v39, %v192_v34 }
 0x275   : > { %v213_v43 = vmul.f32 %v209_v40, %v202_v41  ;;  %v217_v44 = vmul.f32 %v209_v40, %v206_v42 }
 0x277   : > { %214 = vadd.xlane.f32.xlu1 %v213_v43  ;;  %218 = vadd.xlane.f32.xlu0 %v217_v44 }
 0x304   : > { %v215_v46 = vpop.xlane.xlu1 %214  ;;  %v219_v47 = vpop.xlane.xlu0 %218 }
 0x305   : > { %v216_v49 = vsel %vm212_vm10, %v215_v46, %v202_v41  ;;  %v220_v50 = vsel %vm212_vm10, %v219_v47, %v206_v42 }
 0x306   : > { %v227_v51 = vmul.f32 %v223_v48, %v216_v49  ;;  %v231_v52 = vmul.f32 %v223_v48, %v220_v50 }
 0x308   : > { %228 = vadd.xlane.f32.xlu1 %v227_v51  ;;  %232 = vadd.xlane.f32.xlu0 %v231_v52 }
 0x395   : > { %v229_v54 = vpop.xlane.xlu1 %228  ;;  %v233_v55 = vpop.xlane.xlu0 %232 }
 0x396   : > { %v230_v57 = vsel %vm226_vm11, %v229_v54, %v216_v49  ;;  %v234_v58 = vsel %vm226_vm11, %v233_v55, %v220_v50 }
 0x397   : > { %v241_v59 = vmul.f32 %v237_v56, %v230_v57  ;;  %v245_v60 = vmul.f32 %v237_v56, %v234_v58 }
 0x399   : > { %242 = vadd.xlane.f32.xlu1 %v241_v59  ;;  %246 = vadd.xlane.f32.xlu0 %v245_v60 }
 0x426   : > { %v243_v62 = vpop.xlane.xlu1 %242  ;;  %v247_v63 = vpop.xlane.xlu0 %246 }
 0x427   : > { %v244_v1 = vsel %vm240_vm12, %v243_v62, %v230_v57  ;;  %v248_v2 = vsel %vm240_vm12, %v247_v63, %v234_v58 }
 0x428   : > { %v255_v4 = vmul.f32 %v251_v0, %v244_v1  ;;  %v259_v5 = vmul.f32 %v251_v0, %v248_v2 }
 0x42a   : > { %256 = vadd.xlane.f32.xlu1 %v255_v4  ;;  %260 = vadd.xlane.f32.xlu0 %v259_v5 }
 0x42e   : > { %139 = vadd.xlane.f32.xlu1 %v138_v7 }
 0x4b7   : > { %v257_v12 = vpop.xlane.xlu1 %256  ;;  %v261_v13 = vpop.xlane.xlu0 %260 }
 0x4b8   : > { %v258_v15 = vsel %vm254_vm14, %v257_v12, %v244_v1  ;;  %v262_v16 = vsel %vm254_vm14, %v261_v13, %v248_v2 }
 0x4b9   : > { %v268_v17 = vmul.f32 %v264_v14, %v258_v15  ;;  %v272_v18 = vmul.f32 %v264_v14, %v262_v16 }
 0x4bb   : > { %269 = vadd.xlane.f32.xlu0 %v268_v17  ;;  %273 = vadd.xlane.f32.xlu1 %v272_v18  ;;  %v140_v19 = vpop.xlane.xlu1 %139 }
 0x4bc   : > { %443 = vrcp.f32 %v140_v19  ;;  %vm283_vm1 = vweird.f32 %v140_v19 }
 0x4c6   : > { %v444_v11 = vpop.eup %443 }
 0x548   : > { %v274_v20 = vpop.xlane.xlu1 %273  ;;  %v270_v21 = vpop.xlane.xlu0 %269 }
 0x549   : > { %v275_v22 = vsel %vm267_vm15, %v274_v20, %v262_v16  ;;  %v271_v23 = vsel %vm267_vm15, %v270_v21, %v258_v15 }
 0x54a   : > { %v282_v24 = vmul.f32 %v444_v11, %v275_v22  ;;  %v277_v25 = vmul.f32 %v519_v9, %v271_v23 }
 0x54c   : > { %v284_v26 = vsel %vm283_vm1, %v275_v22, %v282_v24  ;;  %v279_v27 = vsel %vm278_vm0, %v271_v23, %v277_v25 }
 0x54d   : > { %330 = vst [vmem:[%s297_s24 + $0x8] sm:$0xff] %v284_v26  ;;  %328 = vst [vmem:[%s297_s24] sm:$0xff] %v279_v27 }
 0x54e PF: > { %s7_s8 = sadd.s32 1, %s467_s8   ;;  %s556_s6 = smov %s463_s7 }
 0x54f   : > { %p4_p5 = scmp.ge.s32.totalorder %s7_s8, 6   ;;  %s557_s7 = smov %s559_s10 }
 0x551   :  { %6 = sbr.rel (!%p4_p5) target bundleno = 2 (0x2), region = 128 }

// kernel: _lambda_.2
= control target key start
LH: loop header
LB: loop body
LE: loop exit
PB: predicated region body
PF: predicated region fallthrough
CT: control target
= control target key end

     0   :  { %v1743_v3 = vmov 0.0|0.0   ;;  %vm1744_vm0 = vmmov 0   ;;  %v1745_v6 = vmov 0.0   ;;  %vm142_vm1 = vcmask 130048   ;;  %s2143_s2 = inlined_call_operand.vmem [shape: f32[56,9], index: 2, kind: input, shape index: {}]   ;;  %s2144_s0 = inlined_call_operand.vmem [shape: f32[4,56], index: 0, kind: input, shape index: {}]   ;;  %s2145_s4 = inlined_call_operand.vmem [shape: f32[4,16,2], index: 4, kind: input, shape index: {}]   ;;  %s2146_s3 = inlined_call_operand.vmem [shape: f32[56,16], index: 3, kind: input, shape index: {}]   ;;  %s2147_s1 = inlined_call_operand.vmem [shape: f32[9,56], index: 1, kind: input, shape index: {}]   ;;  %s2148_s5 = inlined_call_operand.vmem [shape: f32[4,9,9], index: 5, kind: output, shape index: {0}]   ;;  %s2149_s6 = inlined_call_operand.vmem [shape: f32[4,9,2], index: 6, kind: output, shape index: {1}]  }
   0x1   :  { %v24_v0 = vld [vmem:[%s2143_s2] sm:$0xff]  ;;  %v25_v1 = vld [vmem:[%s2143_s2 + $0x8] sm:$0xff]  ;;  %v26_v2 = vld [vmem:[%s2143_s2 + $0x10] sm:$0xff]  ;;  %1720 = vmatprep.subr.bf16.mxu1 %v1743_v3  ;;  %1406 = vmatprep.mubr.msk.f32.mxu1 %vm1744_vm0, %v1745_v6  ;;  %v48_v24 = vlaneseq  ;;  %vm54_vm2 = vcmask 457728   ;;  %vm138_vm3 = vcmask 65536   ;;  %vm136_vm4 = vcmask 72704  }
   0x2   :  { %v1791_v4 = vpack.c.bf16 %v25_v1, %v24_v0  ;;  %v27_v5 = vld [vmem:[%s2143_s2 + $0x18] sm:$0xff]  ;;  %v28_v8 = vld [vmem:[%s2143_s2 + $0x20] sm:$0xff]  ;;  %v29_v9 = vld [vmem:[%s2143_s2 + $0x28] sm:$0xff]  ;;  %vm343_vm5 = vcmask 8192   ;;  %vm341_vm6 = vcmask 15360  }
   0x3   :  { %v1798_v7 = vpack.c.bf16 %v27_v5, %v26_v2  ;;  %v38_v10 = vld [vmem:[%s2144_s0] sm:$0x1]  ;;  %v141_v12 = vld [vmem:[%s2145_s4 + $0x8] sm:$0xff]  ;;  %v1818_v15 = vpack.c.bf16 %v29_v9, %v28_v8  ;;  %v1823_v17 = vld [vmem:[%s2146_s3 + $0x18] sm:$0xff]  ;;  %v49_v25 = vshrl.u32 %v48_v24, 7 }
   0x4   :  { %1613 = vmatprep.subr.bf16.mxu0 %v1791_v4  ;;  %v140_v11 = vld [vmem:[%s2145_s4] sm:$0xff]  ;;  %v1202_v13 = vmul.f32 -0.01, %v38_v10  ;;  %v1833_v18 = vld [vmem:[%s2143_s2 + $0x30] sm:$0xff]  ;;  %v1853_v20 = vld [vmem:[%s2146_s3 + $0x28] sm:$0xff] }
   0x5   :  { %1615 = vmatpush3.bf16.msra.mxu0 %v1791_v4  ;;  %v1625_v14 = vpack.c.bf16 %v141_v12, %v140_v11  ;;  %v1840_v19 = vld [vmem:[%s2146_s3 + $0x20] sm:$0xff]  ;;  %v1866_v22 = vld [vmem:[%s2146_s3 + $0x30] sm:$0xff]  ;;  %v1874_v28 = vsub.s32 0, %v49_v25  ;;  %v1884_v31 = vld [vmem:[%s2147_s1 + $0x8] sm:$0x1] }
   0x6   :  { %1617 = vmatprep.subr.bf16.mxu0 %v1798_v7  ;;  %v41_v16 = vmul.f32 1.442695, %v1202_v13  ;;  %v1879_v30 = vld [vmem:[%s2147_s1] sm:$0xff]  ;;  %v1908_v36 = vld [vmem:[%s2146_s3 + $0x8] sm:$0xff]  ;;  %v1917_v37 = vld [vmem:[%s2146_s3 + $0x10] sm:$0xff] }
   0x7   :  { %1721 = vmatpush3.bf16.msra.mxu1 %v1625_v14  ;;  %v1899_v35 = vld [vmem:[%s2146_s3] sm:$0xff]  ;;  %v1219_v47 = vld [vmem:[%s2145_s4 + $0x10] sm:$0xff]  ;;  %v1220_v48 = vld [vmem:[%s2145_s4 + $0x18] sm:$0xff] }
   0x8   :  { %1640 = vmatprep.subr.bf16.mxu1 %v1791_v4  ;;  %1727 = vpow2.f32 %v41_v16  ;;  %v345_v38 = vld [vmem:[%s2144_s0 + $0x1] sm:$0x1]  ;;  %v1652_v51 = vpack.c.bf16 %v1220_v48, %v1219_v47  ;;  %v1238_v47 = vld [vmem:[%s2145_s4 + $0x28] sm:$0xff] }
   0x9   :  { %1619 = vmatpush3.bf16.msra.mxu0 %v1798_v7  ;;  %v1214_v39 = vmul.f32 -0.01, %v345_v38 }
   0xa   :  { %1621 = vmatprep.subr.bf16.mxu0 %v1818_v15  ;;  %1407 = vmatmul.mubr.msk.f32.vlgmr.msra.gmra.mrb[0].mxu1 %vm142_vm1, %v1823_v17 }
   0xb   :  { %1409 = vmatprep.mubr.msk.f32.mxu1 %vm1744_vm0, %v1745_v6  ;;  %1642 = vmatpush3.bf16.msra.mxu1 %v1791_v4  ;;  %v348_v40 = vmul.f32 1.442695, %v1214_v39 }
   0xc   :  { %1644 = vmatprep.subr.bf16.mxu1 %v1798_v7 }
   0xd   :  { %1623 = vmatpush3.bf16.msra.mxu0 %v1818_v15 }
   0xe   :  { %1388 = vmatprep.subr.mxu0 %v1833_v18  ;;  %1410 = vmatmul.mubr.msk.f32.gmra.mrb[2].mxu1 %vm142_vm1, %v1840_v19 }
   0xf   :  { %1412 = vmatprep.mubr.msk.f32.mxu1 %vm1744_vm0, %v1745_v6  ;;  %1646 = vmatpush3.bf16.msra.mxu1 %v1798_v7 }
  0x10   :  { %1648 = vmatprep.subr.bf16.mxu1 %v1818_v15 }
  0x11   :  { %1389 = vmatpush3.msra.mxu0 %v1833_v18 }
  0x12   :  { %1624 = vmatprep.subr.bf16.mxu0 %v1743_v3  ;;  %1413 = vmatmul.mubr.msk.f32.gmra.mrb[4].mxu1 %vm142_vm1, %v1853_v20  ;;  %v1728_v21 = vpop.eup %1727 }
  0x13   :  { %1415 = vmatprep.mubr.msk.f32.mxu1 %vm1744_vm0, %v1745_v6  ;;  %1650 = vmatpush3.bf16.msra.mxu1 %v1818_v15  ;;  %v43_v23 = vadd.f32 1.0, %v1728_v21 }
  0x14   :  { %1447 = vmatprep.subr.mxu1 %v1833_v18 }
  0x15   :  { %1729 = vrcp.f32 %v43_v23 }
  0x16   :  { %1416 = vmatmul.mubr.msk.f32.gmra.mrb[6].mxu1 %vm142_vm1, %v1866_v22  ;;  %1731 = vpow2.f32 %v348_v40 }
  0x17   :  { %1448 = vmatpush3.msra.mxu1 %v1833_v18 }
  0x18   :  { %1722 = vmatprep.subr.bf16.mxu1 %v1743_v3 }
  0x1f   :  { %v1730_v26 = vpop.eup %1729 }
  0x20   :  { %v46_v27 = vmul.f32 0.98, %v1730_v26  ;;  %v1732_v41 = vpop.eup %1731 }
  0x21   :  { %v350_v42 = vadd.f32 1.0, %v1732_v41 }
  0x22   :  { %v47_v29 = vadd.f32 0.01, %v46_v27 }
  0x23   :  { %1733 = vrcp.f32 %v350_v42 }
  0x24   :  { %v51_v32 = vrot.slane %v47_v29, %v1874_v28 }
  0x26   :  { %v52_v33 = vmul.f32 %v51_v32, %v1879_v30  ;;  %v1889_v34 = vmul.f32 %v51_v32, %v1884_v31 }
  0x28   :  { %1390 = vmatprep.mubr.msk.f32.mxu0 %vm54_vm2, %v52_v33 }
  0x29   :  { %1391 = vmatmul.mubr.msk.f32.vlgmr.msra.gmra.mrb[0].mxu0 %vm54_vm2, %v1889_v34 }
  0x2a   :  { %1626 = vmatpush3.bf16.msra.mxu0 %v1625_v14  ;;  %1397 = vmatprep.mubr.msk.f32.mxu0 %vm1744_vm0, %v1745_v6 }
  0x2d   :  { %1398 = vmatmul.mubr.msk.f32.vlgmr.msra.gmra.mrb[2].mxu0 %vm142_vm1, %v1899_v35  ;;  %v1734_v43 = vpop.eup %1733 }
  0x2e   :  { %1400 = vmatprep.mubr.msk.f32.mxu0 %vm1744_vm0, %v1745_v6  ;;  %v353_v44 = vmul.f32 0.98, %v1734_v43 }
  0x30   :  { %v354_v45 = vadd.f32 0.01, %v353_v44 }
  0x31   :  { %1401 = vmatmul.mubr.msk.f32.gmra.mrb[4].mxu0 %vm142_vm1, %v1908_v36 }
  0x32   :  { %1403 = vmatprep.mubr.msk.f32.mxu0 %vm1744_vm0, %v1745_v6  ;;  %v358_v46 = vrot.slane %v354_v45, %v1874_v28 }
  0x34   :  { %v359_v49 = vmul.f32 %v358_v46, %v1879_v30  ;;  %v1934_v50 = vmul.f32 %v358_v46, %v1884_v31  ;;  %v1237_v46 = vld [vmem:[%s2145_s4 + $0x20] sm:$0xff] }
  0x35   :  { %1404 = vmatmul.mubr.msk.f32.gmra.mrb[6].mxu0 %vm142_vm1, %v1917_v37  ;;  %v1679_v48 = vpack.c.bf16 %v1238_v47, %v1237_v46 }
  0x36   :  { %1432 = vmatprep.mubr.msk.f32.mxu0 %vm54_vm2, %v52_v33  ;;  %1449 = vmatprep.mubr.msk.f32.mxu1 %vm54_vm2, %v359_v49 }
  0x37   :  { %1450 = vmatmul.mubr.msk.f32.vlgmr.msra.gmra.mrb[8].mxu1 %vm54_vm2, %v1934_v50 }
  0x38   :  { %1723 = vmatpush3.bf16.msra.mxu1 %v1652_v51  ;;  %1468 = vmatprep.mubr.msk.f32.mxu1 %vm1744_vm0, %v1745_v6 }
  0x3b   :  { %1469 = vmatmul.mubr.msk.f32.vlgmr.msra.gmra.mrb[10].mxu1 %vm142_vm1, %v1840_v19 }
  0x3c   :  { %1471 = vmatprep.mubr.msk.f32.mxu1 %vm1744_vm0, %v1745_v6 }
  0x3f   :  { %1472 = vmatmul.mubr.msk.f32.gmra.mrb[12].mxu1 %vm142_vm1, %v1853_v20 }
  0x40   :  { %1474 = vmatprep.mubr.msk.f32.mxu1 %vm1744_vm0, %v1745_v6 }
  0x43   :  { %1475 = vmatmul.mubr.msk.f32.gmra.mrb[14].mxu1 %vm142_vm1, %v1866_v22 }
  0x44   :  { %1491 = vmatprep.mubr.msk.f32.mxu1 %vm54_vm2, %v359_v49 }
  0xdd   :  { %v245_v52 = vpop.f32.mrb[0].mxu1 }
  0xde   :  { %v1408_v53 = vpop.f32.mrb[1].mxu1 }
  0xe1   :  { %v250_v54 = vpop.f32.mrb[2].mxu1 }
  0xe2   :  { %v1411_v55 = vpop.f32.mrb[3].mxu1 }
  0xe5   :  { %v255_v56 = vpop.f32.mrb[4].mxu1 }
  0xe6   :  { %v1635_v57 = vpack.c.bf16 %v255_v56, %v250_v54  ;;  %v1414_v58 = vpop.f32.mrb[5].mxu1 }
  0xe9   :  { %v260_v59 = vpop.f32.mrb[6].mxu1 }
  0xea   :  { %v1417_v60 = vpop.f32.mrb[7].mxu1 }
  0xfc   :  { %v1392_v61 = vpop.f32.mrb[0].mxu0 }
  0xfd   :  { %139 = vst.msk [vmem:[%s2148_s5 + $0x8] sm:$0x1] %vm138_vm3, %v1392_v61  ;;  %v127_v62 = vpop.f32.mrb[1].mxu0 }
  0xfe   :  { %137 = vst.msk [vmem:[%s2148_s5] sm:$0xff] %vm136_vm4, %v127_v62 }
 0x100   :  { %v230_v63 = vpop.f32.mrb[2].mxu0 }
 0x101   :  { %v1399_v0 = vpop.f32.mrb[3].mxu0 }
 0x104   :  { %v235_v1 = vpop.f32.mrb[4].mxu0 }
 0x105   :  { %v1627_v2 = vpack.c.bf16 %v235_v1, %v230_v63  ;;  %v1402_v5 = vpop.f32.mrb[5].mxu0 }
 0x107   :  { %1628 = vmatprep.subr.bf16.mxu0 %v1627_v2 }
 0x108   :  { %v240_v8 = vpop.f32.mrb[6].mxu0  ;;  %1630 = vmatpush3.bf16.msra.mxu0 %v1627_v2 }
 0x109   :  { %v1631_v9 = vpack.c.bf16 %v245_v52, %v240_v8  ;;  %v1405_v10 = vpop.f32.mrb[7].mxu0 }
 0x10a   :  { %v1451_v11 = vpop.f32.mrb[8].mxu1 }
 0x10b   :  { %1632 = vmatprep.subr.bf16.mxu0 %v1631_v9  ;;  %1218 = vst.msk [vmem:[%s2148_s5 + $0x18] sm:$0x1] %vm138_vm3, %v1451_v11  ;;  %v433_v12 = vpop.f32.mrb[9].mxu1 }
 0x10c   :  { %1634 = vmatpush3.bf16.msra.mxu0 %v1631_v9  ;;  %1217 = vst.msk [vmem:[%s2148_s5 + $0x10] sm:$0xff] %vm136_vm4, %v433_v12 }
 0x10d   :  { %1636 = vmatprep.subr.bf16.mxu0 %v1635_v57 }
 0x10e   :  { %v534_v13 = vpop.f32.mrb[10].mxu1 }
 0x10f   :  { %v1470_v14 = vpop.f32.mrb[11].mxu1 }
 0x110   :  { %1638 = vmatpush3.bf16.msra.mxu0 %v1635_v57 }
 0x111   :  { %1430 = vmatprep.subr.mxu0 %v260_v59 }
 0x112   :  { %v539_v16 = vpop.f32.mrb[12].mxu1 }
 0x113   :  { %v1662_v21 = vpack.c.bf16 %v539_v16, %v534_v13  ;;  %v1473_v23 = vpop.f32.mrb[13].mxu1  ;;  %v1255_v16 = vld [vmem:[%s2145_s4 + $0x30] sm:$0xff] }
 0x114   :  { %1431 = vmatpush3.msra.mxu0 %v260_v59 }
 0x115   :  { %1433 = vmatmul.mubr.msk.f32.vlgmr.msra.gmra.mrb[8].mxu0 %vm54_vm2, %v1889_v34  ;;  %1651 = vmatprep.subr.bf16.mxu0 %v1743_v3 }
 0x116   :  { %1653 = vmatpush3.bf16.msra.mxu0 %v1652_v51  ;;  %1456 = vmatprep.mubr.msk.f32.mxu0 %vm1744_vm0, %v1745_v6  ;;  %v544_v24 = vpop.f32.mrb[14].mxu1 }
 0x117   :  { %1667 = vmatprep.subr.bf16.mxu0 %v1791_v4  ;;  %v1476_v25 = vpop.f32.mrb[15].mxu1 }
 0x119   :  { %1457 = vmatmul.mubr.msk.f32.vlgmr.msra.gmra.mrb[10].mxu0 %vm142_vm1, %v1899_v35 }
 0x11a   :  { %1459 = vmatprep.mubr.msk.f32.mxu0 %vm1744_vm0, %v1745_v6  ;;  %1669 = vmatpush3.bf16.msra.mxu0 %v1791_v4 }
 0x11b   :  { %1671 = vmatprep.subr.bf16.mxu0 %v1798_v7 }
 0x11d   :  { %1460 = vmatmul.mubr.msk.f32.gmra.mrb[12].mxu0 %vm142_vm1, %v1908_v36 }
 0x11e   :  { %1462 = vmatprep.mubr.msk.f32.mxu0 %vm1744_vm0, %v1745_v6  ;;  %1673 = vmatpush3.bf16.msra.mxu0 %v1798_v7 }
 0x11f   :  { %1675 = vmatprep.subr.bf16.mxu0 %v1818_v15 }
 0x121   :  { %1463 = vmatmul.mubr.msk.f32.gmra.mrb[14].mxu0 %vm142_vm1, %v1917_v37 }
 0x122   :  { %1465 = vmatprep.mubr.msk.f32.mxu0 %vm1744_vm0, %v1745_v6  ;;  %1677 = vmatpush3.bf16.msra.mxu0 %v1818_v15 }
 0x123   :  { %1506 = vmatprep.subr.mxu0 %v1833_v18 }
 0x125   :  { %1466 = vmatmul.mubr.msk.f32.gmra.mrb[16].mxu0 %vm142_vm1, %v1823_v17 }
 0x126   :  { %1507 = vmatpush3.msra.mxu0 %v1833_v18 }
 0x1e8   :  { %v1434_v26 = vpop.f32.mrb[8].mxu0 }
 0x1e9   :  { %v340_v27 = vsub.f32 0.0, %v1434_v26  ;;  %v330_v29 = vpop.f32.mrb[9].mxu0 }
 0x1ea   :  { %v339_v32 = vsub.f32 0.0, %v330_v29 }
 0x1eb   :  { %344 = vst.msk [vmem:[%s2149_s6 + $0x8] sm:$0x1] %vm343_vm5, %v340_v27 }
 0x1ec   :  { %342 = vst.msk [vmem:[%s2149_s6] sm:$0xff] %vm341_vm6, %v339_v32  ;;  %v514_v33 = vpop.f32.mrb[10].mxu0 }
 0x1ed   :  { %v1458_v34 = vpop.f32.mrb[11].mxu0 }
 0x1f0   :  { %v519_v38 = vpop.f32.mrb[12].mxu0 }
 0x1f1   :  { %v1654_v39 = vpack.c.bf16 %v519_v38, %v514_v33  ;;  %v1461_v40 = vpop.f32.mrb[13].mxu0 }
 0x1f3   :  { %1655 = vmatprep.subr.bf16.mxu1 %v1654_v39 }
 0x1f4   :  { %v524_v41 = vpop.f32.mrb[14].mxu0  ;;  %1657 = vmatpush3.bf16.msra.mxu1 %v1654_v39 }
 0x1f5   :  { %v1464_v42 = vpop.f32.mrb[15].mxu0 }
 0x1f8   :  { %v529_v43 = vpop.f32.mrb[16].mxu0 }
 0x1f9   :  { %v1658_v44 = vpack.c.bf16 %v529_v43, %v524_v41  ;;  %v1467_v45 = vpop.f32.mrb[17].mxu0 }
 0x1fb   :  { %1659 = vmatprep.subr.bf16.mxu1 %v1658_v44 }
 0x1fc   :  { %1661 = vmatpush3.bf16.msra.mxu1 %v1658_v44 }
 0x1fd   :  { %1663 = vmatprep.subr.bf16.mxu1 %v1662_v21 }
 0x200   :  { %1665 = vmatpush3.bf16.msra.mxu1 %v1662_v21  ;;  %v1256_v21 = vld [vmem:[%s2145_s4 + $0x38] sm:$0xff] }
 0x201   :  { %1489 = vmatprep.subr.mxu1 %v544_v24  ;;  %v1706_v25 = vpack.c.bf16 %v1256_v21, %v1255_v16 }
 0x204   :  { %1490 = vmatpush3.msra.mxu1 %v544_v24 }
 0x205   :  { %1492 = vmatmul.mubr.msk.f32.vlgmr.msra.gmra.mrb[16].mxu1 %vm54_vm2, %v1934_v50  ;;  %1678 = vmatprep.subr.bf16.mxu1 %v1743_v3 }
 0x206   :  { %1680 = vmatpush3.bf16.msra.mxu1 %v1679_v48  ;;  %1515 = vmatprep.mubr.msk.f32.mxu1 %vm1744_vm0, %v1745_v6 }
 0x207   :  { %1694 = vmatprep.subr.bf16.mxu1 %v1791_v4 }
 0x209   :  { %1516 = vmatmul.mubr.msk.f32.vlgmr.msra.gmra.mrb[18].mxu1 %vm142_vm1, %v1899_v35 }
 0x20a   :  { %1518 = vmatprep.mubr.msk.f32.mxu1 %vm1744_vm0, %v1745_v6  ;;  %1696 = vmatpush3.bf16.msra.mxu1 %v1791_v4  ;;  %v628_v4 = vld [vmem:[%s2144_s0 + $0x2] sm:$0x1] }
 0x20b   :  { %1698 = vmatprep.subr.bf16.mxu1 %v1798_v7 }
 0x20d   :  { %1519 = vmatmul.mubr.msk.f32.gmra.mrb[20].mxu1 %vm142_vm1, %v1908_v36 }
 0x20e   :  { %1521 = vmatprep.mubr.msk.f32.mxu1 %vm1744_vm0, %v1745_v6  ;;  %1700 = vmatpush3.bf16.msra.mxu1 %v1798_v7  ;;  %v1232_v7 = vmul.f32 -0.01, %v628_v4 }
 0x20f   :  { %1702 = vmatprep.subr.bf16.mxu1 %v1818_v15 }
 0x211   :  { %1522 = vmatmul.mubr.msk.f32.gmra.mrb[22].mxu1 %vm142_vm1, %v1917_v37 }
 0x212   :  { %1524 = vmatprep.mubr.msk.f32.mxu1 %vm1744_vm0, %v1745_v6  ;;  %1704 = vmatpush3.bf16.msra.mxu1 %v1818_v15  ;;  %v631_v15 = vmul.f32 1.442695, %v1232_v7 }
 0x213   :  { %1565 = vmatprep.subr.mxu1 %v1833_v18 }
 0x214   :  { %1735 = vpow2.f32 %v631_v15 }
 0x215   :  { %1525 = vmatmul.mubr.msk.f32.gmra.mrb[24].mxu1 %vm142_vm1, %v1823_v17 }
 0x216   :  { %1527 = vmatprep.mubr.msk.f32.mxu1 %vm1744_vm0, %v1745_v6  ;;  %1566 = vmatpush3.msra.mxu1 %v1833_v18 }
 0x219   :  { %1528 = vmatmul.mubr.msk.f32.gmra.mrb[26].mxu1 %vm142_vm1, %v1840_v19 }
 0x21a   :  { %1530 = vmatprep.mubr.msk.f32.mxu1 %vm1744_vm0, %v1745_v6 }
 0x21d   :  { %1531 = vmatmul.mubr.msk.f32.gmra.mrb[28].mxu1 %vm142_vm1, %v1853_v20 }
 0x21e   :  { %1533 = vmatprep.mubr.msk.f32.mxu1 %vm1744_vm0, %v1745_v6  ;;  %v1736_v18 = vpop.eup %1735 }
 0x21f   :  { %v633_v49 = vadd.f32 1.0, %v1736_v18 }
 0x221   :  { %1534 = vmatmul.mubr.msk.f32.gmra.mrb[30].mxu1 %vm142_vm1, %v1866_v22  ;;  %1737 = vrcp.f32 %v633_v49 }
 0x22b   :  { %v1738_v50 = vpop.eup %1737 }
 0x22c   :  { %v636_v51 = vmul.f32 0.98, %v1738_v50 }
 0x22e   :  { %v637_v52 = vadd.f32 0.01, %v636_v51 }
 0x230   :  { %v641_v53 = vrot.slane %v637_v52, %v1874_v28 }
 0x232   :  { %v642_v54 = vmul.f32 %v641_v53, %v1879_v30  ;;  %v643_v55 = vmul.f32 %v641_v53, %v1884_v31 }
 0x234   :  { %1508 = vmatprep.mubr.msk.f32.mxu0 %vm54_vm2, %v642_v54 }
 0x235   :  { %1509 = vmatmul.mubr.msk.f32.vlgmr.msra.gmra.mrb[18].mxu0 %vm54_vm2, %v643_v55 }
 0x236   :  { %1550 = vmatprep.mubr.msk.f32.mxu0 %vm54_vm2, %v642_v54 }
 0x2d8   :  { %v1493_v56 = vpop.f32.mrb[16].mxu1 }
 0x2d9   :  { %v624_v57 = vsub.f32 0.0, %v1493_v56  ;;  %v614_v58 = vpop.f32.mrb[17].mxu1 }
 0x2da   :  { %v623_v59 = vsub.f32 0.0, %v614_v58 }
 0x2db   :  { %1231 = vst.msk [vmem:[%s2149_s6 + $0x18] sm:$0x1] %vm343_vm5, %v624_v57 }
 0x2dc   :  { %1230 = vst.msk [vmem:[%s2149_s6 + $0x10] sm:$0xff] %vm341_vm6, %v623_v59  ;;  %v797_v60 = vpop.f32.mrb[18].mxu1 }
 0x2dd   :  { %v1517_v61 = vpop.f32.mrb[19].mxu1 }
 0x2e0   :  { %v802_v62 = vpop.f32.mrb[20].mxu1 }
 0x2e1   :  { %v1681_v63 = vpack.c.bf16 %v802_v62, %v797_v60  ;;  %v1520_v0 = vpop.f32.mrb[21].mxu1 }
 0x2e3   :  { %1682 = vmatprep.subr.bf16.mxu0 %v1681_v63 }
 0x2e4   :  { %v807_v1 = vpop.f32.mrb[22].mxu1  ;;  %1684 = vmatpush3.bf16.msra.mxu0 %v1681_v63 }
 0x2e5   :  { %v1523_v2 = vpop.f32.mrb[23].mxu1 }
 0x2e8   :  { %v812_v5 = vpop.f32.mrb[24].mxu1 }
 0x2e9   :  { %v1685_v8 = vpack.c.bf16 %v812_v5, %v807_v1  ;;  %v1526_v9 = vpop.f32.mrb[25].mxu1 }
 0x2eb   :  { %1686 = vmatprep.subr.bf16.mxu0 %v1685_v8 }
 0x2ec   :  { %v817_v10 = vpop.f32.mrb[26].mxu1  ;;  %1688 = vmatpush3.bf16.msra.mxu0 %v1685_v8 }
 0x2ed   :  { %v1529_v11 = vpop.f32.mrb[27].mxu1 }
 0x2f0   :  { %v822_v12 = vpop.f32.mrb[28].mxu1 }
 0x2f1   :  { %v1689_v13 = vpack.c.bf16 %v822_v12, %v817_v10  ;;  %v1532_v14 = vpop.f32.mrb[29].mxu1 }
 0x2f3   :  { %1690 = vmatprep.subr.bf16.mxu0 %v1689_v13 }
 0x2f4   :  { %1692 = vmatpush3.bf16.msra.mxu0 %v1689_v13  ;;  %v827_v23 = vpop.f32.mrb[30].mxu1 }
 0x2f5   :  { %v1535_v24 = vpop.f32.mrb[31].mxu1  ;;  %1548 = vmatprep.subr.mxu0 %v827_v23 }
 0x2f8   :  { %1549 = vmatpush3.msra.mxu0 %v827_v23 }
 0x2f9   :  { %1551 = vmatmul.mubr.msk.f32.vlgmr.msra.gmra.mrb[20].mxu0 %vm54_vm2, %v643_v55  ;;  %1705 = vmatprep.subr.bf16.mxu0 %v1743_v3  ;;  %v911_v3 = vld [vmem:[%s2144_s0 + $0x3] sm:$0x1] }
 0x2fa   :  { %1707 = vmatpush3.bf16.msra.mxu0 %v1706_v25  ;;  %1574 = vmatprep.mubr.msk.f32.mxu0 %vm1744_vm0, %v1745_v6 }
 0x2fd   :  { %1575 = vmatmul.mubr.msk.f32.vlgmr.msra.gmra.mrb[22].mxu0 %vm142_vm1, %v1899_v35 }
 0x2fe   :  { %1577 = vmatprep.mubr.msk.f32.mxu0 %vm1744_vm0, %v1745_v6 }
 0x301   :  { %1578 = vmatmul.mubr.msk.f32.gmra.mrb[24].mxu0 %vm142_vm1, %v1908_v36 }
 0x302   :  { %1580 = vmatprep.mubr.msk.f32.mxu0 %vm1744_vm0, %v1745_v6 }
 0x305   :  { %1581 = vmatmul.mubr.msk.f32.gmra.mrb[26].mxu0 %vm142_vm1, %v1917_v37 }
 0x306   :  { %1583 = vmatprep.mubr.msk.f32.mxu0 %vm1744_vm0, %v1745_v6 }
 0x308   :  { %v1510_v36 = vpop.f32.mrb[18].mxu0 }
 0x309   :  { %1584 = vmatmul.mubr.msk.f32.gmra.mrb[28].mxu0 %vm142_vm1, %v1823_v17  ;;  %v1250_v17 = vmul.f32 -0.01, %v911_v3  ;;  %1236 = vst.msk [vmem:[%s2148_s5 + $0x28] sm:$0x1] %vm138_vm3, %v1510_v36 }
 0x30a   :  { %1586 = vmatprep.mubr.msk.f32.mxu0 %vm1744_vm0, %v1745_v6 }
 0x30b   :  { %v914_v35 = vmul.f32 1.442695, %v1250_v17 }
 0x30d   :  { %1587 = vmatmul.mubr.msk.f32.gmra.mrb[30].mxu0 %vm142_vm1, %v1840_v19  ;;  %1739 = vpow2.f32 %v914_v35  ;;  %v716_v19 = vpop.f32.mrb[19].mxu0 }
 0x30e   :  { %1589 = vmatprep.mubr.msk.f32.mxu0 %vm1744_vm0, %v1745_v6  ;;  %1235 = vst.msk [vmem:[%s2148_s5 + $0x20] sm:$0xff] %vm136_vm4, %v716_v19 }
 0x311   :  { %1590 = vmatmul.mubr.msk.f32.gmra.mrb[32].mxu0 %vm142_vm1, %v1853_v20 }
 0x312   :  { %1592 = vmatprep.mubr.msk.f32.mxu0 %vm1744_vm0, %v1745_v6 }
 0x315   :  { %1593 = vmatmul.mubr.msk.f32.gmra.mrb[34].mxu0 %vm142_vm1, %v1866_v22 }
 0x317   :  { %v1740_v6 = vpop.eup %1739 }
 0x318   :  { %v916_v20 = vadd.f32 1.0, %v1740_v6 }
 0x31a   :  { %1741 = vrcp.f32 %v916_v20 }
 0x324   :  { %v1742_v22 = vpop.eup %1741 }
 0x325   :  { %v919_v37 = vmul.f32 0.98, %v1742_v22 }
 0x327   :  { %v920_v26 = vadd.f32 0.01, %v919_v37 }
 0x329   :  { %v924_v27 = vrot.slane %v920_v26, %v1874_v28 }
 0x32b   :  { %v925_v29 = vmul.f32 %v924_v27, %v1879_v30  ;;  %v926_v32 = vmul.f32 %v924_v27, %v1884_v31 }
 0x32d   :  { %1567 = vmatprep.mubr.msk.f32.mxu1 %vm54_vm2, %v925_v29 }
 0x32e   :  { %1568 = vmatmul.mubr.msk.f32.vlgmr.msra.gmra.mrb[32].mxu1 %vm54_vm2, %v926_v32 }
 0x32f   :  { %1609 = vmatprep.mubr.msk.f32.mxu1 %vm54_vm2, %v925_v29 }
 0x3cc   :  { %v1552_v33 = vpop.f32.mrb[20].mxu0 }
 0x3cd   :  { %v907_v34 = vsub.f32 0.0, %v1552_v33  ;;  %v897_v38 = vpop.f32.mrb[21].mxu0 }
 0x3ce   :  { %v906_v39 = vsub.f32 0.0, %v897_v38 }
 0x3cf   :  { %1249 = vst.msk [vmem:[%s2149_s6 + $0x28] sm:$0x1] %vm343_vm5, %v907_v34 }
 0x3d0   :  { %1248 = vst.msk [vmem:[%s2149_s6 + $0x20] sm:$0xff] %vm341_vm6, %v906_v39  ;;  %v1080_v28 = vpop.f32.mrb[22].mxu0 }
 0x3d1   :  { %v1576_v30 = vpop.f32.mrb[23].mxu0 }
 0x3d4   :  { %v1085_v31 = vpop.f32.mrb[24].mxu0 }
 0x3d5   :  { %v1708_v40 = vpack.c.bf16 %v1085_v31, %v1080_v28  ;;  %v1579_v41 = vpop.f32.mrb[25].mxu0 }
 0x3d7   :  { %1709 = vmatprep.subr.bf16.mxu1 %v1708_v40 }
 0x3d8   :  { %1711 = vmatpush3.bf16.msra.mxu1 %v1708_v40  ;;  %v1090_v42 = vpop.f32.mrb[26].mxu0 }
 0x3d9   :  { %v1582_v43 = vpop.f32.mrb[27].mxu0 }
 0x3dc   :  { %v1095_v44 = vpop.f32.mrb[28].mxu0 }
 0x3dd   :  { %v1712_v45 = vpack.c.bf16 %v1095_v44, %v1090_v42  ;;  %v1585_v46 = vpop.f32.mrb[29].mxu0 }
 0x3df   :  { %1713 = vmatprep.subr.bf16.mxu1 %v1712_v45 }
 0x3e0   :  { %1715 = vmatpush3.bf16.msra.mxu1 %v1712_v45  ;;  %v1100_v47 = vpop.f32.mrb[30].mxu0 }
 0x3e1   :  { %v1588_v48 = vpop.f32.mrb[31].mxu0 }
 0x3e4   :  { %v1105_v4 = vpop.f32.mrb[32].mxu0 }
 0x3e5   :  { %v1716_v7 = vpack.c.bf16 %v1105_v4, %v1100_v47  ;;  %v1591_v15 = vpop.f32.mrb[33].mxu0 }
 0x3e7   :  { %1717 = vmatprep.subr.bf16.mxu1 %v1716_v7 }
 0x3e8   :  { %1719 = vmatpush3.bf16.msra.mxu1 %v1716_v7  ;;  %v1110_v18 = vpop.f32.mrb[34].mxu0 }
 0x3e9   :  { %v1594_v49 = vpop.f32.mrb[35].mxu0  ;;  %1607 = vmatprep.subr.mxu1 %v1110_v18 }
 0x3ec   :  { %1608 = vmatpush3.msra.mxu1 %v1110_v18 }
 0x3ed   :  { %1610 = vmatmul.mubr.msk.f32.vlgmr.msra.gmra.mrb[34].mxu1 %vm54_vm2, %v926_v32 }
 0x401   :  { %v1569_v50 = vpop.f32.mrb[32].mxu1 }
 0x402   :  { %1254 = vst.msk [vmem:[%s2148_s5 + $0x38] sm:$0x1] %vm138_vm3, %v1569_v50  ;;  %v999_v51 = vpop.f32.mrb[33].mxu1 }
 0x403   :  { %1253 = vst.msk [vmem:[%s2148_s5 + $0x30] sm:$0xff] %vm136_vm4, %v999_v51 }
 0x4c0   :  { %v1611_v52 = vpop.f32.mrb[34].mxu1 }
 0x4c1   :  { %v1190_v53 = vsub.f32 0.0, %v1611_v52  ;;  %v1180_v54 = vpop.f32.mrb[35].mxu1 }
 0x4c2   :  { %v1189_v55 = vsub.f32 0.0, %v1180_v54 }
 0x4c3   :  { %1267 = vst.msk [vmem:[%s2149_s6 + $0x38] sm:$0x1] %vm343_vm5, %v1190_v53 }
 0x4c4   :  { %1266 = vst.msk [vmem:[%s2149_s6 + $0x30] sm:$0xff] %vm341_vm6, %v1189_v55 }

// kernel: _lambda_.3
= control target key start
LH: loop header
LB: loop body
LE: loop exit
PB: predicated region body
PF: predicated region fallthrough
CT: control target
= control target key end

     0   :  { %11 = vsyncpa [#allocation3], 0  ;;  %s4195_s0 = inlined_call_operand.vmem [shape: f32[2,2,1024], index: 0, kind: input, shape index: {}]   ;;  %s4196_s1 = inlined_call_operand.vmem [shape: s32[2,1,1024], index: 1, kind: input, shape index: {}]   ;;  %s4197_s2 = inlined_call_operand.vmem [shape: f32[2,18,32], index: 2, kind: input, shape index: {}]   ;;  %s4198_s3 = inlined_call_operand.vmem [shape: f32[2,1,1024], index: 3, kind: input, shape index: {}]   ;;  %s4199_s4 = inlined_call_operand.hbm [shape: f32[2,2,1024], index: 4, kind: output, shape index: {0}]   ;;  %s4200_s5 = inlined_call_operand.vmem [shape: f32[2,4,1024], index: 5, kind: output, shape index: {1}]  }
   0x1   :  { %13 = vsyncpa [#allocation3 + $0x1], 0  ;;  %s3198_s18 = smov 0   ;;  %s3200_s19 = smov 0  }
   0x2   :  { %s3202_s20 = smov 0   ;;  %s3204_s21 = smov 0  }
   0x3   :  { %s3206_s22 = smov 0   ;;  %s3208_s23 = smov 0  }
   0x4 LB: > { %s2870_s24 = sadd.s32 4294967295, %s3162_s23   ;;  %s2871_s25 = sadd.s32 4294967294, %s3162_s23   ;;  %s3162_s23 = sphi %s3208_s23, %s19_s23   ;;  %s3158_s22 = sphi %s3206_s22, %s4316_s22   ;;  %s3154_s21 = sphi %s3204_s21, %s4315_s21   ;;  %s3150_s20 = sphi %s3202_s20, %s4314_s20   ;;  %s3146_s19 = sphi %s3200_s19, %s4313_s19   ;;  %s3142_s18 = sphi %s3198_s18, %s4312_s18  }
   0x5   : > { %s31_s26 = sadd.s32 1, %s3158_s22  ;;  %s150_s27 = sadd.s32 1, %s3150_s20 }
   0x6   : > { %p33_p0 = scmp.ge.s32.totalorder %s31_s26, 2  ;;  %p160_p1 = scmp.ne.s32.totalorder %s3150_s20, %s3146_s19 }
   0x7   : > { %p161_p2 = scmp.eq.s32.totalorder %s2870_s24, 1  ;;  %p166_p3 = scmp.ne.s32.totalorder %s3146_s19, %s3142_s18 }
   0x8   : > { %s4318_s26 = smov (%p33_p0, %s31_s26), 0  ;;  %p167_p5 = scmp.eq.s32.totalorder %s2871_s25, 1 }
   0x9   : > { %p3238_p4 = por %p161_p2, %p160_p1  ;;  %s145_s29 = ssub.s32 %s3158_s22, %s4318_s26 }
   0xa   : > { %p2874_p6 = scmp.ge.s32.totalorder %s3162_s23, 1  ;;  %p148_p7 = scmp.eq.s32.totalorder %s145_s29, 0 }
   0xb   : > { %p3245_p8 = por %p167_p5, %p166_p3  ;;  %p258_p9 = scmp.lt.s32.totalorder %s3162_s23, 3 }
   0xc   : > { %s3251_s6 = scalar_select %p148_p7, %s3150_s20, %s150_s27  }
   0xd   : > { %p259_p10 = pnand %p2874_p6, %p258_p9 }
   0xf   : > { %262 = sbr.rel (%p259_p10) target bundleno = 523 (0x20b), region = 36 }
  0x16   : > { %p321_p11 = scmp.lt.s32.totalorder %s3154_s21, 1  ;;  %v365_v0 = vlaneseq  ;;  %v3164_v1 = vmov 0.0   ;;  %v3165_v17 = vmov 1.0|1.0   ;;  %v3166_v30 = vmov 1983009808  }
  0x17   : > { %575 = vmatprep.mubr.f32.mxu0 %v3164_v1  ;;  %658 = vmatprep.mubr.f32.mxu1 %v3164_v1  ;;  %v857_v31 = vunpack.c.l.s4 %v3166_v30  ;;  %s2972_s14 = sshll.u32 %s3154_s21, 8  ;;  %s3167_s29 = smov [#allocation2]  }
  0x18   : > { %s3257_s7 = scalar_select %p321_p11, %s3154_s21, 1  ;;  %v3259_v2 = vshrl.u32 %v365_v0, 7 }
  0x19   : > { %v858_v34 = vunpack.c.0.s8 %v857_v31 }
  0x1a   : > { %s2878_s8 = sshll.u32 %s3257_s7, 3  ;;  %v3263_v3 = vsub.s32 1, %v3259_v2  ;;  %v3266_v4 = vsub.s32 3, %v3259_v2  ;;  %v3269_v5 = vsub.s32 0, %v3259_v2  ;;  %v3277_v6 = vadd.s32 8, %v3259_v2  ;;  %s3005_s12 = smul.u32 24, %s3257_s7 }
  0x1b   : > { %s337_s11 = scalar_lea.vmem %s4196_s1, %s2878_s8  ;;  %v3280_v7 = vsub.s32 2, %v3259_v2  ;;  %v3285_v11 = vsub.s32 5, %v3259_v2  ;;  %v3288_v12 = vsub.s32 7, %v3259_v2  ;;  %v3293_v15 = vadd.s32 16, %v3259_v2  ;;  %s351_s24 = scalar_lea.vmem %s4198_s3, %s2878_s8 }
  0x1c   : > { %v364_v8 = vld [vmem:[%s337_s11] sm:$0xff]  ;;  %v3296_v16 = vadd.s32 24, %v3259_v2  ;;  %v3309_v20 = vsub.s32 4, %v3259_v2  ;;  %v3312_v21 = vsub.s32 6, %v3259_v2  ;;  %s3330_s15 = scalar_lea.vmem %s4197_s2, %s3005_s12  ;;  %v3429_v42 = vsub.s32 %v858_v34, %v3259_v2  ;;  %s2970_s25 = sshll.u32 %s3257_s7, 4 }
  0x1d   : > { %v377_v9 = vrot.slane %v364_v8, %v3263_v3  ;;  %v385_v10 = vrot.slane %v364_v8, %v3266_v4  ;;  %4245 = vst [vmem:[#allocation5_spill] sm:$0xff] %v3285_v11  ;;  %4246 = vst [vmem:[#allocation6_spill] sm:$0xff] %v3288_v12  ;;  %v373_v13 = vrot.slane %v364_v8, %v3269_v5  ;;  %v498_v24 = vld [vmem:[%s3330_s15] sm:$0xff]  ;;  %v499_v25 = vld [vmem:[%s3330_s15 + $0x8] sm:$0xff]  ;;  %s3497_s8 = scalar_lea.vmem %s4195_s0, %s2970_s25  ;;  %s2971_s9 = sshll.u32 %s3257_s7, 5 }
  0x1e   : > { %v381_v14 = vrot.slane %v364_v8, %v3280_v7  ;;  %v393_v18 = vrot.slane %v364_v8, %v3285_v11  ;;  %v401_v19 = vrot.slane %v364_v8, %v3288_v12  ;;  %v389_v22 = vrot.slane %v364_v8, %v3309_v20  ;;  %v500_v26 = vld [vmem:[%s3330_s15 + $0x10] sm:$0x3]  ;;  %v845_v27 = vld [vmem:[%s351_s24] sm:$0xff]  ;;  %4253 = vst [vmem:[#allocation13_spill] sm:$0xff] %v3429_v42  ;;  %s3773_s7 = scalar_lea.vmem %s4200_s5, %s2971_s9  ;;  %s306_s12 = sand.u32 1, %s3146_s19  }
  0x1f   : > { %vm403_vm0 = vcmp.eq.s32.totalorder %v377_v9, %v3259_v2  ;;  %vm411_vm1 = vcmp.eq.s32.totalorder %v377_v9, %v3277_v6  ;;  %vm405_vm3 = vcmp.eq.s32.totalorder %v385_v10, %v3259_v2  ;;  %vm413_vm4 = vcmp.eq.s32.totalorder %v385_v10, %v3277_v6  ;;  %s2875_s13 = sshll.u32 %s306_s12, 4  ;;  %s4133_s25 = scalar_lea.hbm %s4199_s4, %s2972_s14 }
  0x20   : > { %vm2973_vm2 = vmpackc.low %vm411_vm1, %vm403_vm0  ;;  %vm402_vm5 = vcmp.eq.s32.totalorder %v373_v13, %v3259_v2  ;;  %vm410_vm6 = vcmp.eq.s32.totalorder %v373_v13, %v3277_v6  ;;  %vm404_vm9 = vcmp.eq.s32.totalorder %v381_v14, %v3259_v2  ;;  %vm412_vm10 = vcmp.eq.s32.totalorder %v381_v14, %v3277_v6  ;;  %s308_s15 = scalar_lea.vmem [#allocation2], %s2875_s13  ;;  %s2686_s21 = scalar_lea.sflag [#allocation3], %s306_s12 }
  0x21   : > { %2974 = vmatprep.subr.msk.bf16.mxu0 %vm2973_vm2, %v3165_v17  ;;  %vm2981_vm7 = vmpackc.low %vm413_vm4, %vm405_vm3  ;;  %vm419_vm11 = vcmp.eq.s32.totalorder %v377_v9, %v3293_v15  ;;  %vm427_vm12 = vcmp.eq.s32.totalorder %v377_v9, %v3296_v16  ;;  %vm421_vm14 = vcmp.eq.s32.totalorder %v385_v10, %v3293_v15  ;;  %vm429_vm15 = vcmp.eq.s32.totalorder %v385_v10, %v3296_v16  ;;  %s2711_s16 = sshll.u32 %s308_s15, 4  ;;  %s4135_s16 = int_to_ptr.vmem [resolvable:$true] %s2711_s16 }
  0x22   : > { %2982 = vmatprep.subr.msk.bf16.mxu1 %vm2981_vm7, %v3165_v17  ;;  %vm2975_vm8 = vmpackc.low %vm410_vm6, %vm402_vm5  ;;  %vm418_vm0 = vcmp.eq.s32.totalorder %v373_v13, %v3293_v15  ;;  %vm426_vm1 = vcmp.eq.s32.totalorder %v373_v13, %v3296_v16  ;;  %vm420_vm3 = vcmp.eq.s32.totalorder %v381_v14, %v3293_v15  ;;  %vm428_vm4 = vcmp.eq.s32.totalorder %v381_v14, %v3296_v16  ;;  %s3084_s27 = scalar_lea.vmem %s4135_s16, 256 }
  0x23   : > { %2976 = vmatpush1.bf16.msk.msra.mxu0 %vm2975_vm8, %v3165_v17  ;;  %vm2983_vm13 = vmpackc.low %vm412_vm10, %vm404_vm9  ;;  %vm407_vm6 = vcmp.eq.s32.totalorder %v393_v18, %v3259_v2  ;;  %vm415_vm7 = vcmp.eq.s32.totalorder %v393_v18, %v3277_v6  ;;  %vm409_vm9 = vcmp.eq.s32.totalorder %v401_v19, %v3259_v2  ;;  %vm417_vm10 = vcmp.eq.s32.totalorder %v401_v19, %v3277_v6  ;;  %p3085_p12 = scmp.ne.s32.totalorder %s4135_s16, %s3084_s27 }
  0x24   : > { %2984 = vmatpush1.bf16.msk.msra.mxu1 %vm2983_vm13, %v3165_v17  ;;  %vm2977_vm2 = vmpackc.low %vm427_vm12, %vm419_vm11  ;;  %v397_v23 = vrot.slane %v364_v8, %v3312_v21  ;;  %vm501_vm12 = vcmask 261120   ;;  %v1346_v28 = vsub.f32 1.0, %v845_v27  ;;  %v1348_v29 = vadd.f32 1.0, %v845_v27 }
  0x25   : > { %2978 = vmatprep.subr.msk.bf16.mxu0 %vm2977_vm2, %v3165_v17  ;;  %vm2985_vm5 = vmpackc.low %vm429_vm15, %vm421_vm14  ;;  %vm406_vm14 = vcmp.eq.s32.totalorder %v389_v22, %v3259_v2  ;;  %vm414_vm15 = vcmp.eq.s32.totalorder %v389_v22, %v3277_v6  ;;  %p3086_p13 = pnand %p3085_p12, %p3238_p4 }
  0x26   : > { %2986 = vmatprep.subr.msk.bf16.mxu1 %vm2985_vm5, %v3165_v17  ;;  %vm2979_vm8 = vmpackc.low %vm426_vm1, %vm418_vm0  ;;  %vm408_vm0 = vcmp.eq.s32.totalorder %v397_v23, %v3259_v2  ;;  %vm416_vm1 = vcmp.eq.s32.totalorder %v397_v23, %v3277_v6  ;;  %v3398_v32 = vmul.f32 0.5, %v1346_v28  ;;  %v3400_v33 = vmul.f32 0.5, %v1348_v29 }
  0x27   : > { %2980 = vmatpush1.bf16.msk.msra.mxu0 %vm2979_vm8, %v3165_v17  ;;  %vm2987_vm11 = vmpackc.low %vm428_vm4, %vm420_vm3  ;;  %vm423_vm3 = vcmp.eq.s32.totalorder %v393_v18, %v3293_v15  ;;  %vm431_vm4 = vcmp.eq.s32.totalorder %v393_v18, %v3296_v16  ;;  %p3087_p0 = pneg %p3086_p13 }
  0x28   : > { %2988 = vmatpush1.bf16.msk.msra.mxu1 %vm2987_vm11, %v3165_v17  ;;  %vm2989_vm13 = vmpackc.low %vm415_vm7, %vm407_vm6  ;;  %vm425_vm6 = vcmp.eq.s32.totalorder %v401_v19, %v3293_v15  ;;  %vm433_vm7 = vcmp.eq.s32.totalorder %v401_v19, %v3296_v16  ;;  %4247 = vst [vmem:[#allocation7_spill] sm:$0xff] %v3398_v32  ;;  %v3404_v35 = vrot.slane %v3398_v32, %v3263_v3 }
  0x29   : > { %2990 = vmatprep.subr.msk.bf16.mxu0 %vm2989_vm13, %v3165_v17  ;;  %vm2997_vm2 = vmpackc.low %vm417_vm10, %vm409_vm9  ;;  %vm422_vm9 = vcmp.eq.s32.totalorder %v389_v22, %v3293_v15  ;;  %vm430_vm10 = vcmp.eq.s32.totalorder %v389_v22, %v3296_v16  ;;  %vm424_vm13 = vcmp.eq.s32.totalorder %v397_v23, %v3293_v15  ;;  %4248 = vst [vmem:[#allocation8_spill] sm:$0xff] %v3400_v33  ;;  %v843_v22 = vld [vmem:[%s3497_s8] sm:$0xff] }
  0x2a   : > { %2923 = vmatmul.mubr.msk.f32.vlgmr.msra.gmra.mrb[0].mxu0 %vm501_vm12, %v498_v24  ;;  %2998 = vmatprep.subr.msk.bf16.mxu1 %vm2997_vm2, %v3165_v17  ;;  %vm2991_vm5 = vmpackc.low %vm414_vm15, %vm406_vm14  ;;  %vm432_vm14 = vcmp.eq.s32.totalorder %v397_v23, %v3296_v16  ;;  %v3408_v36 = vrot.slane %v3400_v33, %v3263_v3  ;;  %v3412_v37 = vrot.slane %v3398_v32, %v3266_v4  ;;  %vm2647_vm2 = vcmask 1041408  }
  0x2b   : > { %2934 = vmatmul.mubr.msk.f32.vlgmr.msra.gmra.mrb[0].mxu1 %vm501_vm12, %v498_v24  ;;  %2992 = vmatpush1.bf16.msk.msra.mxu0 %vm2991_vm5, %v3165_v17  ;;  %vm2999_vm8 = vmpackc.low %vm416_vm1, %vm408_vm0  ;;  %v3416_v38 = vrot.slane %v3400_v33, %v3266_v4  ;;  %v3420_v39 = vrot.slane %v3398_v32, %v3285_v11  ;;  %v3424_v40 = vrot.slane %v3398_v32, %v3288_v12 }
  0x2c   : > { %3000 = vmatpush1.bf16.msk.msra.mxu1 %vm2999_vm8, %v3165_v17  ;;  %581 = vmatprep.mubr.f32.mxu0 %v3164_v1  ;;  %vm2993_vm11 = vmpackc.low %vm431_vm4, %vm423_vm3  ;;  %4249 = vst [vmem:[#allocation9_spill] sm:$0xff] %v3412_v37  ;;  %v3433_v43 = vrot.slane %v3398_v32, %v3269_v5  ;;  %v3437_v44 = vrot.slane %v3400_v33, %v3269_v5  ;;  %vm2656_vm3 = vcmask 1042432  }
  0x2d   : > { %664 = vmatprep.mubr.f32.mxu1 %v3164_v1  ;;  %2994 = vmatprep.subr.msk.bf16.mxu0 %vm2993_vm11, %v3165_v17  ;;  %vm3001_vm15 = vmpackc.low %vm433_vm7, %vm425_vm6  ;;  %4250 = vst [vmem:[#allocation10_spill] sm:$0xff] %v3416_v38  ;;  %v3447_v49 = vrot.slane %v3398_v32, %v3280_v7  ;;  %v3451_v50 = vrot.slane %v3400_v33, %v3280_v7 }
  0x2e   : > { %2924 = vmatmul.mubr.msk.f32.gmra.mrb[2].mxu0 %vm501_vm12, %v499_v25  ;;  %3002 = vmatprep.subr.msk.bf16.mxu1 %vm3001_vm15, %v3165_v17  ;;  %vm2995_vm0 = vmpackc.low %vm430_vm10, %vm422_vm9  ;;  %4251 = vst [vmem:[#allocation11_spill] sm:$0xff] %v3420_v39 }
  0x2f   : > { %2935 = vmatmul.mubr.msk.f32.gmra.mrb[2].mxu1 %vm501_vm12, %v499_v25  ;;  %587 = vmatprep.mubr.f32.mxu0 %v3164_v1  ;;  %vm3003_vm1 = vmpackc.low %vm432_vm14, %vm424_vm13  ;;  %4252 = vst [vmem:[#allocation12_spill] sm:$0xff] %v3424_v40 }
  0x30   : > { %670 = vmatprep.mubr.f32.mxu1 %v3164_v1  ;;  %2996 = vmatpush1.bf16.msk.msra.mxu0 %vm2995_vm0, %v3165_v17 }
  0x31   : > { %3004 = vmatpush1.bf16.msk.msra.mxu1 %vm3003_vm1, %v3165_v17 }
  0x32   : > { %2925 = vmatmul.mubr.msk.f32.gmra.mrb[4].mxu0 %vm501_vm12, %v500_v26 }
  0x33   : > { %2936 = vmatmul.mubr.msk.f32.gmra.mrb[4].mxu1 %vm501_vm12, %v500_v26  ;;  %741 = vmatprep.mubr.f32.mxu0 %v3164_v1 }
  0x34   : > { %824 = vmatprep.mubr.f32.mxu1 %v3164_v1 }
  0x36   : > { %2945 = vmatmul.mubr.msk.f32.vlgmr.msra.gmra.mrb[6].mxu0 %vm501_vm12, %v498_v24 }
  0x37   : > { %2956 = vmatmul.mubr.msk.f32.vlgmr.msra.gmra.mrb[6].mxu1 %vm501_vm12, %v498_v24  ;;  %747 = vmatprep.mubr.f32.mxu0 %v3164_v1 }
  0x38   : > { %830 = vmatprep.mubr.f32.mxu1 %v3164_v1 }
  0x3a   : > { %2946 = vmatmul.mubr.msk.f32.gmra.mrb[8].mxu0 %vm501_vm12, %v499_v25 }
  0x3b   : > { %2957 = vmatmul.mubr.msk.f32.gmra.mrb[8].mxu1 %vm501_vm12, %v499_v25  ;;  %753 = vmatprep.mubr.f32.mxu0 %v3164_v1 }
  0x3c   : > { %836 = vmatprep.mubr.f32.mxu1 %v3164_v1 }
  0x3e   : > { %2947 = vmatmul.mubr.msk.f32.gmra.mrb[10].mxu0 %vm501_vm12, %v500_v26 }
  0x3f   : > { %2958 = vmatmul.mubr.msk.f32.gmra.mrb[10].mxu1 %vm501_vm12, %v500_v26  ;;  %vm2544_vm12 = vcmask 1040384  }
  0xfd   : > { %v3426_v41 = vpop.f32.mrb[0].mxu0 }
  0xfe   : > { %v1480_v45 = vrot.slane %v3426_v41, 6  ;;  %v1504_v46 = vrot.slane %v3426_v41, 4  ;;  %v3441_v47 = vpop.f32.mrb[0].mxu1  ;;  %v3443_v48 = vpop.f32.mrb[1].mxu0 }
  0xff   : > { %v4206_v51 = vrot.slane %v3441_v47, 6  ;;  %v4205_v52 = vrot.slane %v3441_v47, 4  ;;  %v854_v53 = vcombine.low %v3426_v41, %v3443_v48  ;;  %v892_v54 = vcombine.high %v3426_v41, %v3443_v48  ;;  %v3460_v55 = vpop.f32.mrb[1].mxu1 }
 0x100   : > { %v3463_v56 = vsub.f32 %v3426_v41, %v1480_v45  ;;  %v3466_v57 = vsub.f32 %v3426_v41, %v1504_v46  ;;  %v4204_v58 = vrot.slane %v3443_v48, 6  ;;  %v4203_v59 = vrot.slane %v3443_v48, 4 }
 0x101   : > { %v3473_v60 = vsub.f32 %v3441_v47, %v4206_v51  ;;  %v3478_v61 = vsub.f32 %v3441_v47, %v4205_v52  ;;  %v862_v62 = vrot.slane %v854_v53, %v3429_v42  ;;  %v900_v63 = vrot.slane %v892_v54, %v3429_v42  ;;  %v3482_v0 = vpop.f32.mrb[2].mxu0 }
 0x102   : > { %v3487_v1 = vsub.f32 %v3443_v48, %v4204_v58  ;;  %v3492_v2 = vsub.f32 %v3443_v48, %v4203_v59  ;;  %v855_v3 = vcombine.low %v3441_v47, %v3460_v55  ;;  %v893_v4 = vcombine.high %v3441_v47, %v3460_v55  ;;  %v3503_v6 = vpop.f32.mrb[2].mxu1  ;;  %v3505_v8 = vpop.f32.mrb[3].mxu0 }
 0x103   : > { %v4202_v9 = vrot.slane %v3460_v55, 6  ;;  %v4201_v10 = vrot.slane %v3460_v55, 4  ;;  %v3509_v13 = vpop.f32.mrb[3].mxu1  ;;  %v1536_v14 = vrot.slane %v3466_v57, 3  ;;  %v1568_v15 = vrot.slane %v3463_v56, 7 }
 0x104   : > { %v869_v16 = vrot.slane %v855_v3, %v3429_v42  ;;  %v907_v17 = vrot.slane %v893_v4, %v3429_v42  ;;  %v1640_v18 = vsub.f32 %v3482_v0, %v1480_v45  ;;  %v1648_v19 = vsub.f32 %v3482_v0, %v1504_v46 }
 0x105   : > { %v3521_v23 = vsub.f32 %v3460_v55, %v4202_v9  ;;  %v3526_v24 = vsub.f32 %v3460_v55, %v4201_v10  ;;  %v3528_v25 = vpop.f32.mrb[4].mxu0  ;;  %v1552_v26 = vmul.f32 %v1536_v14, %v3463_v56  ;;  %v1584_v27 = vmul.f32 %v1568_v15, %v3466_v57 }
 0x106   : > { %v870_v28 = vcombine.high %v862_v62, %v869_v16  ;;  %v908_v29 = vcombine.low %v900_v63, %v907_v17  ;;  %v958_v30 = vcombine.low %v862_v62, %v869_v16  ;;  %v4211_v31 = vrot.slane %v3466_v57, 5  ;;  %v3533_v34 = vpop.f32.mrb[4].mxu1  ;;  %v3535_v45 = vpop.f32.mrb[5].mxu0 }
 0x107   : > { %4254 = vst [vmem:[#allocation14_spill] sm:$0xff] %v3521_v23  ;;  %4255 = vst [vmem:[#allocation15_spill] sm:$0xff] %v3526_v24  ;;  %v1600_v46 = vrot.slane %v1584_v27, 2  ;;  %v4210_v53 = vrot.slane %v3463_v56, 1  ;;  %v1768_v54 = vmul.f32 %v1648_v19, %v3463_v56  ;;  %v1776_v3 = vrot.slane %v3466_v57, 4  ;;  %v3540_v4 = vpop.f32.mrb[5].mxu1 }
 0x108   : > { %v890_v10 = vsub.f32 %v843_v22, %v870_v28  ;;  %v928_v9 = vsub.f32 %v843_v22, %v908_v29  ;;  %v962_v59 = vsub.f32 %v843_v22, %v958_v30  ;;  %v1672_v62 = vmul.f32 %v4211_v31, %v1640_v18 }
 0x109   : > { %v1616_v63 = vsub.f32 %v1552_v26, %v1600_v46  ;;  %v1696_v16 = vmul.f32 %v4210_v53, %v1648_v19  ;;  %v1792_v17 = vmul.f32 %v1776_v3, %v1640_v18  ;;  %v1848_v27 = vrot.slane %v1768_v54, 2  ;;  %v3546_v58 = vpop.f32.mrb[6].mxu0 }
 0x10a   : > { %4256 = vst [vmem:[#allocation16_spill] sm:$0xff] %v3546_v58  ;;  %v932_v52 = vrot.slane %v928_v9, 7  ;;  %v984_v51 = vrot.slane %v890_v10, 7  ;;  %v1896_v40 = vmul.f32 %v1648_v19, %v1568_v15  ;;  %v1904_v12 = vmul.f32 %v1640_v18, %v1536_v14  ;;  %v3548_v39 = vpop.f32.mrb[6].mxu1  ;;  %v3550_v28 = vpop.f32.mrb[7].mxu0 }
 0x10b   : > { %4257 = vst [vmem:[#allocation17_spill] sm:$0xff] %v3548_v39  ;;  %4258 = vst [vmem:[#allocation18_spill] sm:$0xff] %v3550_v28  ;;  %3064 = vrcp.f32 %v1616_v63  ;;  %v1712_v22 = vrot.slane %v1696_v16, 2  ;;  %v1808_v29 = vrot.slane %v1792_v17, 6  ;;  %v3552_v30 = vsub.f32 %v1792_v17, %v1848_v27  ;;  %v3554_v26 = vpop.f32.mrb[7].mxu1 }
 0x10c   : > { %4259 = vst [vmem:[#allocation19_spill] sm:$0xff] %v3554_v26  ;;  %v933_v46 = vrot.slane %v932_v52, 2  ;;  %v942_v3 = vmul.f32 %v932_v52, %v890_v10  ;;  %v966_v53 = vmul.f32 %v962_v59, %v932_v52  ;;  %v985_v31 = vrot.slane %v984_v51, 2 }
 0x10d   : > { %v994_v11 = vmul.f32 %v984_v51, %v962_v59  ;;  %v1728_v9 = vsub.f32 %v1672_v62, %v1712_v22  ;;  %v1824_v33 = vsub.f32 %v1768_v54, %v1808_v29  ;;  %v1920_v15 = vrot.slane %v1904_v12, 6  ;;  %v3556_v14 = vpop.f32.mrb[8].mxu0 }
 0x10e   : > { %4260 = vst [vmem:[#allocation20_spill] sm:$0xff] %v3556_v14  ;;  %v938_v18 = vmul.f32 %v933_v46, %v890_v10  ;;  %v2959_v19 = vrot.slane %v942_v3, 9  ;;  %v964_v32 = vmul.f32 %v962_v59, %v933_v46  ;;  %v2961_v63 = vrot.slane %v966_v53, 9  ;;  %v3558_v16 = vpop.f32.mrb[8].mxu1  ;;  %v3560_v17 = vpop.f32.mrb[9].mxu0 }
 0x10f   : > { %4261 = vst [vmem:[#allocation21_spill] sm:$0xff] %v3558_v16  ;;  %4262 = vst [vmem:[#allocation22_spill] sm:$0xff] %v3560_v17  ;;  %v990_v27 = vmul.f32 %v985_v31, %v962_v59  ;;  %v2963_v26 = vrot.slane %v994_v11, 9  ;;  %v1936_v42 = vsub.f32 %v1896_v40, %v1920_v15  ;;  %v1976_v52 = vrot.slane %v3482_v0, 6  ;;  %v3563_v28 = vpop.f32.mrb[9].mxu1 }
 0x110   : > { %4263 = vst [vmem:[#allocation23_spill] sm:$0xff] %v3563_v28  ;;  %v952_v51 = vsub.f32 %v938_v18, %v2959_v19  ;;  %v976_v54 = vsub.f32 %v964_v32, %v2961_v63  ;;  %v2000_v12 = vrot.slane %v3482_v0, 4  ;;  %v2024_v10 = vrot.slane %v3466_v57, 7 }
 0x111   : > { %v1004_v62 = vsub.f32 %v990_v27, %v2963_v26  ;;  %v1992_v53 = vsub.f32 %v3482_v0, %v1976_v52  ;;  %v2048_v22 = vrot.slane %v3463_v56, 3  ;;  %v2128_v29 = vrot.slane %v3463_v56, 2  ;;  %v3570_v59 = vpop.f32.mrb[10].mxu0 }
 0x112   : > { %4264 = vst [vmem:[#allocation24_spill] sm:$0xff] %v3570_v59  ;;  %v954_v11 = vand.u32 2147483647, %v952_v51  ;;  %v978_v40 = vand.u32 2147483647, %v976_v54  ;;  %v2016_v31 = vsub.f32 %v3528_v25, %v2000_v12  ;;  %v2152_v46 = vrot.slane %v3466_v57, 6 }
 0x113   : > { %v1006_v32 = vand.u32 2147483647, %v1004_v62  ;;  %v2040_v3 = vmul.f32 %v2024_v10, %v1992_v53  ;;  %v4265_v15 = vrot.slane %v3466_v57, 5  ;;  %v3577_v19 = vpop.f32.mrb[10].mxu1  ;;  %v4267_v62 = vrot.slane %v3463_v56, 1 }
 0x114   : > { %4266 = vst [vmem:[#allocation25_spill] sm:$0xff] %v3577_v19  ;;  %v3579_v63 = vmul.f32 0.5, %v954_v11  ;;  %v3581_v27 = vmul.f32 0.5, %v978_v40  ;;  %v2064_v52 = vmul.f32 %v2048_v22, %v2016_v31  ;;  %v2144_v51 = vmul.f32 %v2128_v29, %v2016_v31 }
 0x115   : > { %v2280_v18 = vmul.f32 %v1992_v53, %v4265_v15  ;;  %v3065_v54 = vpop.eup %3064  ;;  %v3583_v28 = vmul.f32 0.5, %v1006_v32  ;;  %v2168_v12 = vmul.f32 %v2152_v46, %v1992_v53  ;;  %v2272_v10 = vmul.f32 %v2016_v31, %v4267_v62 }
 0x116   : > { %v1010_v57 = vadd.f32 %v3581_v27, %v3579_v63  ;;  %v1023_v15 = vrot.slane %v3579_v63, %v3269_v5  ;;  %v1073_v11 = vrot.slane %v3581_v27, %v3269_v5  ;;  %v1744_v40 = vrot.slane %v3065_v54, 2 }
 0x117   : > { %v2296_v17 = vrot.slane %v2280_v18, 6  ;;  %v1155_v22 = vrot.slane %v3583_v28, %v3269_v5  ;;  %v1832_v29 = vmul.f32 %v3065_v54, %v1824_v33  ;;  %v1872_v32 = vrot.slane %v3065_v54, 1 }
 0x118   : > { %v1944_v53 = vrot.slane %v3065_v54, 7  ;;  %v1012_v56 = vadd.f32 %v1010_v57, %v3583_v28  ;;  %v1060_v31 = vmul.f32 %v1023_v15, %v3426_v41  ;;  %v1110_v46 = vmul.f32 %v1073_v11, %v3482_v0 }
 0x119   : > { %v1282_v18 = vmul.f32 %v1023_v15, %v3482_v0  ;;  %v1192_v62 = vmul.f32 %v1155_v22, %v3482_v0  ;;  %v1298_v26 = vmul.f32 %v1155_v22, %v3528_v25  ;;  %v1760_v19 = vmul.f32 %v1744_v40, %v1728_v9 }
 0x11a   : > { %v1888_v16 = vmul.f32 %v1872_v32, %v3552_v30  ;;  %3066 = vrcp.f32 %v1012_v56  ;;  %v1126_v59 = vrot.slane %v1110_v46, 2  ;;  %v1960_v33 = vmul.f32 %v1944_v53, %v1936_v42 }
 0x11b   : > { %v2080_v14 = vrot.slane %v2064_v52, 2  ;;  %v1208_v39 = vrot.slane %v1192_v62, 4  ;;  %v1314_v58 = vrot.slane %v1298_v26, 4  ;;  %v2104_v57 = vrot.slane %v3065_v54, 4 }
 0x11c   : > { %v2184_v38 = vrot.slane %v2168_v12, 6  ;;  %v1142_v41 = vadd.f32 %v1126_v59, %v1060_v31  ;;  %v1290_v37 = vadd.f32 %v1282_v18, %v1126_v59  ;;  %v2224_v23 = vrot.slane %v2144_v51, 2 }
 0x11d   : > { %v2096_v11 = vsub.f32 %v2040_v3, %v2080_v14  ;;  %v2248_v24 = vrot.slane %v3065_v54, 3  ;;  %v2312_v0 = vsub.f32 %v2272_v10, %v2296_v17  ;;  %v2328_v25 = vmul.f32 %v1760_v19, %v3433_v43 }
 0x11e   : > { %v2200_v15 = vsub.f32 %v2144_v51, %v2184_v38  ;;  %v1224_v9 = vadd.f32 %v1208_v39, %v1142_v41  ;;  %v1330_v22 = vadd.f32 %v1314_v58, %v1290_v37  ;;  %v2240_v56 = vsub.f32 %v2168_v12, %v2224_v23 }
 0x11f   : > { %v2120_v30 = vmul.f32 %v2104_v57, %v2096_v11  ;;  %v2320_v52 = vmul.f32 %v2312_v0, %v1872_v32  ;;  %v2376_v26 = vmul.f32 %v1832_v29, %v3433_v43  ;;  %v2424_v53 = vmul.f32 %v1888_v16, %v3433_v43 }
 0x120   : > { %v2208_v42 = vmul.f32 %v2200_v15, %v1744_v40  ;;  %v2264_v59 = vmul.f32 %v2248_v24, %v2240_v56  ;;  %v2472_v38 = vmul.f32 %v1960_v33, %v3433_v43  ;;  %v1031_v39 = vrot.slane %v3579_v63, %v3309_v20 }
 0x121   : > { %v2336_v14 = vmul.f32 %v2120_v30, %v3437_v44  ;;  %v2480_v58 = vmul.f32 %v2320_v52, %v3437_v44  ;;  %v1081_v23 = vrot.slane %v3581_v27, %v3309_v20  ;;  %v1163_v16 = vrot.slane %v3583_v28, %v3309_v20 }
 0x122   : > { %v2384_v37 = vmul.f32 %v2208_v42, %v3437_v44  ;;  %v2432_v24 = vmul.f32 %v2264_v59, %v3437_v44  ;;  %v1062_v3 = vmul.f32 %v1031_v39, %v3441_v47  ;;  %v1284_v19 = vmul.f32 %v1031_v39, %v3503_v6 }
 0x123   : > { %v2352_v17 = vrot.slane %v2336_v14, 6  ;;  %v2496_v54 = vrot.slane %v2480_v58, 6  ;;  %v1112_v12 = vmul.f32 %v1081_v23, %v3503_v6  ;;  %v1194_v10 = vmul.f32 %v1163_v16, %v3503_v6 }
 0x124   : > { %v2400_v51 = vrot.slane %v2384_v37, 6  ;;  %v3620_v40 = vpop.eup %3066  ;;  %v2448_v32 = vrot.slane %v2432_v24, 6  ;;  %v1300_v31 = vmul.f32 %v1163_v16, %v3533_v34  ;;  %v4268_v46 = vrot.slane %v3478_v61, 3 }
 0x125   : > { %v2368_v29 = vadd.f32 %v2352_v17, %v2328_v25  ;;  %v1237_v62 = vrot.slane %v3620_v40, %v3269_v5  ;;  %v2512_v57 = vadd.f32 %v2496_v54, %v2472_v38  ;;  %v1128_v41 = vrot.slane %v1112_v12, 2 }
 0x126   : > { %v1554_v18 = vmul.f32 %v4268_v46, %v3473_v60  ;;  %v2416_v33 = vadd.f32 %v2400_v51, %v2376_v26  ;;  %v2464_v11 = vadd.f32 %v2448_v32, %v2424_v53  ;;  %v1210_v15 = vrot.slane %v1194_v10, 4 }
 0x127   : > { %v1245_v0 = vrot.slane %v3620_v40, %v3309_v20  ;;  %v1316_v30 = vrot.slane %v1300_v31, 4  ;;  %v1274_v25 = vmul.f32 %v1237_v62, %v1224_v9  ;;  %v1338_v56 = vmul.f32 %v1330_v22, %v1237_v62 }
 0x128   : > { %v2599_v42 = vrot.slane %v2416_v33, 1  ;;  %v1144_v52 = vadd.f32 %v1128_v41, %v1062_v3  ;;  %v2623_v59 = vrot.slane %v2464_v11, 7  ;;  %v1292_v14 = vadd.f32 %v1284_v19, %v1128_v41 }
 0x129   : > { %v1570_v39 = vrot.slane %v3473_v60, 7  ;;  %v4269_v37 = vrot.slane %v3441_v47, 6  ;;  %v1391_v38 = vmul.f32 %v3433_v43, %v1274_v25  ;;  %v1440_v53 = vmul.f32 %v3437_v44, %v1338_v56 }
 0x12a   : > { %v2639_v58 = vsel %vm2544_vm12, %v2368_v29, %v2599_v42  ;;  %v1226_v23 = vadd.f32 %v1210_v15, %v1144_v52  ;;  %v1332_v22 = vadd.f32 %v1316_v30, %v1292_v14  ;;  %v4270_v17 = vrot.slane %v3441_v47, 4  ;;  %v3657_v52 = vpop.f32.mrb[11].mxu0 }
 0x12b   : > { %v1642_v26 = vsub.f32 %v3503_v6, %v4269_v37  ;;  %v2648_v9 = vsel %vm2647_vm2, %v2639_v58, %v2623_v59  ;;  %v1586_v16 = vmul.f32 %v1570_v39, %v3478_v61  ;;  %v1456_v3 = vrot.slane %v1440_v53, 6 }
 0x12c   : > { %v1650_v24 = vsub.f32 %v3503_v6, %v4270_v17  ;;  %v3643_v19 = vsel %vm2656_vm3, %v2648_v9, %v2512_v57  ;;  %v1276_v51 = vmul.f32 %v1245_v0, %v1226_v23  ;;  %v1658_v43 = vrot.slane %v3478_v61, 5 }
 0x12d   : > { %v1340_v44 = vmul.f32 %v1332_v22, %v1245_v0  ;;  %v1602_v54 = vrot.slane %v1586_v16, 2  ;;  %v1682_v12 = vrot.slane %v3473_v60, 1  ;;  %v3648_v29 = vadd.f32 %v1456_v3, %v1391_v38 }
 0x12e   : > { %v1770_v10 = vmul.f32 %v1650_v24, %v3473_v60  ;;  %v1393_v32 = vmul.f32 %v3447_v49, %v1276_v51  ;;  %v1674_v47 = vmul.f32 %v1658_v43, %v1642_v26  ;;  %v1778_v31 = vrot.slane %v3478_v61, 4 }
 0x12f   : > { %v1442_v46 = vmul.f32 %v3451_v50, %v1340_v44  ;;  %v1618_v62 = vsub.f32 %v1554_v18, %v1602_v54  ;;  %v1698_v33 = vmul.f32 %v1682_v12, %v1650_v24  ;;  %v1898_v15 = vmul.f32 %v1650_v24, %v1570_v39 }
 0x130   : > { %v1850_v57 = vrot.slane %v1770_v10, 2  ;;  %v1794_v11 = vmul.f32 %v1778_v31, %v1642_v26  ;;  %v4271_v0 = vrot.slane %v3478_v61, 3  ;;  %v1978_v42 = vrot.slane %v3503_v6, 6 }
 0x131   : > { %v1458_v25 = vrot.slane %v1442_v46, 6  ;;  %3068 = vrcp.f32 %v1618_v62  ;;  %v1714_v56 = vrot.slane %v1698_v33, 2  ;;  %v2002_v18 = vrot.slane %v3503_v6, 4 }
 0x132   : > { %v1906_v30 = vmul.f32 %v1642_v26, %v4271_v0  ;;  %v1810_v59 = vrot.slane %v1794_v11, 6  ;;  %v1866_v14 = vsub.f32 %v1794_v11, %v1850_v57  ;;  %v1994_v39 = vsub.f32 %v3503_v6, %v1978_v42 }
 0x133   : > { %v3660_v38 = vadd.f32 %v1458_v25, %v1393_v32  ;;  %v1730_v53 = vsub.f32 %v1674_v47, %v1714_v56  ;;  %v2026_v58 = vrot.slane %v3478_v61, 7  ;;  %v2018_v9 = vsub.f32 %v3533_v34, %v2002_v18 }
 0x134   : > { %v1922_v37 = vrot.slane %v1906_v30, 6  ;;  %v1826_v26 = vsub.f32 %v1770_v10, %v1810_v59  ;;  %v2050_v22 = vrot.slane %v3473_v60, 3  ;;  %v2130_v17 = vrot.slane %v3473_v60, 2 }
 0x135   : > { %4272 = vst [vmem:[#allocation26_spill] sm:$0xff] %v3660_v38  ;;  %v2042_v16 = vmul.f32 %v2026_v58, %v1994_v39  ;;  %v2154_v24 = vrot.slane %v3478_v61, 6  ;;  %v2282_v3 = vmul.f32 %v1994_v39, %v1658_v43  ;;  %v2274_v44 = vmul.f32 %v2018_v9, %v1682_v12 }
 0x136   : > { %v1938_v23 = vsub.f32 %v1898_v15, %v1922_v37  ;;  %v2066_v51 = vmul.f32 %v2050_v22, %v2018_v9  ;;  %v1027_v6 = vrot.slane %v3579_v63, %v3280_v7  ;;  %v2146_v32 = vmul.f32 %v2130_v17, %v2018_v9 }
 0x137   : > { %v2170_v10 = vmul.f32 %v2154_v24, %v1994_v39  ;;  %v2298_v47 = vrot.slane %v2282_v3, 6  ;;  %v1077_v34 = vrot.slane %v3581_v27, %v3280_v7  ;;  %v1159_v60 = vrot.slane %v3583_v28, %v3280_v7 }
 0x138   : > { %v2082_v31 = vrot.slane %v2066_v51, 2  ;;  %v1061_v46 = vmul.f32 %v1027_v6, %v3443_v48  ;;  %v1241_v61 = vrot.slane %v3620_v40, %v3280_v7  ;;  %v2226_v12 = vrot.slane %v2146_v32, 2 }
 0x139   : > { %v2186_v43 = vrot.slane %v2170_v10, 6  ;;  %v2314_v62 = vsub.f32 %v2274_v44, %v2298_v47  ;;  %v1111_v33 = vmul.f32 %v1077_v34, %v3505_v8  ;;  %v1193_v11 = vmul.f32 %v1159_v60, %v3505_v8 }
 0x13a   : > { %v2098_v57 = vsub.f32 %v2042_v16, %v2082_v31  ;;  %v1283_v15 = vmul.f32 %v1027_v6, %v3505_v8  ;;  %v1299_v0 = vmul.f32 %v1159_v60, %v3535_v45  ;;  %v2242_v56 = vsub.f32 %v2170_v10, %v2226_v12 }
 0x13b   : > { %v3069_v30 = vpop.eup %3068  ;;  %v2202_v25 = vsub.f32 %v2146_v32, %v2186_v43  ;;  %v1127_v42 = vrot.slane %v1111_v33, 2  ;;  %v1537_v59 = vrot.slane %v3492_v2, 3  ;;  %v1209_v16 = vrot.slane %v1193_v11, 4 }
 0x13c   : > { %v1746_v37 = vrot.slane %v3069_v30, 2  ;;  %v1834_v18 = vmul.f32 %v3069_v30, %v1826_v26  ;;  %v1874_v39 = vrot.slane %v3069_v30, 1  ;;  %v1946_v58 = vrot.slane %v3069_v30, 7 }
 0x13d   : > { %v2106_v9 = vrot.slane %v3069_v30, 4  ;;  %v2250_v22 = vrot.slane %v3069_v30, 3  ;;  %v1143_v17 = vadd.f32 %v1127_v42, %v1061_v46  ;;  %v1291_v12 = vadd.f32 %v1283_v15, %v1127_v42 }
 0x13e   : > { %v1762_v24 = vmul.f32 %v1746_v37, %v1730_v53  ;;  %v1890_v3 = vmul.f32 %v1874_v39, %v1866_v14  ;;  %v1962_v51 = vmul.f32 %v1946_v58, %v1938_v23  ;;  %v2210_v44 = vmul.f32 %v2202_v25, %v1746_v37 }
 0x13f   : > { %v2122_v6 = vmul.f32 %v2106_v9, %v2098_v57  ;;  %v2266_v47 = vmul.f32 %v2250_v22, %v2242_v56  ;;  %v2322_v34 = vmul.f32 %v2314_v62, %v1874_v39  ;;  %v2378_v32 = vmul.f32 %v1834_v18, %v3447_v49 }
 0x140   : > { %v2330_v10 = vmul.f32 %v1762_v24, %v3447_v49  ;;  %v2386_v31 = vmul.f32 %v2210_v44, %v3451_v50  ;;  %v2426_v26 = vmul.f32 %v1890_v3, %v3447_v49  ;;  %v2474_v60 = vmul.f32 %v1962_v51, %v3447_v49 }
 0x141   : > { %v2338_v46 = vmul.f32 %v2122_v6, %v3451_v50  ;;  %v2434_v53 = vmul.f32 %v2266_v47, %v3451_v50  ;;  %v2482_v14 = vmul.f32 %v2322_v34, %v3451_v50  ;;  %v1225_v23 = vadd.f32 %v1209_v16, %v1143_v17 }
 0x142   : > { %v2402_v43 = vrot.slane %v2386_v31, 6  ;;  %v1315_v62 = vrot.slane %v1299_v0, 4  ;;  %v1553_v33 = vmul.f32 %v1537_v59, %v3487_v1  ;;  %v1569_v37 = vrot.slane %v3487_v1, 7 }
 0x143   : > { %v2354_v57 = vrot.slane %v2338_v46, 6  ;;  %v2450_v11 = vrot.slane %v2434_v53, 6  ;;  %v2498_v30 = vrot.slane %v2482_v14, 6  ;;  %v1275_v25 = vmul.f32 %v1241_v61, %v1225_v23  ;;  %v3713_v14 = vpop.f32.mrb[11].mxu1 }
 0x144   : > { %v2418_v56 = vadd.f32 %v2402_v43, %v2378_v32  ;;  %v1331_v49 = vadd.f32 %v1315_v62, %v1291_v12  ;;  %v4273_v18 = vrot.slane %v3443_v48, 6  ;;  %v1585_v22 = vmul.f32 %v1569_v37, %v3492_v2 }
 0x145   : > { %v2370_v39 = vadd.f32 %v2354_v57, %v2330_v10  ;;  %v2466_v58 = vadd.f32 %v2450_v11, %v2426_v26  ;;  %v2514_v15 = vadd.f32 %v2498_v30, %v2474_v60  ;;  %v1392_v0 = vmul.f32 %v3404_v35, %v1275_v25 }
 0x146   : > { %v1641_v50 = vsub.f32 %v3505_v8, %v4273_v18  ;;  %v2601_v42 = vrot.slane %v2418_v56, 1  ;;  %v1339_v9 = vmul.f32 %v1331_v49, %v1241_v61  ;;  %v4274_v17 = vrot.slane %v3443_v48, 4 }
 0x147   : > { %v2625_v24 = vrot.slane %v2466_v58, 7  ;;  %v1657_v3 = vrot.slane %v3492_v2, 5  ;;  %v1681_v51 = vrot.slane %v3487_v1, 1  ;;  %v1777_v44 = vrot.slane %v3492_v2, 4 }
 0x148   : > { %v1649_v16 = vsub.f32 %v3505_v8, %v4274_v17  ;;  %v2641_v6 = vsel %vm2544_vm12, %v2370_v39, %v2601_v42  ;;  %v1441_v47 = vmul.f32 %v3408_v36, %v1339_v9  ;;  %v1601_v34 = vrot.slane %v1585_v22, 2 }
 0x149   : > { %v2650_v32 = vsel %vm2647_vm2, %v2641_v6, %v2625_v24  ;;  %v1673_v10 = vmul.f32 %v1657_v3, %v1641_v50  ;;  %v1793_v31 = vmul.f32 %v1777_v44, %v1641_v50  ;;  %v1905_v62 = vmul.f32 %v1641_v50, %v1537_v59 }
 0x14a   : > { %v1769_v61 = vmul.f32 %v1649_v16, %v3487_v1  ;;  %v1697_v48 = vmul.f32 %v1681_v51, %v1649_v16  ;;  %v3711_v26 = vsel %vm2656_vm3, %v2650_v32, %v2514_v15  ;;  %v1457_v60 = vrot.slane %v1441_v47, 6 }
 0x14b   : > { %v1617_v46 = vsub.f32 %v1553_v33, %v1601_v34  ;;  %v1809_v43 = vrot.slane %v1793_v31, 6  ;;  %v1897_v12 = vmul.f32 %v1649_v16, %v1569_v37  ;;  %v1977_v30 = vrot.slane %v3505_v8, 6 }
 0x14c   : > { %v1849_v53 = vrot.slane %v1769_v61, 2  ;;  %v1713_v23 = vrot.slane %v1697_v48, 2  ;;  %v3717_v57 = vadd.f32 %v1457_v60, %v1392_v0  ;;  %v1921_v49 = vrot.slane %v1905_v62, 6 }
 0x14d   : > { %3070 = vrcp.f32 %v1617_v46  ;;  %v1825_v56 = vsub.f32 %v1769_v61, %v1809_v43  ;;  %v2001_v33 = vrot.slane %v3505_v8, 4  ;;  %v1993_v18 = vsub.f32 %v3505_v8, %v1977_v30  ;;  %v4275_v43 = vld [vmem:[#allocation15_spill] sm:$0xff] }
 0x14e   : > { %v1865_v11 = vsub.f32 %v1793_v31, %v1849_v53  ;;  %v1729_v25 = vsub.f32 %v1673_v10, %v1713_v23  ;;  %v2025_v39 = vrot.slane %v3492_v2, 7  ;;  %v2049_v37 = vrot.slane %v3487_v1, 3 }
 0x14f   : > { %v2129_v58 = vrot.slane %v3487_v1, 2  ;;  %v1937_v59 = vsub.f32 %v1897_v12, %v1921_v49  ;;  %v2017_v50 = vsub.f32 %v3535_v45, %v2001_v33  ;;  %v2153_v15 = vrot.slane %v3492_v2, 6 }
 0x150   : > { %v2041_v42 = vmul.f32 %v2025_v39, %v1993_v18  ;;  %v2281_v9 = vmul.f32 %v1993_v18, %v1657_v3  ;;  %v1035_v22 = vrot.slane %v3579_v63, %v3312_v21  ;;  %v1085_v8 = vrot.slane %v3581_v27, %v3312_v21 }
 0x151   : > { %v2065_v17 = vmul.f32 %v2049_v37, %v2017_v50  ;;  %v2145_v16 = vmul.f32 %v2129_v58, %v2017_v50  ;;  %v2169_v24 = vmul.f32 %v2153_v15, %v1993_v18  ;;  %v2273_v44 = vmul.f32 %v2017_v50, %v1681_v51 }
 0x152   : > { %v2297_v1 = vrot.slane %v2281_v9, 6  ;;  %v1063_v6 = vmul.f32 %v1035_v22, %v3460_v55  ;;  %v1113_v45 = vmul.f32 %v1085_v8, %v3509_v13  ;;  %v1167_v2 = vrot.slane %v3583_v28, %v3312_v21 }
 0x153   : > { %v2081_v47 = vrot.slane %v2065_v17, 2  ;;  %v2185_v3 = vrot.slane %v2169_v24, 6  ;;  %v2225_v34 = vrot.slane %v2145_v16, 2  ;;  %v1249_v63 = vrot.slane %v3620_v40, %v3312_v21 }
 0x154   : > { %v2313_v61 = vsub.f32 %v2273_v44, %v2297_v1  ;;  %v1129_v27 = vrot.slane %v1113_v45, 2  ;;  %v1195_v32 = vmul.f32 %v1167_v2, %v3509_v13  ;;  %v1285_v51 = vmul.f32 %v1035_v22, %v3509_v13 }
 0x155   : > { %v2097_v10 = vsub.f32 %v2041_v42, %v2081_v47  ;;  %v2201_v48 = vsub.f32 %v2145_v16, %v2185_v3  ;;  %v2241_v31 = vsub.f32 %v2169_v24, %v2225_v34  ;;  %v1301_v60 = vmul.f32 %v1167_v2, %v3540_v4  ;;  %v4276_v2 = vld [vmem:[#allocation14_spill] sm:$0xff] }
 0x156   : > { %v1145_v53 = vadd.f32 %v1129_v27, %v1063_v6  ;;  %v1211_v28 = vrot.slane %v1195_v32, 4  ;;  %v1293_v23 = vadd.f32 %v1285_v51, %v1129_v27  ;;  %v1539_v12 = vrot.slane %v4275_v43, 3 }
 0x157   : > { %v3071_v46 = vpop.eup %3070  ;;  %v1317_v37 = vrot.slane %v1301_v60, 4  ;;  %v1571_v3 = vrot.slane %v4276_v2, 7 }
 0x158   : > { %v1745_v62 = vrot.slane %v3071_v46, 2  ;;  %v1833_v30 = vmul.f32 %v3071_v46, %v1825_v56  ;;  %v1873_v40 = vrot.slane %v3071_v46, 1  ;;  %v1945_v49 = vrot.slane %v3071_v46, 7 }
 0x159   : > { %v2105_v33 = vrot.slane %v3071_v46, 4  ;;  %v2249_v18 = vrot.slane %v3071_v46, 3  ;;  %v1227_v39 = vadd.f32 %v1211_v28, %v1145_v53  ;;  %v1333_v45 = vadd.f32 %v1317_v37, %v1293_v23 }
 0x15a   : > { %v1761_v58 = vmul.f32 %v1745_v62, %v1729_v25  ;;  %v1889_v50 = vmul.f32 %v1873_v40, %v1865_v11  ;;  %v1961_v15 = vmul.f32 %v1945_v49, %v1937_v59  ;;  %v2209_v42 = vmul.f32 %v2201_v48, %v1745_v62 }
 0x15b   : > { %v2121_v9 = vmul.f32 %v2105_v33, %v2097_v10  ;;  %v2265_v22 = vmul.f32 %v2249_v18, %v2241_v31  ;;  %v2321_v8 = vmul.f32 %v2313_v61, %v1873_v40  ;;  %v2377_v17 = vmul.f32 %v1833_v30, %v3404_v35  ;;  %v4280_v30 = vld [vmem:[#allocation10_spill] sm:$0xff] }
 0x15c   : > { %v2329_v16 = vmul.f32 %v1761_v58, %v3404_v35  ;;  %v2385_v24 = vmul.f32 %v2209_v42, %v3408_v36  ;;  %v2425_v56 = vmul.f32 %v1889_v50, %v3404_v35  ;;  %v2473_v44 = vmul.f32 %v1961_v15, %v3404_v35  ;;  %v4277_v35 = vld [vmem:[#allocation9_spill] sm:$0xff] }
 0x15d   : > { %v2337_v1 = vmul.f32 %v2121_v9, %v3408_v36  ;;  %v2433_v25 = vmul.f32 %v2265_v22, %v3408_v36  ;;  %v2481_v11 = vmul.f32 %v2321_v8, %v3408_v36  ;;  %v1277_v59 = vmul.f32 %v1249_v63, %v1227_v39 }
 0x15e   : > { %v2401_v6 = vrot.slane %v2385_v24, 6  ;;  %v1555_v47 = vmul.f32 %v1539_v12, %v4276_v2  ;;  %v1341_v10 = vmul.f32 %v1333_v45, %v1249_v63  ;;  %v1587_v48 = vmul.f32 %v1571_v3, %v4275_v43 }
 0x15f   : > { %v2353_v34 = vrot.slane %v2337_v1, 6  ;;  %v2449_v61 = vrot.slane %v2433_v25, 6  ;;  %v2497_v27 = vrot.slane %v2481_v11, 6  ;;  %v1394_v32 = vmul.f32 %v4277_v35, %v1277_v59 }
 0x160   : > { %v2417_v51 = vadd.f32 %v2401_v6, %v2377_v17  ;;  %v4278_v36 = vrot.slane %v3460_v55, 6  ;;  %v4279_v28 = vrot.slane %v3460_v55, 4  ;;  %v1443_v40 = vmul.f32 %v4280_v30, %v1341_v10  ;;  %v4281_v10 = vld [vmem:[#allocation16_spill] sm:$0xff] }
 0x161   : > { %v2369_v60 = vadd.f32 %v2353_v34, %v2329_v16  ;;  %v2465_v46 = vadd.f32 %v2449_v61, %v2425_v56  ;;  %v2513_v53 = vadd.f32 %v2497_v27, %v2473_v44  ;;  %v1603_v49 = vrot.slane %v1587_v48, 2 }
 0x162   : > { %v1643_v31 = vsub.f32 %v3509_v13, %v4278_v36  ;;  %v1651_v23 = vsub.f32 %v3509_v13, %v4279_v28  ;;  %v2600_v62 = vrot.slane %v2417_v51, 1  ;;  %v1659_v33 = vrot.slane %v4275_v43, 5 }
 0x163   : > { %v2624_v63 = vrot.slane %v2465_v46, 7  ;;  %v1683_v18 = vrot.slane %v4276_v2, 1  ;;  %v1779_v37 = vrot.slane %v4275_v43, 4  ;;  %v1459_v50 = vrot.slane %v1443_v40, 6 }
 0x164   : > { %v1771_v39 = vmul.f32 %v1651_v23, %v4276_v2  ;;  %v2640_v58 = vsel %vm2544_vm12, %v2369_v60, %v2600_v62  ;;  %v1619_v55 = vsub.f32 %v1555_v47, %v1603_v49  ;;  %v1675_v15 = vmul.f32 %v1659_v33, %v1643_v31 }
 0x165   : > { %v2649_v42 = vsel %vm2647_vm2, %v2640_v58, %v2624_v63  ;;  %v1699_v9 = vmul.f32 %v1683_v18, %v1651_v23  ;;  %v1795_v22 = vmul.f32 %v1779_v37, %v1643_v31  ;;  %v3776_v16 = vadd.f32 %v1459_v50, %v1394_v32  ;;  %v4283_v37 = vld [vmem:[#allocation18_spill] sm:$0xff] }
 0x166   : > { %v1851_v8 = vrot.slane %v1771_v39, 2  ;;  %v2658_v17 = vsel %vm2656_vm3, %v2649_v42, %v2513_v53  ;;  %3072 = vrcp.f32 %v1619_v55  ;;  %v1899_v24 = vmul.f32 %v1651_v23, %v1571_v3 }
 0x167   : > { %v2673_v56 = vcombine.low %v3643_v19, %v2658_v17  ;;  %v1715_v44 = vrot.slane %v1699_v9, 2  ;;  %v1811_v1 = vrot.slane %v1795_v22, 6  ;;  %v1907_v11 = vmul.f32 %v1643_v31, %v1539_v12  ;;  %v4282_v31 = vld [vmem:[#allocation17_spill] sm:$0xff] }
 0x168   : > { %v1867_v25 = vsub.f32 %v1795_v22, %v1851_v8  ;;  %v1979_v59 = vrot.slane %v3509_v13, 6  ;;  %v2003_v6 = vrot.slane %v3509_v13, 4  ;;  %v2027_v45 = vrot.slane %v4275_v43, 7 }
 0x169   : > { %2681 = vst [vmem:[%s3773_s7] sm:$0xff] %v2673_v56  ;;  %v1731_v47 = vsub.f32 %v1675_v15, %v1715_v44  ;;  %v1827_v34 = vsub.f32 %v1771_v39, %v1811_v1  ;;  %v2051_v61 = vrot.slane %v4276_v2, 3  ;;  %v2131_v3 = vrot.slane %v4276_v2, 2 }
 0x16a   : > { %v1923_v19 = vrot.slane %v1907_v11, 6  ;;  %v1995_v27 = vsub.f32 %v3509_v13, %v1979_v59  ;;  %v2019_v32 = vsub.f32 %v3540_v4, %v2003_v6  ;;  %v2155_v12 = vrot.slane %v4275_v43, 6 }
 0x16b   : > { %v1484_v48 = vrot.slane %v4281_v10, 6  ;;  %v1508_v36 = vrot.slane %v4281_v10, 4  ;;  %v4238_v60 = vrot.slane %v4282_v31, 6  ;;  %v871_v58 = vcombine.low %v4281_v10, %v4283_v37 }
 0x16c   : > { %v1939_v46 = vsub.f32 %v1899_v24, %v1923_v19  ;;  %v2043_v53 = vmul.f32 %v2027_v45, %v1995_v27  ;;  %v2067_v28 = vmul.f32 %v2051_v61, %v2019_v32  ;;  %v2147_v23 = vmul.f32 %v2131_v3, %v2019_v32 }
 0x16d   : > { %v2171_v2 = vmul.f32 %v2155_v12, %v1995_v27  ;;  %v2275_v62 = vmul.f32 %v2019_v32, %v1683_v18  ;;  %v2283_v40 = vmul.f32 %v1995_v27, %v1659_v33  ;;  %v3797_v13 = vsub.f32 %v4281_v10, %v1484_v48 }
 0x16e   : > { %v2083_v4 = vrot.slane %v2067_v28, 2  ;;  %v2227_v43 = vrot.slane %v2147_v23, 2  ;;  %v3802_v49 = vsub.f32 %v4281_v10, %v1508_v36  ;;  %v3807_v63 = vsub.f32 %v4282_v31, %v4238_v60 }
 0x16f   : > { %v2187_v39 = vrot.slane %v2171_v2, 6  ;;  %v2299_v18 = vrot.slane %v2283_v40, 6  ;;  %v4237_v33 = vrot.slane %v4282_v31, 4  ;;  %v909_v42 = vcombine.high %v4281_v10, %v4283_v37 }
 0x170   : > { %v3073_v50 = vpop.eup %3072  ;;  %v2099_v55 = vsub.f32 %v2043_v53, %v2083_v4  ;;  %v2243_v15 = vsub.f32 %v2171_v2, %v2227_v43  ;;  %v4236_v9 = vrot.slane %v4283_v37, 6  ;;  %v4284_v2 = vld [vmem:[#allocation13_spill] sm:$0xff]  ;;  %v4235_v4 = vrot.slane %v4283_v37, 4 }
 0x171   : > { %v1747_v22 = vrot.slane %v3073_v50, 2  ;;  %v1835_v8 = vmul.f32 %v3073_v50, %v1827_v34  ;;  %v1875_v17 = vrot.slane %v3073_v50, 1  ;;  %v1947_v24 = vrot.slane %v3073_v50, 7 }
 0x172   : > { %v2107_v56 = vrot.slane %v3073_v50, 4  ;;  %v2203_v44 = vsub.f32 %v2147_v23, %v2187_v39  ;;  %v2251_v1 = vrot.slane %v3073_v50, 3  ;;  %v2315_v11 = vsub.f32 %v2275_v62, %v2299_v18 }
 0x173   : > { %v1763_v59 = vmul.f32 %v1747_v22, %v1731_v47  ;;  %v1891_v6 = vmul.f32 %v1875_v17, %v1867_v25  ;;  %v1963_v45 = vmul.f32 %v1947_v24, %v1939_v46  ;;  %v2379_v61 = vmul.f32 %v1835_v8, %v4277_v35 }
 0x174   : > { %v2123_v3 = vmul.f32 %v2107_v56, %v2099_v55  ;;  %v2211_v19 = vmul.f32 %v2203_v44, %v1747_v22  ;;  %v2267_v27 = vmul.f32 %v2251_v1, %v2243_v15  ;;  %v2323_v32 = vmul.f32 %v2315_v11, %v1875_v17 }
 0x175   : > { %v2331_v12 = vmul.f32 %v1763_v59, %v4277_v35  ;;  %v2427_v53 = vmul.f32 %v1891_v6, %v4277_v35  ;;  %v2475_v34 = vmul.f32 %v1963_v45, %v4277_v35  ;;  %v3822_v28 = vsub.f32 %v4282_v31, %v4237_v33  ;;  %v844_v45 = vld [vmem:[%s3497_s8 + $0x8] sm:$0xff]  ;;  %s3088_s8 = sshll.u32 %s3167_s29, 4  ;;  %s3089_s8 = int_to_ptr.vmem [resolvable:$false] %s3088_s8 }
 0x176   : > { %v2339_v25 = vmul.f32 %v2123_v3, %v4280_v30  ;;  %v2387_v47 = vmul.f32 %v2211_v19, %v4280_v30  ;;  %v2435_v46 = vmul.f32 %v2267_v27, %v4280_v30  ;;  %v2483_v23 = vmul.f32 %v2323_v32, %v4280_v30  ;;  %v4286_v3 = vld [vmem:[#allocation7_spill] sm:$0xff]  ;;  %s3090_s9 = scalar_lea.vmem %s3089_s8, 512  ;;  %p3091_p1 = scmp.lt.s32.totalorder %s4135_s16, %s3089_s8 }
 0x177   : > { %v879_v62 = vrot.slane %v871_v58, %v4284_v2  ;;  %v917_v40 = vrot.slane %v909_v42, %v4284_v2  ;;  %v3833_v35 = vsub.f32 %v4283_v37, %v4236_v9  ;;  %v3839_v30 = vsub.f32 %v4283_v37, %v4235_v4  ;;  %v4285_v58 = vld [vmem:[#allocation19_spill] sm:$0xff]  ;;  %p3092_p2 = scmp.lt.s32.totalorder %s3090_s9, %s3084_s27 }
 0x178   : > { %v2355_v43 = vrot.slane %v2339_v25, 6  ;;  %v2403_v39 = vrot.slane %v2387_v47, 6  ;;  %v2451_v18 = vrot.slane %v2435_v46, 6  ;;  %v2499_v50 = vrot.slane %v2483_v23, 6  ;;  %v4288_v23 = vld [vmem:[#allocation20_spill] sm:$0xff] }
 0x179   : > { %v872_v55 = vcombine.low %v4282_v31, %v4285_v58  ;;  %v910_v15 = vcombine.high %v4282_v31, %v4285_v58  ;;  %v4234_v42 = vrot.slane %v4285_v58, 6  ;;  %v4233_v11 = vrot.slane %v4285_v58, 4  ;;  %p3093_p3 = por %p3092_p2, %p3091_p1 }
 0x17a   : > { %v2371_v22 = vadd.f32 %v2355_v43, %v2331_v12  ;;  %v2419_v8 = vadd.f32 %v2403_v39, %v2379_v61  ;;  %v2467_v17 = vadd.f32 %v2451_v18, %v2427_v53  ;;  %v2515_v24 = vadd.f32 %v2499_v50, %v2475_v34  ;;  %v4287_v61 = vld [vmem:[#allocation8_spill] sm:$0xff] }
 0x17b   : > { %v886_v56 = vrot.slane %v872_v55, %v4284_v2  ;;  %v924_v44 = vrot.slane %v910_v15, %v4284_v2  ;;  %v3851_v1 = vsub.f32 %v4285_v58, %v4234_v42  ;;  %v3857_v19 = vrot.slane %v4286_v3, %v3309_v20  ;;  %p3094_p5 = pnand %p3093_p3, %p3087_p0 }
 0x17c   : > { %v2602_v59 = vrot.slane %v2419_v8, 1  ;;  %v2626_v6 = vrot.slane %v2467_v17, 7  ;;  %v3861_v27 = vrot.slane %v4287_v61, %v3309_v20  ;;  %v3866_v34 = vsub.f32 %v4285_v58, %v4233_v11 }
 0x17d   : > { %v887_v32 = vcombine.high %v879_v62, %v886_v56  ;;  %v925_v12 = vcombine.low %v917_v40, %v924_v44  ;;  %v959_v53 = vcombine.low %v879_v62, %v886_v56  ;;  %v1540_v47 = vrot.slane %v3802_v49, 3 }
 0x17e   : > { %v2642_v25 = vsel %vm2544_vm12, %v2371_v22, %v2602_v59  ;;  %v1572_v46 = vrot.slane %v3797_v13, 7  ;;  %v1644_v43 = vsub.f32 %v4288_v23, %v1484_v48  ;;  %v1652_v22 = vsub.f32 %v4288_v23, %v1508_v36 }
 0x17f   : > { %v2651_v39 = vsel %vm2647_vm2, %v2642_v25, %v2626_v6  ;;  %v891_v40 = vsub.f32 %v844_v45, %v887_v32  ;;  %v929_v62 = vsub.f32 %v844_v45, %v925_v12  ;;  %v963_v18 = vsub.f32 %v844_v45, %v959_v53 }
 0x180   : > { %v2660_v50 = vsel %vm2656_vm3, %v2651_v39, %v2515_v24  ;;  %v1556_v55 = vmul.f32 %v1540_v47, %v3797_v13  ;;  %v1588_v15 = vmul.f32 %v1572_v46, %v3802_v49  ;;  %v4239_v56 = vrot.slane %v3802_v49, 5 }
 0x181   : > { %v2674_v8 = vcombine.low %v3711_v26, %v2660_v50  ;;  %v934_v17 = vrot.slane %v929_v62, 7  ;;  %v986_v48 = vrot.slane %v891_v40, 7  ;;  %v4240_v59 = vrot.slane %v3797_v13, 1 }
 0x182   : > { %v1604_v44 = vrot.slane %v1588_v15, 2  ;;  %v1772_v6 = vmul.f32 %v1652_v22, %v3797_v13  ;;  %v1780_v24 = vrot.slane %v3802_v49, 4  ;;  %v1676_v26 = vmul.f32 %v4239_v56, %v1644_v43 }
 0x183   : > { %2682 = vst [vmem:[%s3773_s7 + $0x8] sm:$0xff] %v2674_v8  ;;  %v935_v45 = vrot.slane %v934_v17, 2  ;;  %v943_v32 = vmul.f32 %v934_v17, %v891_v40  ;;  %v967_v12 = vmul.f32 %v963_v18, %v934_v17  ;;  %v987_v53 = vrot.slane %v986_v48, 2 }
 0x184   : > { %v995_v25 = vmul.f32 %v986_v48, %v963_v18  ;;  %v1620_v36 = vsub.f32 %v1556_v55, %v1604_v44  ;;  %v1700_v39 = vmul.f32 %v4240_v59, %v1652_v22  ;;  %v1796_v17 = vmul.f32 %v1780_v24, %v1644_v43 }
 0x185   : > { %v939_v62 = vmul.f32 %v935_v45, %v891_v40  ;;  %v2960_v50 = vrot.slane %v943_v32, 9  ;;  %v965_v15 = vmul.f32 %v963_v18, %v935_v45  ;;  %v2962_v54 = vrot.slane %v967_v12, 9 }
 0x186   : > { %v991_v51 = vmul.f32 %v987_v53, %v963_v18  ;;  %v2964_v41 = vrot.slane %v995_v25, 9  ;;  %3074 = vrcp.f32 %v1620_v36  ;;  %v1716_v8 = vrot.slane %v1700_v39, 2 }
 0x187   : > { %v953_v0 = vsub.f32 %v939_v62, %v2960_v50  ;;  %v977_v11 = vsub.f32 %v965_v15, %v2962_v54  ;;  %v1852_v42 = vrot.slane %v1772_v6, 2  ;;  %v1900_v44 = vmul.f32 %v1652_v22, %v1572_v46 }
 0x188   : > { %v1005_v48 = vsub.f32 %v991_v51, %v2964_v41  ;;  %v1732_v55 = vsub.f32 %v1676_v26, %v1716_v8  ;;  %v1908_v4 = vmul.f32 %v1644_v43, %v1540_v47  ;;  %v1812_v60 = vrot.slane %v1796_v17, 6 }
 0x189   : > { %v955_v9 = vand.u32 2147483647, %v953_v0  ;;  %v979_v33 = vand.u32 2147483647, %v977_v11  ;;  %v1868_v56 = vsub.f32 %v1796_v17, %v1852_v42  ;;  %v1980_v45 = vrot.slane %v4288_v23, 6  ;;  %v4289_v11 = vld [vmem:[#allocation24_spill] sm:$0xff] }
 0x18a   : > { %v1007_v40 = vand.u32 2147483647, %v1005_v48  ;;  %v1924_v32 = vrot.slane %v1908_v4, 6  ;;  %v2004_v18 = vrot.slane %v4288_v23, 4  ;;  %v1828_v54 = vsub.f32 %v1772_v6, %v1812_v60 }
 0x18b   : > { %v3893_v12 = vmul.f32 0.5, %v955_v9  ;;  %v3895_v53 = vmul.f32 0.5, %v979_v33  ;;  %v2028_v41 = vrot.slane %v3802_v49, 7  ;;  %v1996_v0 = vsub.f32 %v4288_v23, %v1980_v45 }
 0x18c   : > { %v3898_v51 = vmul.f32 0.5, %v1007_v40  ;;  %v1940_v47 = vsub.f32 %v1900_v44, %v1924_v32  ;;  %v2020_v42 = vsub.f32 %v4289_v11, %v2004_v18  ;;  %v2052_v60 = vrot.slane %v3797_v13, 3 }
 0x18d   : > { %v1011_v4 = vadd.f32 %v3895_v53, %v3893_v12  ;;  %v1039_v46 = vrot.slane %v3893_v12, %v3269_v5  ;;  %v1089_v33 = vrot.slane %v3895_v53, %v3269_v5  ;;  %v2044_v43 = vmul.f32 %v2028_v41, %v1996_v0 }
 0x18e   : > { %v1171_v9 = vrot.slane %v3898_v51, %v3269_v5  ;;  %v2132_v22 = vrot.slane %v3797_v13, 2  ;;  %v2156_v6 = vrot.slane %v3802_v49, 6  ;;  %v2068_v15 = vmul.f32 %v2052_v60, %v2020_v42 }
 0x18f   : > { %v1013_v24 = vadd.f32 %v1011_v4, %v3898_v51  ;;  %v1064_v25 = vmul.f32 %v1039_v46, %v4281_v10  ;;  %v1114_v36 = vmul.f32 %v1089_v33, %v4288_v23  ;;  %v1286_v26 = vmul.f32 %v1039_v46, %v4288_v23 }
 0x190   : > { %v3075_v39 = vpop.eup %3074  ;;  %v1196_v62 = vmul.f32 %v1171_v9, %v4288_v23  ;;  %v1302_v50 = vmul.f32 %v1171_v9, %v4289_v11  ;;  %v2148_v8 = vmul.f32 %v2132_v22, %v2020_v42  ;;  %v2084_v33 = vrot.slane %v2068_v15, 2 }
 0x191   : > { %3076 = vrcp.f32 %v1013_v24  ;;  %v1130_v17 = vrot.slane %v1114_v36, 2  ;;  %v1748_v48 = vrot.slane %v3075_v39, 2  ;;  %v1836_v44 = vmul.f32 %v3075_v39, %v1828_v54 }
 0x192   : > { %v1212_v40 = vrot.slane %v1196_v62, 4  ;;  %v1318_v32 = vrot.slane %v1302_v50, 4  ;;  %v1876_v45 = vrot.slane %v3075_v39, 1  ;;  %v1948_v18 = vrot.slane %v3075_v39, 7 }
 0x193   : > { %v1146_v10 = vadd.f32 %v1130_v17, %v1064_v25  ;;  %v1294_v41 = vadd.f32 %v1286_v26, %v1130_v17  ;;  %v1764_v4 = vmul.f32 %v1748_v48, %v1732_v55  ;;  %v2108_v2 = vrot.slane %v3075_v39, 4 }
 0x194   : > { %v1892_v46 = vmul.f32 %v1876_v45, %v1868_v56  ;;  %v1964_v59 = vmul.f32 %v1948_v18, %v1940_v47  ;;  %v2172_v23 = vmul.f32 %v2156_v6, %v1996_v0  ;;  %v2100_v60 = vsub.f32 %v2044_v43, %v2084_v33  ;;  %v4292_v18 = vld [vmem:[#allocation21_spill] sm:$0xff] }
 0x195   : > { %v1228_v38 = vadd.f32 %v1212_v40, %v1146_v10  ;;  %v1334_v11 = vadd.f32 %v1318_v32, %v1294_v41  ;;  %v2228_v9 = vrot.slane %v2148_v8, 2  ;;  %v2252_v24 = vrot.slane %v3075_v39, 3 }
 0x196   : > { %v2188_v22 = vrot.slane %v2172_v23, 6  ;;  %v4290_v54 = vrot.slane %v3797_v13, 1  ;;  %v4291_v62 = vrot.slane %v3802_v49, 5  ;;  %v2124_v25 = vmul.f32 %v2108_v2, %v2100_v60 }
 0x197   : > { %v2244_v26 = vsub.f32 %v2172_v23, %v2228_v9  ;;  %v2332_v55 = vmul.f32 %v1764_v4, %v3857_v19  ;;  %v2380_v56 = vmul.f32 %v1836_v44, %v3857_v19  ;;  %v2428_v15 = vmul.f32 %v1892_v46, %v3857_v19 }
 0x198   : > { %v2276_v36 = vmul.f32 %v2020_v42, %v4290_v54  ;;  %v2284_v50 = vmul.f32 %v1996_v0, %v4291_v62  ;;  %v2204_v47 = vsub.f32 %v2148_v8, %v2188_v22  ;;  %v2476_v43 = vmul.f32 %v1964_v59, %v3857_v19 }
 0x199   : > { %v2268_v17 = vmul.f32 %v2252_v24, %v2244_v26  ;;  %v2340_v39 = vmul.f32 %v2124_v25, %v3861_v27  ;;  %v1047_v13 = vrot.slane %v3893_v12, %v3309_v20  ;;  %v1097_v49 = vrot.slane %v3895_v53, %v3309_v20 }
 0x19a   : > { %v2300_v6 = vrot.slane %v2284_v50, 6  ;;  %v2212_v2 = vmul.f32 %v2204_v47, %v1748_v48  ;;  %v1179_v42 = vrot.slane %v3898_v51, %v3309_v20  ;;  %v3936_v8 = vrot.slane %v4286_v3, %v3312_v21 }
 0x19b   : > { %v3938_v44 = vpop.eup %3076  ;;  %v2356_v59 = vrot.slane %v2340_v39, 6  ;;  %v2436_v40 = vmul.f32 %v2268_v17, %v3861_v27  ;;  %v1066_v32 = vmul.f32 %v1047_v13, %v4282_v31  ;;  %v1116_v10 = vmul.f32 %v1097_v49, %v4292_v18 }
 0x19c   : > { %v2316_v0 = vsub.f32 %v2276_v36, %v2300_v6  ;;  %v1253_v48 = vrot.slane %v3938_v44, %v3269_v5  ;;  %v2388_v4 = vmul.f32 %v2212_v2, %v3861_v27  ;;  %v1198_v33 = vmul.f32 %v1179_v42, %v4292_v18 }
 0x19d   : > { %v2372_v46 = vadd.f32 %v2356_v59, %v2332_v55  ;;  %v2452_v3 = vrot.slane %v2436_v40, 6  ;;  %v1132_v23 = vrot.slane %v1116_v10, 2  ;;  %v1261_v60 = vrot.slane %v3938_v44, %v3309_v20  ;;  %v4293_v20 = vld [vmem:[#allocation25_spill] sm:$0xff] }
 0x19e   : > { %v2324_v41 = vmul.f32 %v2316_v0, %v1876_v45  ;;  %v1278_v9 = vmul.f32 %v1253_v48, %v1228_v38  ;;  %v1342_v22 = vmul.f32 %v1334_v11, %v1253_v48  ;;  %v2404_v24 = vrot.slane %v2388_v4, 6 }
 0x19f   : > { %v2468_v36 = vadd.f32 %v2452_v3, %v2428_v15  ;;  %v1148_v62 = vadd.f32 %v1132_v23, %v1066_v32  ;;  %v1214_v50 = vrot.slane %v1198_v33, 4  ;;  %v1288_v5 = vmul.f32 %v1047_v13, %v4292_v18 }
 0x1a0   : > { %v2484_v54 = vmul.f32 %v2324_v41, %v3861_v27  ;;  %v1395_v45 = vmul.f32 %v3857_v19, %v1278_v9  ;;  %v1444_v25 = vmul.f32 %v3861_v27, %v1342_v22  ;;  %v2420_v26 = vadd.f32 %v2404_v24, %v2380_v56 }
 0x1a1   : > { %v2627_v47 = vrot.slane %v2468_v36, 7  ;;  %v1230_v6 = vadd.f32 %v1214_v50, %v1148_v62  ;;  %v1296_v17 = vadd.f32 %v1288_v5, %v1132_v23  ;;  %v1304_v38 = vmul.f32 %v1179_v42, %v4293_v20 }
 0x1a2   : > { %v2500_v55 = vrot.slane %v2484_v54, 6  ;;  %v1460_v11 = vrot.slane %v1444_v25, 6  ;;  %v2603_v49 = vrot.slane %v2420_v26, 1  ;;  %v3956_v15 = vrot.slane %v4287_v61, %v3312_v21 }
 0x1a3   : > { %v1280_v2 = vmul.f32 %v1261_v60, %v1230_v6  ;;  %v1320_v13 = vrot.slane %v1304_v38, 4  ;;  %v1542_v19 = vrot.slane %v3822_v28, 3  ;;  %v1574_v27 = vrot.slane %v3807_v63, 7 }
 0x1a4   : > { %v2516_v39 = vadd.f32 %v2500_v55, %v2476_v43  ;;  %v3960_v56 = vadd.f32 %v1460_v11, %v1395_v45  ;;  %v2643_v0 = vsel %vm2544_vm12, %v2372_v46, %v2603_v49  ;;  %v4294_v59 = vrot.slane %v4282_v31, 6 }
 0x1a5   : > { %v4295_v43 = vrot.slane %v4282_v31, 4  ;;  %v2652_v32 = vsel %vm2647_vm2, %v2643_v0, %v2627_v47  ;;  %v1336_v10 = vadd.f32 %v1320_v13, %v1296_v17  ;;  %v1397_v48 = vmul.f32 %v3936_v8, %v1280_v2 }
 0x1a6   : > { %v1646_v42 = vsub.f32 %v4292_v18, %v4294_v59  ;;  %v1558_v41 = vmul.f32 %v1542_v19, %v3807_v63  ;;  %v2532_v4 = vrot.slane %v3960_v56, 6  ;;  %v3974_v33 = vsel %vm2656_vm3, %v2652_v32, %v2516_v39 }
 0x1a7   : > { %v1654_v40 = vsub.f32 %v4292_v18, %v4295_v43  ;;  %v1590_v46 = vmul.f32 %v1574_v27, %v3822_v28  ;;  %v1662_v3 = vrot.slane %v3822_v28, 5  ;;  %v1344_v23 = vmul.f32 %v1336_v10, %v1261_v60 }
 0x1a8   : > { %v1686_v31 = vrot.slane %v3807_v63, 1  ;;  %v1782_v22 = vrot.slane %v3822_v28, 4  ;;  %v1910_v62 = vmul.f32 %v1646_v42, %v1542_v19  ;;  %v1982_v47 = vrot.slane %v4292_v18, 6 }
 0x1a9   : > { %v1774_v9 = vmul.f32 %v1654_v40, %v3807_v63  ;;  %v1606_v24 = vrot.slane %v1590_v46, 2  ;;  %v1678_v54 = vmul.f32 %v1662_v3, %v1646_v42  ;;  %v1902_v36 = vmul.f32 %v1654_v40, %v1574_v27 }
 0x1aa   : > { %v1446_v50 = vmul.f32 %v3956_v15, %v1344_v23  ;;  %v1702_v5 = vmul.f32 %v1686_v31, %v1654_v40  ;;  %v1798_v45 = vmul.f32 %v1782_v22, %v1646_v42  ;;  %v1926_v55 = vrot.slane %v1910_v62, 6 }
 0x1ab   : > { %v1854_v25 = vrot.slane %v1774_v9, 2  ;;  %v1622_v26 = vsub.f32 %v1558_v41, %v1606_v24  ;;  %v2006_v60 = vrot.slane %v4292_v18, 4  ;;  %v1998_v49 = vsub.f32 %v4292_v18, %v1982_v47 }
 0x1ac   : > { %v1462_v6 = vrot.slane %v1446_v50, 6  ;;  %v1718_v17 = vrot.slane %v1702_v5, 2  ;;  %v1814_v38 = vrot.slane %v1798_v45, 6  ;;  %v1942_v39 = vsub.f32 %v1902_v36, %v1926_v55 }
 0x1ad   : > { %v1870_v11 = vsub.f32 %v1798_v45, %v1854_v25  ;;  %3078 = vrcp.f32 %v1622_v26  ;;  %v2022_v2 = vsub.f32 %v4293_v20, %v2006_v60  ;;  %v2030_v0 = vrot.slane %v3822_v28, 7 }
 0x1ae   : > { %v3986_v13 = vadd.f32 %v1462_v6, %v1397_v48  ;;  %v1734_v19 = vsub.f32 %v1678_v54, %v1718_v17  ;;  %v1830_v27 = vsub.f32 %v1774_v9, %v1814_v38  ;;  %v2054_v59 = vrot.slane %v3807_v63, 3  ;;  %v4296_v54 = vld [vmem:[#allocation22_spill] sm:$0xff]  ;;  %v4297_v17 = vld [vmem:[#allocation5_spill] sm:$0xff] }
 0x1af   : > { %v2134_v42 = vrot.slane %v3807_v63, 2  ;;  %v2158_v43 = vrot.slane %v3822_v28, 6  ;;  %v2278_v40 = vmul.f32 %v2022_v2, %v1686_v31  ;;  %v2046_v32 = vmul.f32 %v2030_v0, %v1998_v49 }
 0x1b0   : > { %v2286_v10 = vmul.f32 %v1998_v49, %v1662_v3  ;;  %v2534_v41 = vrot.slane %v3986_v13, 6  ;;  %v1043_v18 = vrot.slane %v3893_v12, %v3280_v7  ;;  %v2070_v20 = vmul.f32 %v2054_v59, %v2022_v2 }
 0x1b1   : > { %v2150_v48 = vmul.f32 %v2134_v42, %v2022_v2  ;;  %v2174_v46 = vmul.f32 %v2158_v43, %v1998_v49  ;;  %v1093_v23 = vrot.slane %v3895_v53, %v3280_v7  ;;  %v1175_v63 = vrot.slane %v3898_v51, %v3280_v7 }
 0x1b2   : > { %v2302_v9 = vrot.slane %v2286_v10, 6  ;;  %v1065_v22 = vmul.f32 %v1043_v18, %v4283_v37  ;;  %v1257_v28 = vrot.slane %v3938_v44, %v3280_v7  ;;  %v2086_v3 = vrot.slane %v2070_v20, 2 }
 0x1b3   : > { %v2190_v31 = vrot.slane %v2174_v46, 6  ;;  %v2230_v24 = vrot.slane %v2150_v48, 2  ;;  %v1115_v36 = vmul.f32 %v1093_v23, %v4296_v54  ;;  %v1197_v50 = vmul.f32 %v1175_v63, %v4296_v54 }
 0x1b4   : > { %v2318_v62 = vsub.f32 %v2278_v40, %v2302_v9  ;;  %v1287_v5 = vmul.f32 %v1043_v18, %v4296_v54  ;;  %v1303_v45 = vmul.f32 %v1175_v63, %v3657_v52  ;;  %v2102_v25 = vsub.f32 %v2046_v32, %v2086_v3 }
 0x1b5   : > { %v2206_v26 = vsub.f32 %v2150_v48, %v2190_v31  ;;  %v2246_v55 = vsub.f32 %v2174_v46, %v2230_v24  ;;  %v1131_v47 = vrot.slane %v1115_v36, 2  ;;  %v1213_v60 = vrot.slane %v1197_v50, 4 }
 0x1b6   : > { %v1319_v6 = vrot.slane %v1303_v45, 4  ;;  %v4008_v7 = vrot.slane %v4287_v61, %v4297_v17  ;;  %v1541_v38 = vrot.slane %v3839_v30, 3  ;;  %v1573_v59 = vrot.slane %v3833_v35, 7 }
 0x1b7   : > { %v3079_v49 = vpop.eup %3078  ;;  %v1147_v2 = vadd.f32 %v1131_v47, %v1065_v22  ;;  %v1295_v0 = vadd.f32 %v1287_v5, %v1131_v47  ;;  %v4298_v42 = vrot.slane %v4283_v37, 6 }
 0x1b8   : > { %v1750_v40 = vrot.slane %v3079_v49, 2  ;;  %v1838_v32 = vmul.f32 %v3079_v49, %v1830_v27  ;;  %v1878_v10 = vrot.slane %v3079_v49, 1  ;;  %v1950_v18 = vrot.slane %v3079_v49, 7 }
 0x1b9   : > { %v1645_v43 = vsub.f32 %v4296_v54, %v4298_v42  ;;  %v2110_v20 = vrot.slane %v3079_v49, 4  ;;  %v2254_v48 = vrot.slane %v3079_v49, 3  ;;  %v1229_v46 = vadd.f32 %v1213_v60, %v1147_v2  ;;  %v4299_v2 = vld [vmem:[#allocation11_spill] sm:$0xff] }
 0x1ba   : > { %v1335_v23 = vadd.f32 %v1319_v6, %v1295_v0  ;;  %v1766_v9 = vmul.f32 %v1750_v40, %v1734_v19  ;;  %v1894_v63 = vmul.f32 %v1878_v10, %v1870_v11  ;;  %v1966_v3 = vmul.f32 %v1950_v18, %v1942_v39 }
 0x1bb   : > { %v2214_v31 = vmul.f32 %v2206_v26, %v1750_v40  ;;  %v2126_v22 = vmul.f32 %v2110_v20, %v2102_v25  ;;  %v2270_v24 = vmul.f32 %v2254_v48, %v2246_v55  ;;  %v2326_v36 = vmul.f32 %v2318_v62, %v1878_v10 }
 0x1bc   : > { %v2382_v50 = vmul.f32 %v1838_v32, %v3936_v8  ;;  %v2334_v5 = vmul.f32 %v1766_v9, %v3936_v8  ;;  %v2430_v27 = vmul.f32 %v1894_v63, %v3936_v8  ;;  %v2478_v47 = vmul.f32 %v1966_v3, %v3936_v8 }
 0x1bd   : > { %v2390_v45 = vmul.f32 %v2214_v31, %v3956_v15  ;;  %v2342_v60 = vmul.f32 %v2126_v22, %v3956_v15  ;;  %v2438_v19 = vmul.f32 %v2270_v24, %v3956_v15  ;;  %v2486_v11 = vmul.f32 %v2326_v36, %v3956_v15 }
 0x1be   : > { %v1279_v39 = vmul.f32 %v1257_v28, %v1229_v46  ;;  %v1343_v26 = vmul.f32 %v1335_v23, %v1257_v28  ;;  %v1557_v62 = vmul.f32 %v1541_v38, %v3833_v35  ;;  %v1589_v55 = vmul.f32 %v1573_v59, %v3839_v30 }
 0x1bf   : > { %v2406_v25 = vrot.slane %v2390_v45, 6  ;;  %v2358_v6 = vrot.slane %v2342_v60, 6  ;;  %v2454_v17 = vrot.slane %v2438_v19, 6  ;;  %v2502_v49 = vrot.slane %v2486_v11, 6 }
 0x1c0   : > { %v1396_v8 = vmul.f32 %v4299_v2, %v1279_v39  ;;  %v1445_v42 = vmul.f32 %v4008_v7, %v1343_v26  ;;  %v1605_v40 = vrot.slane %v1589_v55, 2  ;;  %v4300_v15 = vrot.slane %v4283_v37, 4 }
 0x1c1   : > { %v2422_v0 = vadd.f32 %v2406_v25, %v2382_v50  ;;  %v2374_v28 = vadd.f32 %v2358_v6, %v2334_v5  ;;  %v2470_v10 = vadd.f32 %v2454_v17, %v2430_v27  ;;  %v2518_v18 = vadd.f32 %v2502_v49, %v2478_v47 }
 0x1c2   : > { %v1653_v32 = vsub.f32 %v4296_v54, %v4300_v15  ;;  %v1661_v20 = vrot.slane %v3839_v30, 5  ;;  %v1461_v46 = vrot.slane %v1445_v42, 6  ;;  %v1621_v23 = vsub.f32 %v1557_v62, %v1605_v40 }
 0x1c3   : > { %v2605_v48 = vrot.slane %v2422_v0, 1  ;;  %v1685_v9 = vrot.slane %v3833_v35, 1  ;;  %v2629_v63 = vrot.slane %v2470_v10, 7  ;;  %v1781_v22 = vrot.slane %v3839_v30, 4 }
 0x1c4   : > { %v1677_v3 = vmul.f32 %v1661_v20, %v1645_v43  ;;  %v1773_v31 = vmul.f32 %v1653_v32, %v3833_v35  ;;  %v4037_v24 = vadd.f32 %v1461_v46, %v1396_v8  ;;  %3080 = vrcp.f32 %v1621_v23 }
 0x1c5   : > { %v2645_v37 = vsel %vm2544_vm12, %v2374_v28, %v2605_v48  ;;  %v1701_v36 = vmul.f32 %v1685_v9, %v1653_v32  ;;  %v1797_v5 = vmul.f32 %v1781_v22, %v1645_v43  ;;  %v1901_v27 = vmul.f32 %v1653_v32, %v1573_v59 }
 0x1c6   : > { %v2654_v50 = vsel %vm2647_vm2, %v2645_v37, %v2629_v63  ;;  %v1853_v45 = vrot.slane %v1773_v31, 2  ;;  %v1909_v19 = vmul.f32 %v1645_v43, %v1541_v38  ;;  %v1981_v11 = vrot.slane %v4296_v54, 6 }
 0x1c7   : > { %v4041_v47 = vsel %vm2656_vm3, %v2654_v50, %v2518_v18  ;;  %v1717_v60 = vrot.slane %v1701_v36, 2  ;;  %v1813_v39 = vrot.slane %v1797_v5, 6  ;;  %v2005_v26 = vrot.slane %v4296_v54, 4 }
 0x1c8   : > { %v1869_v25 = vsub.f32 %v1797_v5, %v1853_v45  ;;  %v2029_v62 = vrot.slane %v3839_v30, 7  ;;  %v1925_v6 = vrot.slane %v1909_v19, 6  ;;  %v1997_v17 = vsub.f32 %v4296_v54, %v1981_v11 }
 0x1c9   : > { %v1733_v55 = vsub.f32 %v1677_v3, %v1717_v60  ;;  %v2053_v59 = vrot.slane %v3833_v35, 3  ;;  %v1829_v49 = vsub.f32 %v1773_v31, %v1813_v39  ;;  %v2021_v8 = vsub.f32 %v3657_v52, %v2005_v26  ;;  %v4301_v31 = vld [vmem:[#allocation23_spill] sm:$0xff] }
 0x1ca   : > { %v2133_v0 = vrot.slane %v3833_v35, 2  ;;  %v2157_v38 = vrot.slane %v3839_v30, 6  ;;  %v1941_v43 = vsub.f32 %v1901_v27, %v1925_v6  ;;  %v2045_v42 = vmul.f32 %v2029_v62, %v1997_v17 }
 0x1cb   : > { %v2285_v40 = vmul.f32 %v1997_v17, %v1661_v20  ;;  %v2533_v15 = vrot.slane %v4037_v24, 6  ;;  %v2069_v32 = vmul.f32 %v2053_v59, %v2021_v8  ;;  %v2277_v18 = vmul.f32 %v2021_v8, %v1685_v9 }
 0x1cc   : > { %v2149_v28 = vmul.f32 %v2133_v0, %v2021_v8  ;;  %v2173_v10 = vmul.f32 %v2157_v38, %v1997_v17  ;;  %v1051_v54 = vrot.slane %v3893_v12, %v3312_v21  ;;  %v1101_v52 = vrot.slane %v3895_v53, %v3312_v21 }
 0x1cd   : > { %v2301_v48 = vrot.slane %v2285_v40, 6  ;;  %v1183_v35 = vrot.slane %v3898_v51, %v3312_v21  ;;  %v2085_v30 = vrot.slane %v2069_v32, 2  ;;  %v1265_v20 = vrot.slane %v3938_v44, %v3312_v21 }
 0x1ce   : > { %v2189_v46 = vrot.slane %v2173_v10, 6  ;;  %v2229_v23 = vrot.slane %v2149_v28, 2  ;;  %v3081_v63 = vpop.eup %3080  ;;  %v1067_v9 = vmul.f32 %v1051_v54, %v4285_v58  ;;  %v1117_v22 = vmul.f32 %v1101_v52, %v4301_v31 }
 0x1cf   : > { %v2317_v3 = vsub.f32 %v2277_v18, %v2301_v48  ;;  %v1199_v12 = vmul.f32 %v1183_v35, %v4301_v31  ;;  %v1749_v37 = vrot.slane %v3081_v63, 2  ;;  %v1837_v36 = vmul.f32 %v3081_v63, %v1829_v49 }
 0x1d0   : > { %v1877_v53 = vrot.slane %v3081_v63, 1  ;;  %v1949_v50 = vrot.slane %v3081_v63, 7  ;;  %v2101_v5 = vsub.f32 %v2045_v42, %v2085_v30  ;;  %v2109_v51 = vrot.slane %v3081_v63, 4  ;;  %v4302_v30 = vld [vmem:[#allocation6_spill] sm:$0xff] }
 0x1d1   : > { %v2205_v45 = vsub.f32 %v2149_v28, %v2189_v46  ;;  %v2245_v27 = vsub.f32 %v2173_v10, %v2229_v23  ;;  %v1765_v60 = vmul.f32 %v1749_v37, %v1733_v55  ;;  %v2253_v21 = vrot.slane %v3081_v63, 3 }
 0x1d2   : > { %v1893_v19 = vmul.f32 %v1877_v53, %v1869_v25  ;;  %v1965_v11 = vmul.f32 %v1949_v50, %v1941_v43  ;;  %v2125_v44 = vmul.f32 %v2109_v51, %v2101_v5  ;;  %v2325_v26 = vmul.f32 %v2317_v3, %v1877_v53 }
 0x1d3   : > { %v2213_v39 = vmul.f32 %v2205_v45, %v1749_v37  ;;  %v2381_v62 = vmul.f32 %v1837_v36, %v4299_v2  ;;  %v2269_v6 = vmul.f32 %v2253_v21, %v2245_v27  ;;  %v2333_v17 = vmul.f32 %v1765_v60, %v4299_v2 }
 0x1d4   : > { %v2429_v59 = vmul.f32 %v1893_v19, %v4299_v2  ;;  %v2477_v49 = vmul.f32 %v1965_v11, %v4299_v2  ;;  %v2341_v8 = vmul.f32 %v2125_v44, %v4008_v7  ;;  %v2485_v25 = vmul.f32 %v2325_v26, %v4008_v7  ;;  %v4305_v19 = vld [vmem:[#allocation12_spill] sm:$0xff] }
 0x1d5   : > { %v2389_v0 = vmul.f32 %v2213_v39, %v4008_v7  ;;  %v1133_v55 = vrot.slane %v1117_v22, 2  ;;  %v2437_v38 = vmul.f32 %v2269_v6, %v4008_v7  ;;  %v1215_v43 = vrot.slane %v1199_v12, 4 }
 0x1d6   : > { %v1289_v42 = vmul.f32 %v1051_v54, %v4301_v31  ;;  %v1305_v40 = vmul.f32 %v1183_v35, %v3713_v14  ;;  %v2357_v32 = vrot.slane %v2341_v8, 6  ;;  %v2501_v10 = vrot.slane %v2485_v25, 6 }
 0x1d7   : > { %v2405_v28 = vrot.slane %v2389_v0, 6  ;;  %v1149_v18 = vadd.f32 %v1133_v55, %v1067_v9  ;;  %v2453_v48 = vrot.slane %v2437_v38, 6  ;;  %v4077_v46 = vrot.slane %v4287_v61, %v4302_v30 }
 0x1d8   : > { %v1297_v2 = vadd.f32 %v1289_v42, %v1133_v55  ;;  %v1321_v52 = vrot.slane %v1305_v40, 4  ;;  %v2373_v23 = vadd.f32 %v2357_v32, %v2333_v17  ;;  %v2517_v3 = vadd.f32 %v2501_v10, %v2477_v49 }
 0x1d9   : > { %v2421_v63 = vadd.f32 %v2405_v28, %v2381_v62  ;;  %v1231_v7 = vadd.f32 %v1215_v43, %v1149_v18  ;;  %v2469_v22 = vadd.f32 %v2453_v48, %v2429_v59  ;;  %v1543_v54 = vrot.slane %v3866_v34, 3 }
 0x1da   : > { %v1337_v12 = vadd.f32 %v1321_v52, %v1297_v2  ;;  %v1575_v35 = vrot.slane %v3851_v1, 7  ;;  %v4303_v9 = vrot.slane %v4285_v58, 6  ;;  %v4304_v50 = vrot.slane %v4285_v58, 4 }
 0x1db   : > { %v2604_v37 = vrot.slane %v2421_v63, 1  ;;  %v1281_v36 = vmul.f32 %v1265_v20, %v1231_v7  ;;  %v2628_v5 = vrot.slane %v2469_v22, 7  ;;  %v1559_v45 = vmul.f32 %v1543_v54, %v3851_v1 }
 0x1dc   : > { %v1647_v53 = vsub.f32 %v4301_v31, %v4303_v9  ;;  %v1655_v61 = vsub.f32 %v4301_v31, %v4304_v50  ;;  %v1345_v51 = vmul.f32 %v1337_v12, %v1265_v20  ;;  %v1591_v27 = vmul.f32 %v1575_v35, %v3866_v34 }
 0x1dd   : > { %v2644_v60 = vsel %vm2544_vm12, %v2373_v23, %v2604_v37  ;;  %v1398_v11 = vmul.f32 %v4305_v19, %v1281_v36  ;;  %v1663_v21 = vrot.slane %v3866_v34, 5  ;;  %v1687_v44 = vrot.slane %v3851_v1, 1 }
 0x1de   : > { %v2653_v39 = vsel %vm2647_vm2, %v2644_v60, %v2628_v5  ;;  %v1447_v58 = vmul.f32 %v4077_v46, %v1345_v51  ;;  %v1607_v26 = vrot.slane %v1591_v27, 2  ;;  %v1775_v20 = vmul.f32 %v1655_v61, %v3851_v1 }
 0x1df   : > { %v2662_v62 = vsel %vm2656_vm3, %v2653_v39, %v2517_v3  ;;  %v1679_v6 = vmul.f32 %v1663_v21, %v1647_v53  ;;  %v1703_v17 = vmul.f32 %v1687_v44, %v1655_v61  ;;  %v1783_v59 = vrot.slane %v3866_v34, 4 }
 0x1e0   : > { %v2675_v49 = vcombine.low %v3974_v33, %v2662_v62  ;;  %v1463_v8 = vrot.slane %v1447_v58, 6  ;;  %v1623_v0 = vsub.f32 %v1559_v45, %v1607_v26  ;;  %v1855_v25 = vrot.slane %v1775_v20, 2 }
 0x1e1   : > { %v1719_v55 = vrot.slane %v1703_v17, 2  ;;  %v1799_v38 = vmul.f32 %v1783_v59, %v1647_v53  ;;  %v1903_v43 = vmul.f32 %v1655_v61, %v1575_v35  ;;  %v1911_v42 = vmul.f32 %v1647_v53, %v1543_v54 }
 0x1e2   : > { %2683 = vst [vmem:[%s3773_s7 + $0x10] sm:$0xff] %v2675_v49  ;;  %v1479_v40 = vadd.f32 %v1463_v8, %v1398_v11  ;;  %3082 = vrcp.f32 %v1623_v0  ;;  %v1983_v32 = vrot.slane %v4301_v31, 6  ;;  %v2007_v28 = vrot.slane %v4301_v31, 4 }
 0x1e3   : > { %v1735_v10 = vsub.f32 %v1679_v6, %v1719_v55  ;;  %v1815_v18 = vrot.slane %v1799_v38, 6  ;;  %v1871_v48 = vsub.f32 %v1799_v38, %v1855_v25  ;;  %v1927_v2 = vrot.slane %v1911_v42, 6 }
 0x1e4   : > { %v1999_v33 = vsub.f32 %v4301_v31, %v1983_v32  ;;  %v2023_v52 = vsub.f32 %v3713_v14, %v2007_v28  ;;  %v2031_v30 = vrot.slane %v3866_v34, 7  ;;  %v2055_v23 = vrot.slane %v3851_v1, 3 }
 0x1e5   : > { %v1831_v63 = vsub.f32 %v1775_v20, %v1815_v18  ;;  %v1943_v3 = vsub.f32 %v1903_v43, %v1927_v2  ;;  %v2135_v7 = vrot.slane %v3851_v1, 2  ;;  %v2159_v22 = vrot.slane %v3866_v34, 6  ;;  %v4309_v34 = vld [vmem:[#allocation26_spill] sm:$0xff] }
 0x1e6   : > { %v2047_v12 = vmul.f32 %v2031_v30, %v1999_v33  ;;  %v2071_v54 = vmul.f32 %v2055_v23, %v2023_v52  ;;  %v2279_v35 = vmul.f32 %v2023_v52, %v1687_v44  ;;  %v2287_v37 = vmul.f32 %v1999_v33, %v1663_v21  ;;  %v4311_v21 = vld [vmem:[#allocation13_spill] sm:$0xff] }
 0x1e7   : > { %v2151_v36 = vmul.f32 %v2135_v7, %v2023_v52  ;;  %v2175_v31 = vmul.f32 %v2159_v22, %v1999_v33  ;;  %v2535_v9 = vrot.slane %v1479_v40, 6  ;;  %v4306_v14 = vrot.slane %v3717_v57, 6 }
 0x1e8   : > { %v4307_v53 = vrot.slane %v3648_v29, 6  ;;  %v2087_v61 = vrot.slane %v2071_v54, 2  ;;  %v2303_v5 = vrot.slane %v2287_v37, 6  ;;  %v4308_v1 = vrot.slane %v3776_v16, 6 }
 0x1e9   : > { %v4310_v51 = vrot.slane %v4309_v34, 6  ;;  %v2570_v27 = vcombine.low %v2532_v4, %v2533_v15  ;;  %v2191_v60 = vrot.slane %v2175_v31, 6  ;;  %v2231_v11 = vrot.slane %v2151_v36, 2 }
 0x1ea   : > { %v2553_v50 = vcombine.low %v4307_v53, %v4306_v14  ;;  %v2571_v29 = vcombine.low %v2534_v41, %v2535_v9  ;;  %v2103_v44 = vsub.f32 %v2047_v12, %v2087_v61  ;;  %v2319_v39 = vsub.f32 %v2279_v35, %v2303_v5 }
 0x1eb   : > { %v2554_v45 = vcombine.low %v4310_v51, %v4308_v1  ;;  %v2578_v16 = vrot.slane %v2570_v27, %v4311_v21  ;;  %v2207_v26 = vsub.f32 %v2151_v36, %v2191_v60  ;;  %v2247_v20 = vsub.f32 %v2175_v31, %v2231_v11 }
 0x1ec   : > { %v2561_v57 = vrot.slane %v2553_v50, %v4311_v21  ;;  %v2585_v24 = vrot.slane %v2571_v29, %v4311_v21  ;;  %v3083_v56 = vpop.eup %3082 }
 0x1ed   : > { %v2568_v58 = vrot.slane %v2554_v45, %v4311_v21  ;;  %v1751_v15 = vrot.slane %v3083_v56, 2  ;;  %v1839_v62 = vmul.f32 %v3083_v56, %v1831_v63  ;;  %v1879_v6 = vrot.slane %v3083_v56, 1 }
 0x1ee   : > { %v1951_v13 = vrot.slane %v3083_v56, 7  ;;  %v2111_v41 = vrot.slane %v3083_v56, 4  ;;  %v2255_v17 = vrot.slane %v3083_v56, 3  ;;  %v2586_v59 = vcombine.low %v2578_v16, %v2585_v24 }
 0x1ef   : > { %v2569_v4 = vcombine.low %v2561_v57, %v2568_v58  ;;  %v1767_v49 = vmul.f32 %v1751_v15, %v1735_v10  ;;  %v1895_v8 = vmul.f32 %v1879_v6, %v1871_v48  ;;  %v2215_v25 = vmul.f32 %v2207_v26, %v1751_v15 }
 0x1f0   : > { %v1967_v0 = vmul.f32 %v1951_v13, %v1943_v3  ;;  %v2127_v55 = vmul.f32 %v2111_v41, %v2103_v44  ;;  %v2271_v38 = vmul.f32 %v2255_v17, %v2247_v20  ;;  %v2327_v43 = vmul.f32 %v2319_v39, %v1879_v6  ;;  %2590 = vst [vmem:[%s308_s15 + $0x8] sm:$0xff] %v2586_v59 }
 0x1f1   : > { %2589 = vst [vmem:[%s308_s15] sm:$0xff] %v2569_v4  ;;  %v2391_v42 = vmul.f32 %v2215_v25, %v4077_v46 }
 0x1f2   : > { %3097 = shalt.err (!%p3094_p5)
}
 0x1f3   : > { %s3098_s10 = scalar_lea.hbm %s4133_s25, 256  ;;  %s3102_s13 = scalar_lea.hbm %s4199_s4, 512 }
 0x1f4   : > { %p3099_p6 = scmp.ne.s32.totalorder %s4133_s25, %s3098_s10  ;;  %p3103_p10 = scmp.lt.u32.totalorder %s4133_s25, %s4199_s4 }
 0x1f5   : > { %p3104_p11 = scmp.lt.u32.totalorder %s3102_s13, %s3098_s10  ;;  %p3106_p13 = scmp.lt.u32.totalorder %s3098_s10, %s4133_s25 }
 0x1f6   : > { %p3100_p7 = pnand %p3099_p6, %p3238_p4 }
 0x1f7   : > { %p3105_p12 = por %p3104_p11, %p3103_p10 }
 0x1f8   : > { %p3101_p9 = pneg %p3100_p7 }
 0x1f9   : > { %p3107_p0 = por %p3106_p13, %p3105_p12 }
 0x1fb   : > { %p3108_p1 = pnand %p3107_p0, %p3101_p9 }
 0x1fd   : > { %3111 = shalt.err (!%p3108_p1)
}
 0x1fe   : > { %3006 = dma.vmem_to_hbm [thread:$0]  (%p3238_p4), %s4135_s16, 256, %s4133_s25, %s2686_s21   ;;  %v2343_v40 = vmul.f32 %v2127_v55, %v4077_v46  ;;  %v2439_v32 = vmul.f32 %v2271_v38, %v4077_v46  ;;  %v2487_v28 = vmul.f32 %v2327_v43, %v4077_v46  ;;  %v2335_v10 = vmul.f32 %v1767_v49, %v4305_v19 }
 0x1ff   : > { %v2383_v18 = vmul.f32 %v1839_v62, %v4305_v19  ;;  %v2407_v48 = vrot.slane %v2391_v42, 6  ;;  %v2431_v2 = vmul.f32 %v1895_v8, %v4305_v19  ;;  %v2479_v30 = vmul.f32 %v1967_v0, %v4305_v19 }
 0x200   : > { %v2359_v33 = vrot.slane %v2343_v40, 6  ;;  %v2455_v52 = vrot.slane %v2439_v32, 6  ;;  %v2503_v23 = vrot.slane %v2487_v28, 6 }
 0x201   : > { %v2423_v63 = vadd.f32 %v2407_v48, %v2383_v18 }
 0x202   : > { %v2375_v3 = vadd.f32 %v2359_v33, %v2335_v10  ;;  %v2471_v7 = vadd.f32 %v2455_v52, %v2431_v2  ;;  %v2519_v22 = vadd.f32 %v2503_v23, %v2479_v30 }
 0x203   : > { %v2606_v12 = vrot.slane %v2423_v63, 1 }
 0x204   : > { %v2630_v54 = vrot.slane %v2471_v7, 7 }
 0x205   : > { %v2646_v46 = vsel %vm2544_vm12, %v2375_v3, %v2606_v12 }
 0x206   : > { %v2655_v35 = vsel %vm2647_vm2, %v2646_v46, %v2630_v54 }
 0x207   : > { %v2664_v37 = vsel %vm2656_vm3, %v2655_v35, %v2519_v22 }
 0x208   : > { %v2676_v36 = vcombine.low %v4041_v47, %v2664_v37 }
 0x20a   : > { %2684 = vst [vmem:[%s3773_s7 + $0x18] sm:$0xff] %v2676_v36 }
 0x20b PF: > { %p3012_p4 = scmp.ge.s32.totalorder %s3162_s23, 2  ;;  %s2727_s28 = sand.u32 1, %s3142_s18  }
 0x20c   : > { %s2728_s16 = scalar_lea.sflag [#allocation3], %s2727_s28 }
 0x20d   : > { %p3009_p2 = pnand %p3012_p4, %p3245_p8 }
 0x20f   : > { %3137 = dma.done.wait (!%p3009_p2), %s2728_s16, 256  }
 0x210   : > { %3139 = vsyncadd (!%p3009_p2), %s2728_s16, 4294967040  ;;  %s19_s23 = sadd.s32 1, %s3162_s23   ;;  %s4312_s18 = smov %s3146_s19 }
 0x211   : > { %p16_p3 = scmp.ge.s32.totalorder %s19_s23, 4   ;;  %s4313_s19 = smov %s3150_s20 }
 0x212   : > { %s4314_s20 = smov %s3251_s6  ;;  %s4315_s21 = smov %s3158_s22 }
 0x213   : > { %s4316_s22 = smov %s4318_s26  ;;  %18 = sbr.rel (!%p16_p3) target bundleno = 4 (0x4), region = 92 }
 0x21a   :  { %2745 = vsyncpa [#allocation3], 1 }
 0x21b   :  { %2747 = vsyncpa [#allocation3 + $0x1], 1 }

</bundles_post_ra>
